<compile_context>
chip_gen: v6e
topology: v6e:2x2x1
jax: 0.10.0
libtpu: 0.0.40
codegen_flags: <defaults>
</compile_context>

<pallas_src>
import functools

import jax
import jax.numpy as jnp
from jax import lax
from jax.experimental import pallas as pl
from jax.experimental.pallas import tpu as pltpu

KSIZE = 4
STRIDE = 2
PAD = 1
LANE = 128


def _round_up(x, m):
    return (x + m - 1) // m * m


# ----------------------------------------------------------------------------
# Pallas kernel: fused (patches @ weight) + bias + activation
# ----------------------------------------------------------------------------
def _matmul_bias_act_kernel(p_ref, w_ref, b_ref, o_ref, *, activation):
    acc = jnp.dot(p_ref[...], w_ref[...], preferred_element_type=jnp.float32)
    acc = acc + b_ref[...]
    if activation == "relu":
        acc = jnp.maximum(acc, 0.0)
    elif activation == "tanh":
        acc = jnp.tanh(acc)
    o_ref[...] = acc.astype(o_ref.dtype)


def _pick_tile_m(m, k, max_bytes=4 * 1024 * 1024):
    """Largest row-tile that divides M, keeps >=2 grid steps (v7x megacore)
    and keeps the double-buffered patch block comfortably inside VMEM."""
    for t in (1024, 512, 256, 128, 64, 32, 16, 8):
        if m % t == 0 and m // t >= 2 and t * k * 4 <= max_bytes:
            return t
    return m  # tiny / odd M: one full block


def _fused_matmul(patches, w_mat, bias_row, activation):
    """[M, K] @ [K, Ncol] + [1, Ncol], activation, tiled over M."""
    m, k = patches.shape
    ncol = w_mat.shape[1]
    tile_m = _pick_tile_m(m, k)
    kernel = functools.partial(_matmul_bias_act_kernel, activation=activation)
    return pl.pallas_call(
        kernel,
        out_shape=jax.ShapeDtypeStruct((m, ncol), patches.dtype),
        grid_spec=pltpu.PrefetchScalarGridSpec(
            num_scalar_prefetch=0,
            grid=(m // tile_m,),
            in_specs=[
                pl.BlockSpec((tile_m, k), lambda i: (i, 0)),
                pl.BlockSpec((k, ncol), lambda i: (0, 0)),
                pl.BlockSpec((1, ncol), lambda i: (0, 0)),
            ],
            out_specs=pl.BlockSpec((tile_m, ncol), lambda i: (i, 0)),
        ),
        compiler_params=pltpu.CompilerParams(
            dimension_semantics=("parallel",)),
    )(patches, w_mat, bias_row)


# ----------------------------------------------------------------------------
# ConvTranspose2d(k=4, s=2, p=1) via sub-pixel decomposition
#
#   out[n, 2q+r, 2p+s, co] =
#     sum_{dh,dw in {0,1}} sum_ci xp[n, q+r+dh, p+s+dw, ci]
#                                 * w[ci, co, 3-r-2dh, 3-s-2dw] + b[co]
#   (xp = x padded by 1).  Writing dy = r+dh, dx = s+dw gives the 3x3-window
#   form used below: kernel tap (3+r-2dy, 3+s-2dx) when it lies in [0, 4).
# ----------------------------------------------------------------------------
def _subpixel_weights(w_t, bias, cout_pad):
    """w_t: [Cin, Cout, 4, 4] (PyTorch ConvTranspose2d layout) ->
    matmul weight [9*Cin, 4*cout_pad] and bias [1, 4*cout_pad]."""
    cin, cout = w_t.shape[0], w_t.shape[1]
    w_big = jnp.zeros((3, 3, cin, 2, 2, cout_pad), w_t.dtype)
    for dy in range(3):
        for r in range(2):
            kh = 3 + r - 2 * dy
            if not 0 <= kh < KSIZE:
                continue
            for dx in range(3):
                for s in range(2):
                    kw = 3 + s - 2 * dx
                    if not 0 <= kw < KSIZE:
                        continue
                    w_big = w_big.at[dy, dx, :, r, s, :cout].set(
                        w_t[:, :, kh, kw])
    w_big = w_big.reshape(9 * cin, 4 * cout_pad)
    b_big = jnp.zeros((2, 2, cout_pad), bias.dtype).at[:, :, :cout].set(bias)
    return w_big, b_big.reshape(1, 4 * cout_pad)


def conv_transpose_2x(x_nhwc, w_t, bias, activation):
    """x_nhwc: [N, H, W, Cin]; w_t: [Cin, Cout, 4, 4]; bias: [Cout]
    -> [N, 2H, 2W, Cout] with the fused activation."""
    n, h, w, cin = x_nhwc.shape
    cout = w_t.shape[1]
    cout_pad = _round_up(cout, LANE)          # lane-dense output stores

    # pad by 1 (out[2q+r] only ever reads xp[q .. q+2]); no zero-insertion
    xp = jnp.pad(x_nhwc, ((0, 0), (1, 1), (1, 1), (0, 0)))

    # compact im2col on the ORIGINAL resolution: 9 taps (3x3 window), the
    # union of the four 2x2 parity windows.
    # NOTE: could be formed inside the kernel (DMA the padded tile and slice
    # in VMEM) to avoid materializing the 9x patch matrix in HBM entirely.
    taps = [xp[:, dy:dy + h, dx:dx + w, :]
            for dy in range(3) for dx in range(3)]
    patches = jnp.stack(taps, axis=-2).reshape(n * h * w, 9 * cin)

    w_big, b_big = _subpixel_weights(w_t, bias, cout_pad)
    out2d = _fused_matmul(patches, w_big, b_big, activation)  # [N*H*W, 4*Cp]

    # depth-to-space: columns are (r, s, co) per input pixel
    out = out2d.reshape(n, h, w, 2, 2, cout_pad)[..., :cout]
    out = jnp.transpose(out, (0, 1, 3, 2, 4, 5)).reshape(n, 2 * h, 2 * w, cout)
    return out


# ----------------------------------------------------------------------------
# Decoder forward (NCHW boundary, NHWC internally)
# ----------------------------------------------------------------------------
def decoder_forward(x_nchw, params):
    x = jnp.transpose(x_nchw, (0, 2, 3, 1))                  # NCHW -> NHWC
    x = conv_transpose_2x(x, params["w1"], params["b1"], "relu")
    x = conv_transpose_2x(x, params["w2"], params["b2"], "tanh")
    return jnp.transpose(x, (0, 3, 1, 2))                    # NHWC -> NCHW


def init_params(key, embedding_dim, hidden_channels, out_channels):
    k1, k2, k3, k4 = jax.random.split(key, 4)
    # PyTorch ConvTranspose2d weight layout: [Cin, Cout, kh, kw]
    s1 = 1.0 / jnp.sqrt(embedding_dim * KSIZE * KSIZE)
    s2 = 1.0 / jnp.sqrt(hidden_channels * KSIZE * KSIZE)
    return {
        "w1": jax.random.uniform(k1, (embedding_dim, hidden_channels, KSIZE, KSIZE),
                                 jnp.float32, -s1, s1),
        "b1": jax.random.uniform(k2, (hidden_channels,), jnp.float32, -s1, s1),
        "w2": jax.random.uniform(k3, (hidden_channels, out_channels, KSIZE, KSIZE),
                                 jnp.float32, -s2, s2),
        "b2": jax.random.uniform(k4, (out_channels,), jnp.float32, -s2, s2),
    }


# ----------------------------------------------------------------------------
# Pure-JAX reference (lax dilated conv) for a sanity check
# ----------------------------------------------------------------------------
def _ref_conv_transpose(x_nhwc, w_t, bias):
    w_hwio = jnp.transpose(w_t[:, :, ::-1, ::-1], (2, 3, 0, 1))
    y = lax.conv_general_dilated(
        x_nhwc, w_hwio, window_strides=(1, 1),
        padding=[(2, 2), (2, 2)], lhs_dilation=(2, 2),
        dimension_numbers=("NHWC", "HWIO", "NHWC"))
    return y + bias


def _ref_decoder(x_nchw, params):
    x = jnp.transpose(x_nchw, (0, 2, 3, 1))
    x = jax.nn.relu(_ref_conv_transpose(x, params["w1"], params["b1"]))
    x = jnp.tanh(_ref_conv_transpose(x, params["w2"], params["b2"]))
    return jnp.transpose(x, (0, 3, 1, 2))


if __name__ == "__main__":
    # small, shape-consistent instantiation of the module
    N, embedding_dim, hidden_channels, out_channels = 2, 32, 64, 3
    H = W = 8  # -> 16x16 after conv1, 32x32 after conv2

    key = jax.random.PRNGKey(0)
    kx, kp = jax.random.split(key)
    x = jax.random.normal(kx, (N, embedding_dim, H, W), jnp.float32)  # NCHW
    params = init_params(kp, embedding_dim, hidden_channels, out_channels)

    out = jax.jit(decoder_forward)(x, params)
    out = jax.block_until_ready(out)
    assert out.shape == (N, out_channels, 4 * H, 4 * W), out.shape

    ref = _ref_decoder(x, params)
    assert jnp.allclose(out, ref, atol=1e-4, rtol=1e-4)

    print("KERNEL_OK")
</pallas_src>

<mosaic_0001>
module attributes {stable_mosaic.version = 11 : i64} {
  func.func @_matmul_bias_act_kernel(%arg0: i32, %arg1: memref<64x288xf32, #tpu.memory_space<vmem>>, %arg2: memref<288x512xf32, #tpu.memory_space<vmem>>, %arg3: memref<1x512xf32, #tpu.memory_space<vmem>>, %arg4: memref<64x512xf32, #tpu.memory_space<vmem>>) attributes {dimension_semantics = [#tpu.dimension_semantics<parallel>], iteration_bounds = array<i64: 2>, scalar_prefetch = 0 : i64, scratch_operands = 0 : i64, tpu.core_type = #tpu.core_type<tc>, window_params = [{transform_indices = @transform_0, window_bounds = array<i64: 64, 288>}, {pipeline_mode = #tpu.pipeline_mode<synchronous>, transform_indices = @transform_1, window_bounds = array<i64: 288, 512>}, {pipeline_mode = #tpu.pipeline_mode<synchronous>, transform_indices = @transform_2, window_bounds = array<i64: 1, 512>}, {transform_indices = @transform_3, window_bounds = array<i64: 64, 512>}]} {
    %c0 = arith.constant 0 : index
    %c0_0 = arith.constant 0 : index
    %0 = vector.load %arg1[%c0, %c0_0] : memref<64x288xf32, #tpu.memory_space<vmem>>, vector<64x288xf32>
    %c0_1 = arith.constant 0 : index
    %c0_2 = arith.constant 0 : index
    %1 = vector.load %arg2[%c0_1, %c0_2] : memref<288x512xf32, #tpu.memory_space<vmem>>, vector<288x512xf32>
    %cst = arith.constant dense<0.000000e+00> : vector<64x512xf32>
    %2 = tpu.matmul %0, %1, %cst {dimension_numbers = #tpu.dot_dimension_numbers<[1], [0], [0], [1], [0, 0, 1, 1], [], []>} : vector<64x288xf32>, vector<288x512xf32>, vector<64x512xf32> -> vector<64x512xf32>
    %c0_3 = arith.constant 0 : index
    %c0_4 = arith.constant 0 : index
    %3 = vector.load %arg3[%c0_3, %c0_4] : memref<1x512xf32, #tpu.memory_space<vmem>>, vector<1x512xf32>
    %4 = vector.broadcast %3 : vector<1x512xf32> to vector<64x512xf32>
    %5 = arith.addf %2, %4 : vector<64x512xf32>
    %cst_5 = arith.constant 0.000000e+00 : f32
    %6 = vector.broadcast %cst_5 : f32 to vector<64x512xf32>
    %7 = arith.maximumf %5, %6 : vector<64x512xf32>
    %c0_6 = arith.constant 0 : index
    %c0_7 = arith.constant 0 : index
    %8 = vector.load %arg4[%c0_6, %c0_7] : memref<64x512xf32, #tpu.memory_space<vmem>>, vector<64x512xf32>
    tpu.vector_store %arg4[%c0_6, %c0_7], %7 {strides = array<i32>} : memref<64x512xf32, #tpu.memory_space<vmem>>, vector<64x512xf32>,
    return
  }
  func.func @transform_0(%arg0: i32) -> (i32, i32) {
    %c0_i32 = arith.constant 0 : i32
    %c0_i32_0 = arith.constant 0 : i32
    return %arg0, %c0_i32 : i32, i32
  }
  func.func @transform_1(%arg0: i32) -> (i32, i32) {
    %c0_i32 = arith.constant 0 : i32
    %c0_i32_0 = arith.constant 0 : i32
    %c0_i32_1 = arith.constant 0 : i32
    return %c0_i32, %c0_i32_0 : i32, i32
  }
  func.func @transform_2(%arg0: i32) -> (i32, i32) {
    %c0_i32 = arith.constant 0 : i32
    %c0_i32_0 = arith.constant 0 : i32
    %c0_i32_1 = arith.constant 0 : i32
    return %c0_i32, %c0_i32_0 : i32, i32
  }
  func.func @transform_3(%arg0: i32) -> (i32, i32) {
    %c0_i32 = arith.constant 0 : i32
    %c0_i32_0 = arith.constant 0 : i32
    return %arg0, %c0_i32 : i32, i32
  }
}

module attributes {stable_mosaic.version = 11 : i64} {
  func.func @_matmul_bias_act_kernel(%arg0: i32, %arg1: memref<256x576xf32, #tpu.memory_space<vmem>>, %arg2: memref<576x512xf32, #tpu.memory_space<vmem>>, %arg3: memref<1x512xf32, #tpu.memory_space<vmem>>, %arg4: memref<256x512xf32, #tpu.memory_space<vmem>>) attributes {dimension_semantics = [#tpu.dimension_semantics<parallel>], iteration_bounds = array<i64: 2>, scalar_prefetch = 0 : i64, scratch_operands = 0 : i64, tpu.core_type = #tpu.core_type<tc>, window_params = [{transform_indices = @transform_0, window_bounds = array<i64: 256, 576>}, {pipeline_mode = #tpu.pipeline_mode<synchronous>, transform_indices = @transform_1, window_bounds = array<i64: 576, 512>}, {pipeline_mode = #tpu.pipeline_mode<synchronous>, transform_indices = @transform_2, window_bounds = array<i64: 1, 512>}, {transform_indices = @transform_3, window_bounds = array<i64: 256, 512>}]} {
    %c0 = arith.constant 0 : index
    %c0_0 = arith.constant 0 : index
    %0 = vector.load %arg1[%c0, %c0_0] : memref<256x576xf32, #tpu.memory_space<vmem>>, vector<256x576xf32>
    %c0_1 = arith.constant 0 : index
    %c0_2 = arith.constant 0 : index
    %1 = vector.load %arg2[%c0_1, %c0_2] : memref<576x512xf32, #tpu.memory_space<vmem>>, vector<576x512xf32>
    %cst = arith.constant dense<0.000000e+00> : vector<256x512xf32>
    %2 = tpu.matmul %0, %1, %cst {dimension_numbers = #tpu.dot_dimension_numbers<[1], [0], [0], [1], [0, 0, 1, 1], [], []>} : vector<256x576xf32>, vector<576x512xf32>, vector<256x512xf32> -> vector<256x512xf32>
    %c0_3 = arith.constant 0 : index
    %c0_4 = arith.constant 0 : index
    %3 = vector.load %arg3[%c0_3, %c0_4] : memref<1x512xf32, #tpu.memory_space<vmem>>, vector<1x512xf32>
    %4 = vector.broadcast %3 : vector<1x512xf32> to vector<256x512xf32>
    %5 = arith.addf %2, %4 : vector<256x512xf32>
    %6 = math.tanh %5 : vector<256x512xf32>
    %c0_5 = arith.constant 0 : index
    %c0_6 = arith.constant 0 : index
    %7 = vector.load %arg4[%c0_5, %c0_6] : memref<256x512xf32, #tpu.memory_space<vmem>>, vector<256x512xf32>
    tpu.vector_store %arg4[%c0_5, %c0_6], %6 {strides = array<i32>} : memref<256x512xf32, #tpu.memory_space<vmem>>, vector<256x512xf32>,
    return
  }
  func.func @transform_0(%arg0: i32) -> (i32, i32) {
    %c0_i32 = arith.constant 0 : i32
    %c0_i32_0 = arith.constant 0 : i32
    return %arg0, %c0_i32 : i32, i32
  }
  func.func @transform_1(%arg0: i32) -> (i32, i32) {
    %c0_i32 = arith.constant 0 : i32
    %c0_i32_0 = arith.constant 0 : i32
    %c0_i32_1 = arith.constant 0 : i32
    return %c0_i32, %c0_i32_0 : i32, i32
  }
  func.func @transform_2(%arg0: i32) -> (i32, i32) {
    %c0_i32 = arith.constant 0 : i32
    %c0_i32_0 = arith.constant 0 : i32
    %c0_i32_1 = arith.constant 0 : i32
    return %c0_i32, %c0_i32_0 : i32, i32
  }
  func.func @transform_3(%arg0: i32) -> (i32, i32) {
    %c0_i32 = arith.constant 0 : i32
    %c0_i32_0 = arith.constant 0 : i32
    return %arg0, %c0_i32 : i32, i32
  }
}

</mosaic_0001>

<bundles_post_ra>
// kernel: decoder_forward.2
= control target key start
LH: loop header
LB: loop body
LE: loop exit
PB: predicated region body
PF: predicated region fallthrough
CT: control target
= control target key end

     0   :  { %s1044_s12 = smov 0   ;;  %s1730_s0 = inlined_call_operand.vmem [shape: f32[128,288], index: 0, kind: input, shape index: {}]   ;;  %s1731_s1 = inlined_call_operand.vmem [shape: f32[288,512], index: 1, kind: input, shape index: {}]   ;;  %s1732_s2 = inlined_call_operand.vmem [shape: f32[1,512], index: 2, kind: input, shape index: {}]   ;;  %s1733_s3 = inlined_call_operand.vmem [shape: f32[128,512], index: 3, kind: output, shape index: {}]  }
   0x1 LB: > { %s968_s13 = sadd.s32 4294967295, %s1021_s12   ;;  %p972_p0 = scmp.ge.s32.totalorder %s1021_s12, 1  ;;  %s1021_s12 = sphi %s1044_s12, %s13_s12  }
   0x2   : > { %p139_p1 = scmp.lt.s32.totalorder %s1021_s12, 3 }
   0x4   : > { %p140_p2 = pnand %p972_p0, %p139_p1 }
   0x5   : > { %s973_s20 = sshll.u32 (!%p140_p2), %s968_s13, 3 }
   0x6   : > { %143 = sbr.rel (%p140_p2) target bundleno = 333 (0x14d), region = 32  ;;  %p166_p3 = scmp.lt.s32.totalorder (!%p140_p2), %s973_s20, 15 }
   0xb   : > { %v264_v0 = vld [vmem:[%s1731_s1 + $0x1e8] sm:$0xff]  ;;  %v263_v2 = vld [vmem:[%s1731_s1 + $0x1e0] sm:$0xff]  ;;  %s1735_s20 = smov (!%p166_p3, %s973_s20), 15  ;;  %vm369_vm0 = vcmask 261120   ;;  %v266_v17 = vld [vmem:[%s1731_s1 + $0x1f8] sm:$0xff]  ;;  %v1023_v21 = vmov 0.0  }
   0xc   : > { %v344_v1 = vld [vmem:[%s1731_s1 + $0x468] sm:$0xff]  ;;  %394 = vmatprep.subr.mxu0 %v264_v0  ;;  %v343_v3 = vld [vmem:[%s1731_s1 + $0x460] sm:$0xff]  ;;  %s1005_s22 = smul.u32 24, %s1735_s20  ;;  %v265_v20 = vld [vmem:[%s1731_s1 + $0x1f0] sm:$0xff]  ;;  %571 = vmatprep.mubr.f32.mxu1 %v1023_v21  ;;  %s996_s17 = sshll.u32 %s1735_s20, 5 }
   0xd   : > { %531 = vmatprep.subr.mxu1 %v344_v1  ;;  %v260_v4 = vld [vmem:[%s1731_s1 + $0x1c8] sm:$0xff]  ;;  %395 = vmatpush1.msra.mxu0 %v263_v2  ;;  %v259_v6 = vld [vmem:[%s1731_s1 + $0x1c0] sm:$0xff]  ;;  %v262_v23 = vld [vmem:[%s1731_s1 + $0x1d8] sm:$0xff]  ;;  %s1613_s21 = scalar_lea.vmem %s1733_s3, %s996_s17 }
   0xe   : > { %v340_v5 = vld [vmem:[%s1731_s1 + $0x448] sm:$0xff]  ;;  %532 = vmatpush1.msra.mxu1 %v343_v3  ;;  %v339_v7 = vld [vmem:[%s1731_s1 + $0x440] sm:$0xff]  ;;  %396 = vmatprep.subr.mxu0 %v260_v4  ;;  %s1109_s27 = scalar_lea.vmem %s1730_s0, %s1005_s22  ;;  %v261_v25 = vld [vmem:[%s1731_s1 + $0x1d0] sm:$0xff] }
   0xf   : > { %v256_v8 = vld [vmem:[%s1731_s1 + $0x1a8] sm:$0xff]  ;;  %533 = vmatprep.subr.mxu1 %v340_v5  ;;  %v255_v10 = vld [vmem:[%s1731_s1 + $0x1a0] sm:$0xff]  ;;  %397 = vmatpush1.msra.mxu0 %v259_v6  ;;  %v1115_v18 = vld [vmem:[%s1109_s27 + $0x10] sm:$0xff] }
  0x10   : > { %v336_v9 = vld [vmem:[%s1731_s1 + $0x428] sm:$0xff]  ;;  %v335_v11 = vld [vmem:[%s1731_s1 + $0x420] sm:$0xff]  ;;  %534 = vmatpush1.msra.mxu1 %v339_v7  ;;  %398 = vmatprep.subr.mxu0 %v256_v8  ;;  %v258_v27 = vld [vmem:[%s1731_s1 + $0x1b8] sm:$0xff] }
  0x11   : > { %v252_v12 = vld [vmem:[%s1731_s1 + $0x188] sm:$0xff]  ;;  %535 = vmatprep.subr.mxu1 %v336_v9  ;;  %v251_v14 = vld [vmem:[%s1731_s1 + $0x180] sm:$0xff]  ;;  %399 = vmatpush1.msra.mxu0 %v255_v10  ;;  %v257_v29 = vld [vmem:[%s1731_s1 + $0x1b0] sm:$0xff] }
  0x12   : > { %v332_v13 = vld [vmem:[%s1731_s1 + $0x408] sm:$0xff]  ;;  %v331_v15 = vld [vmem:[%s1731_s1 + $0x400] sm:$0xff]  ;;  %536 = vmatpush1.msra.mxu1 %v335_v11  ;;  %400 = vmatprep.subr.mxu0 %v252_v12  ;;  %v254_v31 = vld [vmem:[%s1731_s1 + $0x198] sm:$0xff] }
  0x13   : > { %v248_v16 = vld [vmem:[%s1731_s1 + $0x168] sm:$0xff]  ;;  %537 = vmatprep.subr.mxu1 %v332_v13  ;;  %401 = vmatpush1.msra.mxu0 %v251_v14  ;;  %v247_v19 = vld [vmem:[%s1731_s1 + $0x160] sm:$0xff]  ;;  %v253_v33 = vld [vmem:[%s1731_s1 + $0x190] sm:$0xff] }
  0x14   : > { %538 = vmatpush1.msra.mxu1 %v331_v15  ;;  %402 = vmatprep.subr.mxu0 %v248_v16  ;;  %v244_v22 = vld [vmem:[%s1731_s1 + $0x148] sm:$0xff]  ;;  %v243_v24 = vld [vmem:[%s1731_s1 + $0x140] sm:$0xff]  ;;  %v250_v35 = vld [vmem:[%s1731_s1 + $0x178] sm:$0xff] }
  0x15   : > { %978 = vmatmul.mubr.msk.f32.vlgmr.msra.gmra.mxu1 %vm369_vm0, %v1115_v18  ;;  %620 = vmatprep.subr.mxu1 %v266_v17  ;;  %v240_v26 = vld [vmem:[%s1731_s1 + $0x128] sm:$0xff]  ;;  %v239_v28 = vld [vmem:[%s1731_s1 + $0x120] sm:$0xff]  ;;  %v249_v37 = vld [vmem:[%s1731_s1 + $0x170] sm:$0xff] }
  0x16   : > { %403 = vmatpush1.msra.mxu0 %v247_v19  ;;  %621 = vmatpush1.msra.mxu1 %v265_v20  ;;  %v236_v30 = vld [vmem:[%s1731_s1 + $0x108] sm:$0xff]  ;;  %v235_v32 = vld [vmem:[%s1731_s1 + $0x100] sm:$0xff]  ;;  %v246_v39 = vld [vmem:[%s1731_s1 + $0x158] sm:$0xff] }
  0x17   : > { %404 = vmatprep.subr.mxu0 %v244_v22  ;;  %622 = vmatprep.subr.mxu1 %v262_v23  ;;  %v232_v34 = vld [vmem:[%s1731_s1 + $0xe8] sm:$0xff]  ;;  %v231_v36 = vld [vmem:[%s1731_s1 + $0xe0] sm:$0xff]  ;;  %v245_v41 = vld [vmem:[%s1731_s1 + $0x150] sm:$0xff] }
  0x18   : > { %405 = vmatpush1.msra.mxu0 %v243_v24  ;;  %623 = vmatpush1.msra.mxu1 %v261_v25  ;;  %v228_v38 = vld [vmem:[%s1731_s1 + $0xc8] sm:$0xff]  ;;  %v227_v40 = vld [vmem:[%s1731_s1 + $0xc0] sm:$0xff]  ;;  %v242_v43 = vld [vmem:[%s1731_s1 + $0x138] sm:$0xff] }
  0x19   : > { %406 = vmatprep.subr.mxu0 %v240_v26  ;;  %624 = vmatprep.subr.mxu1 %v258_v27  ;;  %v224_v42 = vld [vmem:[%s1731_s1 + $0xa8] sm:$0xff]  ;;  %v223_v44 = vld [vmem:[%s1731_s1 + $0xa0] sm:$0xff]  ;;  %v241_v45 = vld [vmem:[%s1731_s1 + $0x130] sm:$0xff] }
  0x1a   : > { %407 = vmatpush1.msra.mxu0 %v239_v28  ;;  %625 = vmatpush1.msra.mxu1 %v257_v29  ;;  %v220_v46 = vld [vmem:[%s1731_s1 + $0x88] sm:$0xff]  ;;  %v238_v47 = vld [vmem:[%s1731_s1 + $0x118] sm:$0xff]  ;;  %v219_v48 = vld [vmem:[%s1731_s1 + $0x80] sm:$0xff] }
  0x1b   : > { %408 = vmatprep.subr.mxu0 %v236_v30  ;;  %626 = vmatprep.subr.mxu1 %v254_v31  ;;  %v237_v49 = vld [vmem:[%s1731_s1 + $0x110] sm:$0xff]  ;;  %v216_v50 = vld [vmem:[%s1731_s1 + $0x68] sm:$0xff]  ;;  %v234_v51 = vld [vmem:[%s1731_s1 + $0xf8] sm:$0xff] }
  0x1c   : > { %409 = vmatpush1.msra.mxu0 %v235_v32  ;;  %627 = vmatpush1.msra.mxu1 %v253_v33  ;;  %v215_v52 = vld [vmem:[%s1731_s1 + $0x60] sm:$0xff]  ;;  %v233_v53 = vld [vmem:[%s1731_s1 + $0xf0] sm:$0xff]  ;;  %v212_v54 = vld [vmem:[%s1731_s1 + $0x48] sm:$0xff] }
  0x1d   : > { %410 = vmatprep.subr.mxu0 %v232_v34  ;;  %628 = vmatprep.subr.mxu1 %v250_v35  ;;  %v230_v55 = vld [vmem:[%s1731_s1 + $0xd8] sm:$0xff]  ;;  %v211_v56 = vld [vmem:[%s1731_s1 + $0x40] sm:$0xff]  ;;  %v229_v57 = vld [vmem:[%s1731_s1 + $0xd0] sm:$0xff] }
  0x1e   : > { %411 = vmatpush1.msra.mxu0 %v231_v36  ;;  %629 = vmatpush1.msra.mxu1 %v249_v37  ;;  %v208_v58 = vld [vmem:[%s1731_s1 + $0x28] sm:$0xff]  ;;  %v226_v59 = vld [vmem:[%s1731_s1 + $0xb8] sm:$0xff]  ;;  %v207_v60 = vld [vmem:[%s1731_s1 + $0x20] sm:$0xff] }
  0x1f   : > { %412 = vmatprep.subr.mxu0 %v228_v38  ;;  %630 = vmatprep.subr.mxu1 %v246_v39  ;;  %v225_v61 = vld [vmem:[%s1731_s1 + $0xb0] sm:$0xff]  ;;  %v204_v62 = vld [vmem:[%s1731_s1 + $0x8] sm:$0xff]  ;;  %v222_v63 = vld [vmem:[%s1731_s1 + $0x98] sm:$0xff] }
  0x20   : > { %413 = vmatpush1.msra.mxu0 %v227_v40  ;;  %631 = vmatpush1.msra.mxu1 %v245_v41  ;;  %v203_v0 = vld [vmem:[%s1731_s1] sm:$0xff]  ;;  %v221_v1 = vld [vmem:[%s1731_s1 + $0x90] sm:$0xff]  ;;  %v328_v2 = vld [vmem:[%s1731_s1 + $0x3e8] sm:$0xff] }
  0x21   : > { %414 = vmatprep.subr.mxu0 %v224_v42  ;;  %632 = vmatprep.subr.mxu1 %v242_v43  ;;  %v218_v3 = vld [vmem:[%s1731_s1 + $0x78] sm:$0xff]  ;;  %v327_v4 = vld [vmem:[%s1731_s1 + $0x3e0] sm:$0xff]  ;;  %v217_v5 = vld [vmem:[%s1731_s1 + $0x70] sm:$0xff] }
  0x22   : > { %415 = vmatpush1.msra.mxu0 %v223_v44  ;;  %633 = vmatpush1.msra.mxu1 %v241_v45  ;;  %v324_v6 = vld [vmem:[%s1731_s1 + $0x3c8] sm:$0xff]  ;;  %v214_v7 = vld [vmem:[%s1731_s1 + $0x58] sm:$0xff]  ;;  %v323_v8 = vld [vmem:[%s1731_s1 + $0x3c0] sm:$0xff] }
  0x23   : > { %416 = vmatprep.subr.mxu0 %v220_v46  ;;  %634 = vmatprep.subr.mxu1 %v238_v47  ;;  %v213_v9 = vld [vmem:[%s1731_s1 + $0x50] sm:$0xff]  ;;  %v320_v10 = vld [vmem:[%s1731_s1 + $0x3a8] sm:$0xff]  ;;  %v210_v11 = vld [vmem:[%s1731_s1 + $0x38] sm:$0xff] }
  0x24   : > { %417 = vmatpush1.msra.mxu0 %v219_v48  ;;  %635 = vmatpush1.msra.mxu1 %v237_v49  ;;  %v319_v12 = vld [vmem:[%s1731_s1 + $0x3a0] sm:$0xff]  ;;  %v209_v13 = vld [vmem:[%s1731_s1 + $0x30] sm:$0xff]  ;;  %v316_v14 = vld [vmem:[%s1731_s1 + $0x388] sm:$0xff] }
  0x25   : > { %418 = vmatprep.subr.mxu0 %v216_v50  ;;  %636 = vmatprep.subr.mxu1 %v234_v51  ;;  %v206_v15 = vld [vmem:[%s1731_s1 + $0x18] sm:$0xff]  ;;  %v315_v16 = vld [vmem:[%s1731_s1 + $0x380] sm:$0xff]  ;;  %v205_v17 = vld [vmem:[%s1731_s1 + $0x10] sm:$0xff] }
  0x26   : > { %419 = vmatpush1.msra.mxu0 %v215_v52  ;;  %637 = vmatpush1.msra.mxu1 %v233_v53  ;;  %v312_v19 = vld [vmem:[%s1731_s1 + $0x368] sm:$0xff]  ;;  %v330_v20 = vld [vmem:[%s1731_s1 + $0x3f8] sm:$0xff]  ;;  %v311_v22 = vld [vmem:[%s1731_s1 + $0x360] sm:$0xff] }
  0x27   : > { %420 = vmatprep.subr.mxu0 %v212_v54  ;;  %638 = vmatprep.subr.mxu1 %v230_v55  ;;  %v329_v23 = vld [vmem:[%s1731_s1 + $0x3f0] sm:$0xff]  ;;  %v308_v24 = vld [vmem:[%s1731_s1 + $0x348] sm:$0xff]  ;;  %v326_v25 = vld [vmem:[%s1731_s1 + $0x3d8] sm:$0xff] }
  0x28   : > { %421 = vmatpush1.msra.mxu0 %v211_v56  ;;  %639 = vmatpush1.msra.mxu1 %v229_v57  ;;  %v307_v26 = vld [vmem:[%s1731_s1 + $0x340] sm:$0xff]  ;;  %v1328_v27 = vld [vmem:[%s1109_s27 + $0x28] sm:$0xff]  ;;  %v325_v29 = vld [vmem:[%s1731_s1 + $0x3d0] sm:$0xff] }
  0x29   : > { %422 = vmatprep.subr.mxu0 %v208_v58  ;;  %640 = vmatprep.subr.mxu1 %v226_v59  ;;  %v304_v28 = vld [vmem:[%s1731_s1 + $0x328] sm:$0xff]  ;;  %v303_v30 = vld [vmem:[%s1731_s1 + $0x320] sm:$0xff]  ;;  %v322_v31 = vld [vmem:[%s1731_s1 + $0x3b8] sm:$0xff] }
  0x2a   : > { %423 = vmatpush1.msra.mxu0 %v207_v60  ;;  %641 = vmatpush1.msra.mxu1 %v225_v61  ;;  %v300_v32 = vld [vmem:[%s1731_s1 + $0x308] sm:$0xff]  ;;  %v321_v33 = vld [vmem:[%s1731_s1 + $0x3b0] sm:$0xff]  ;;  %v318_v34 = vld [vmem:[%s1731_s1 + $0x398] sm:$0xff] }
  0x2b   : > { %424 = vmatprep.subr.mxu0 %v204_v62  ;;  %642 = vmatprep.subr.mxu1 %v222_v63  ;;  %v299_v35 = vld [vmem:[%s1731_s1 + $0x300] sm:$0xff]  ;;  %v296_v37 = vld [vmem:[%s1731_s1 + $0x2e8] sm:$0xff]  ;;  %v317_v38 = vld [vmem:[%s1731_s1 + $0x390] sm:$0xff] }
  0x2c   : > { %425 = vmatpush1.msra.mxu0 %v203_v0  ;;  %643 = vmatpush1.msra.mxu1 %v221_v1  ;;  %v1358_v36 = vld [vmem:[%s1109_s27 + $0x40] sm:$0xff]  ;;  %v314_v40 = vld [vmem:[%s1731_s1 + $0x378] sm:$0xff]  ;;  %v292_v41 = vld [vmem:[%s1731_s1 + $0x2c8] sm:$0xff] }
  0x2d   : > { %426 = vmatprep.subr.mxu0 %v328_v2  ;;  %644 = vmatprep.subr.mxu1 %v218_v3  ;;  %v295_v39 = vld [vmem:[%s1731_s1 + $0x2e0] sm:$0xff]  ;;  %v313_v42 = vld [vmem:[%s1731_s1 + $0x370] sm:$0xff]  ;;  %v310_v43 = vld [vmem:[%s1731_s1 + $0x358] sm:$0xff] }
  0x2e   : > { %427 = vmatpush2.msra.mxu0 %v327_v4  ;;  %645 = vmatpush1.msra.mxu1 %v217_v5  ;;  %v291_v44 = vld [vmem:[%s1731_s1 + $0x2c0] sm:$0xff]  ;;  %v1388_v45 = vld [vmem:[%s1109_s27 + $0x58] sm:$0xff]  ;;  %v288_v46 = vld [vmem:[%s1731_s1 + $0x2a8] sm:$0xff] }
  0x2f   : > { %428 = vmatprep.subr.mxu0 %v324_v6  ;;  %646 = vmatprep.subr.mxu1 %v214_v7  ;;  %v309_v47 = vld [vmem:[%s1731_s1 + $0x350] sm:$0xff]  ;;  %v287_v48 = vld [vmem:[%s1731_s1 + $0x2a0] sm:$0xff]  ;;  %v306_v49 = vld [vmem:[%s1731_s1 + $0x338] sm:$0xff] }
  0x30   : > { %429 = vmatpush2.msra.mxu0 %v323_v8  ;;  %647 = vmatpush1.msra.mxu1 %v213_v9  ;;  %v284_v50 = vld [vmem:[%s1731_s1 + $0x288] sm:$0xff]  ;;  %v305_v51 = vld [vmem:[%s1731_s1 + $0x330] sm:$0xff]  ;;  %v302_v52 = vld [vmem:[%s1731_s1 + $0x318] sm:$0xff] }
  0x31   : > { %430 = vmatprep.subr.mxu0 %v320_v10  ;;  %648 = vmatprep.subr.mxu1 %v210_v11  ;;  %v283_v53 = vld [vmem:[%s1731_s1 + $0x280] sm:$0xff]  ;;  %v1418_v54 = vld [vmem:[%s1109_s27 + $0x70] sm:$0xff]  ;;  %v280_v55 = vld [vmem:[%s1731_s1 + $0x268] sm:$0xff] }
  0x32   : > { %431 = vmatpush2.msra.mxu0 %v319_v12  ;;  %649 = vmatpush1.msra.mxu1 %v209_v13  ;;  %v301_v56 = vld [vmem:[%s1731_s1 + $0x310] sm:$0xff]  ;;  %v279_v57 = vld [vmem:[%s1731_s1 + $0x260] sm:$0xff]  ;;  %v298_v58 = vld [vmem:[%s1731_s1 + $0x2f8] sm:$0xff] }
  0x33   : > { %432 = vmatprep.subr.mxu0 %v316_v14  ;;  %650 = vmatprep.subr.mxu1 %v206_v15  ;;  %v276_v59 = vld [vmem:[%s1731_s1 + $0x248] sm:$0xff]  ;;  %v297_v60 = vld [vmem:[%s1731_s1 + $0x2f0] sm:$0xff]  ;;  %v294_v61 = vld [vmem:[%s1731_s1 + $0x2d8] sm:$0xff] }
  0x34   : > { %433 = vmatpush2.msra.mxu0 %v315_v16  ;;  %651 = vmatpush1.msra.mxu1 %v205_v17  ;;  %v275_v62 = vld [vmem:[%s1731_s1 + $0x240] sm:$0xff]  ;;  %v1448_v63 = vld [vmem:[%s1109_s27 + $0x88] sm:$0xff]  ;;  %v293_v1 = vld [vmem:[%s1731_s1 + $0x2d0] sm:$0xff] }
  0x35   : > { %434 = vmatprep.subr.mxu0 %v312_v19  ;;  %652 = vmatprep.subr.mxu1 %v330_v20  ;;  %v272_v0 = vld [vmem:[%s1731_s1 + $0x228] sm:$0xff]  ;;  %v271_v2 = vld [vmem:[%s1731_s1 + $0x220] sm:$0xff]  ;;  %v290_v3 = vld [vmem:[%s1731_s1 + $0x2b8] sm:$0xff] }
  0x36   : > { %435 = vmatpush2.msra.mxu0 %v311_v22  ;;  %653 = vmatpush2.msra.mxu1 %v329_v23  ;;  %v268_v4 = vld [vmem:[%s1731_s1 + $0x208] sm:$0xff]  ;;  %v289_v5 = vld [vmem:[%s1731_s1 + $0x2b0] sm:$0xff]  ;;  %v286_v6 = vld [vmem:[%s1731_s1 + $0x298] sm:$0xff] }
  0x37   : > { %436 = vmatprep.subr.mxu0 %v308_v24  ;;  %577 = vmatprep.mubr.f32.mxu1 %v1023_v21  ;;  %v267_v7 = vld [vmem:[%s1731_s1 + $0x200] sm:$0xff]  ;;  %v180_v8 = vld [vmem:[%s1109_s27 + $0x8] sm:$0xff]  ;;  %v285_v10 = vld [vmem:[%s1731_s1 + $0x290] sm:$0xff] }
  0x38   : > { %654 = vmatprep.subr.mxu1 %v326_v25  ;;  %437 = vmatpush2.msra.mxu0 %v307_v26  ;;  %v1479_v9 = vld [vmem:[%s1109_s27 + $0xa0] sm:$0xff]  ;;  %v282_v12 = vld [vmem:[%s1731_s1 + $0x278] sm:$0xff]  ;;  %v281_v14 = vld [vmem:[%s1731_s1 + $0x270] sm:$0xff] }
  0x39   : > { %979 = vmatmul.mubr.msk.f32.gmra.mxu1 %vm369_vm0, %v1328_v27  ;;  %438 = vmatprep.subr.mxu0 %v304_v28  ;;  %v179_v11 = vld [vmem:[%s1109_s27] sm:$0xff]  ;;  %v346_v13 = vld [vmem:[%s1731_s1 + $0x478] sm:$0xff]  ;;  %v345_v15 = vld [vmem:[%s1731_s1 + $0x470] sm:$0xff] }
  0x3a   : > { %655 = vmatpush2.msra.mxu1 %v325_v29  ;;  %439 = vmatpush2.msra.mxu0 %v303_v30  ;;  %v278_v16 = vld [vmem:[%s1731_s1 + $0x258] sm:$0xff]  ;;  %v183_v17 = vld [vmem:[%s1109_s27 + $0x20] sm:$0xff]  ;;  %v277_v20 = vld [vmem:[%s1731_s1 + $0x250] sm:$0xff] }
  0x3b   : > { %656 = vmatprep.subr.mxu1 %v322_v31  ;;  %440 = vmatprep.subr.mxu0 %v300_v32  ;;  %v1505_v19 = vld [vmem:[%s1109_s27 + $0xb8] sm:$0xff]  ;;  %v273_v25 = vld [vmem:[%s1731_s1 + $0x230] sm:$0xff] }
  0x3c   : > { %657 = vmatpush2.msra.mxu1 %v321_v33  ;;  %583 = vmatprep.mubr.f32.mxu1 %v1023_v21  ;;  %v182_v22 = vld [vmem:[%s1109_s27 + $0x18] sm:$0xff]  ;;  %v269_v29 = vld [vmem:[%s1731_s1 + $0x210] sm:$0xff]  ;;  %v188_v33 = vld [vmem:[%s1109_s27 + $0x48] sm:$0xff] }
  0x3d   : > { %658 = vmatprep.subr.mxu1 %v318_v34  ;;  %441 = vmatpush2.msra.mxu0 %v299_v35  ;;  %v274_v23 = vld [vmem:[%s1731_s1 + $0x238] sm:$0xff]  ;;  %v185_v30 = vld [vmem:[%s1109_s27 + $0x30] sm:$0xff]  ;;  %v192_v34 = vld [vmem:[%s1109_s27 + $0x68] sm:$0xff] }
  0x3e   : > { %980 = vmatmul.mubr.msk.f32.gmra.mxu1 %vm369_vm0, %v1358_v36  ;;  %442 = vmatprep.subr.mxu0 %v296_v37  ;;  %v186_v24 = vld [vmem:[%s1109_s27 + $0x38] sm:$0xff]  ;;  %v341_v31 = vld [vmem:[%s1731_s1 + $0x450] sm:$0xff] }
  0x3f   : > { %659 = vmatpush2.msra.mxu1 %v317_v38  ;;  %443 = vmatpush2.msra.mxu0 %v295_v39  ;;  %v270_v26 = vld [vmem:[%s1731_s1 + $0x218] sm:$0xff]  ;;  %v189_v32 = vld [vmem:[%s1109_s27 + $0x50] sm:$0xff]  ;;  %v191_v38 = vld [vmem:[%s1109_s27 + $0x60] sm:$0xff] }
  0x40   : > { %660 = vmatprep.subr.mxu1 %v314_v40  ;;  %444 = vmatprep.subr.mxu0 %v292_v41  ;;  %v342_v28 = vld [vmem:[%s1731_s1 + $0x458] sm:$0xff]  ;;  %v337_v37 = vld [vmem:[%s1731_s1 + $0x430] sm:$0xff]  ;;  %v195_v39 = vld [vmem:[%s1109_s27 + $0x80] sm:$0xff] }
  0x41   : > { %661 = vmatpush2.msra.mxu1 %v313_v42  ;;  %589 = vmatprep.mubr.f32.mxu1 %v1023_v21  ;;  %v338_v35 = vld [vmem:[%s1731_s1 + $0x438] sm:$0xff]  ;;  %v333_v41 = vld [vmem:[%s1731_s1 + $0x410] sm:$0xff] }
  0x42   : > { %662 = vmatprep.subr.mxu1 %v310_v43  ;;  %445 = vmatpush2.msra.mxu0 %v291_v44  ;;  %v334_v40 = vld [vmem:[%s1731_s1 + $0x418] sm:$0xff]  ;;  %v197_v44 = vld [vmem:[%s1109_s27 + $0x90] sm:$0xff] }
  0x43   : > { %981 = vmatmul.mubr.msk.f32.gmra.mxu1 %vm369_vm0, %v1388_v45  ;;  %446 = vmatprep.subr.mxu0 %v288_v46  ;;  %v194_v42 = vld [vmem:[%s1109_s27 + $0x78] sm:$0xff]  ;;  %v201_v46 = vld [vmem:[%s1109_s27 + $0xb0] sm:$0xff] }
  0x44   : > { %663 = vmatpush2.msra.mxu1 %v309_v47  ;;  %447 = vmatpush2.msra.mxu0 %v287_v48  ;;  %v198_v43 = vld [vmem:[%s1109_s27 + $0x98] sm:$0xff]  ;;  %v200_v47 = vld [vmem:[%s1109_s27 + $0xa8] sm:$0xff] }
  0x45   : > { %664 = vmatprep.subr.mxu1 %v306_v49  ;;  %448 = vmatprep.subr.mxu0 %v284_v50 }
  0x46   : > { %665 = vmatpush2.msra.mxu1 %v305_v51  ;;  %595 = vmatprep.mubr.f32.mxu1 %v1023_v21  ;;  %v349_v51 = vlaneseq }
  0x47   : > { %666 = vmatprep.subr.mxu1 %v302_v52  ;;  %449 = vmatpush2.msra.mxu0 %v283_v53 }
  0x48   : > { %982 = vmatmul.mubr.msk.f32.gmra.mxu1 %vm369_vm0, %v1418_v54  ;;  %450 = vmatprep.subr.mxu0 %v280_v55  ;;  %v1582_v55 = vshrl.u32 %v349_v51, 7 }
  0x49   : > { %667 = vmatpush2.msra.mxu1 %v301_v56  ;;  %451 = vmatpush2.msra.mxu0 %v279_v57  ;;  %v1592_v57 = vld [vmem:[%s1732_s2] sm:$0xf] }
  0x4a   : > { %668 = vmatprep.subr.mxu1 %v298_v58  ;;  %452 = vmatprep.subr.mxu0 %v276_v59  ;;  %v355_v58 = vsub.s32 1, %v1582_v55 }
  0x4b   : > { %669 = vmatpush2.msra.mxu1 %v297_v60  ;;  %601 = vmatprep.mubr.f32.mxu1 %v1023_v21 }
  0x4c   : > { %670 = vmatprep.subr.mxu1 %v294_v61  ;;  %453 = vmatpush2.msra.mxu0 %v275_v62  ;;  %v1603_v62 = vrot.slane %v1592_v57, %v355_v58 }
  0x4d   : > { %983 = vmatmul.mubr.msk.f32.gmra.mxu1 %vm369_vm0, %v1448_v63  ;;  %454 = vmatprep.subr.mxu0 %v272_v0 }
  0x4e   : > { %671 = vmatpush2.msra.mxu1 %v293_v1  ;;  %455 = vmatpush2.msra.mxu0 %v271_v2 }
  0x4f   : > { %672 = vmatprep.subr.mxu1 %v290_v3  ;;  %456 = vmatprep.subr.mxu0 %v268_v4 }
  0x50   : > { %673 = vmatpush2.msra.mxu1 %v289_v5  ;;  %607 = vmatprep.mubr.f32.mxu1 %v1023_v21 }
  0x51   : > { %674 = vmatprep.subr.mxu1 %v286_v6  ;;  %457 = vmatpush2.msra.mxu0 %v267_v7 }
  0x52   : > { %458 = vmatprep.mubr.f32.mxu0 %v180_v8  ;;  %984 = vmatmul.mubr.msk.f32.gmra.mxu1 %vm369_vm0, %v1479_v9 }
  0x53   : > { %675 = vmatpush2.msra.mxu1 %v285_v10  ;;  %459 = vmatmul.mubr.f32.vlgmr.msra.gmra.mxu0 %v179_v11 }
  0x54   : > { %676 = vmatprep.subr.mxu1 %v282_v12  ;;  %757 = vmatprep.subr.mxu0 %v346_v13 }
  0x55   : > { %677 = vmatpush2.msra.mxu1 %v281_v14  ;;  %758 = vmatpush1.msra.mxu0 %v345_v15 }
  0x56   : > { %613 = vmatprep.mubr.f32.mxu1 %v1023_v21  ;;  %678 = vmatprep.subr.mxu1 %v278_v16 }
  0x57   : > { %464 = vmatprep.mubr.f32.mxu0 %v183_v17  ;;  %985 = vmatmul.mubr.msk.f32.gmra.mxu1 %vm369_vm0, %v1505_v19 }
  0x58   : > { %679 = vmatpush2.msra.mxu1 %v277_v20  ;;  %465 = vmatmul.mubr.f32.gmra.mxu0 %v182_v22 }
  0x59   : > { %680 = vmatprep.subr.mxu1 %v274_v23  ;;  %470 = vmatprep.mubr.f32.mxu0 %v186_v24 }
  0x5a   : > { %681 = vmatpush2.msra.mxu1 %v273_v25  ;;  %684 = vmatprep.mubr.f32.mxu1 %v180_v8 }
  0x5b   : > { %682 = vmatprep.subr.mxu1 %v270_v26  ;;  %759 = vmatprep.subr.mxu0 %v342_v28 }
  0x5c   : > { %683 = vmatpush2.msra.mxu1 %v269_v29  ;;  %471 = vmatmul.mubr.f32.gmra.mxu0 %v185_v30 }
  0x5d   : > { %685 = vmatmul.mubr.f32.vlgmr.msra.gmra.mxu1 %v179_v11  ;;  %997 = vmatprep.subr.mxu1 %v346_v13 }
  0x5e   : > { %1001 = vmatpush1.msra.mxu1 %v345_v15  ;;  %760 = vmatpush1.msra.mxu0 %v341_v31 }
  0x5f   : > { %476 = vmatprep.mubr.f32.mxu0 %v189_v32  ;;  %690 = vmatprep.mubr.f32.mxu1 %v183_v17 }
  0x60   : > { %477 = vmatmul.mubr.f32.gmra.mxu0 %v188_v33  ;;  %998 = vmatprep.subr.mxu1 %v342_v28 }
  0x61   : > { %691 = vmatmul.mubr.f32.gmra.mxu1 %v182_v22  ;;  %482 = vmatprep.mubr.f32.mxu0 %v192_v34 }
  0x62   : > { %696 = vmatprep.mubr.f32.mxu1 %v186_v24  ;;  %761 = vmatprep.subr.mxu0 %v338_v35 }
  0x63   : > { %1002 = vmatpush1.msra.mxu1 %v341_v31  ;;  %762 = vmatpush1.msra.mxu0 %v337_v37 }
  0x64   : > { %483 = vmatmul.mubr.f32.gmra.mxu0 %v191_v38  ;;  %999 = vmatprep.subr.mxu1 %v338_v35 }
  0x65   : > { %697 = vmatmul.mubr.f32.gmra.mxu1 %v185_v30  ;;  %488 = vmatprep.mubr.f32.mxu0 %v195_v39 }
  0x66   : > { %702 = vmatprep.mubr.f32.mxu1 %v189_v32  ;;  %763 = vmatprep.subr.mxu0 %v334_v40 }
  0x67   : > { %1003 = vmatpush1.msra.mxu1 %v337_v37  ;;  %764 = vmatpush1.msra.mxu0 %v333_v41 }
  0x68   : > { %489 = vmatmul.mubr.f32.gmra.mxu0 %v194_v42  ;;  %1000 = vmatprep.subr.mxu1 %v334_v40 }
  0x69   : > { %703 = vmatmul.mubr.f32.gmra.mxu1 %v188_v33  ;;  %494 = vmatprep.mubr.f32.mxu0 %v198_v43 }
  0x6a   : > { %708 = vmatprep.mubr.f32.mxu1 %v192_v34  ;;  %1004 = vmatpush1.msra.mxu1 %v333_v41 }
  0x6c   : > { %495 = vmatmul.mubr.f32.gmra.mxu0 %v197_v44 }
  0x6d   : > { %709 = vmatmul.mubr.f32.gmra.mxu1 %v191_v38  ;;  %500 = vmatprep.mubr.f32.mxu0 %v201_v46 }
  0x6e   : > { %714 = vmatprep.mubr.f32.mxu1 %v195_v39 }
  0x70   : > { %501 = vmatmul.mubr.f32.gmra.mxu0 %v200_v47 }
  0x71   : > { %715 = vmatmul.mubr.f32.gmra.mxu1 %v194_v42  ;;  %797 = vmatprep.mubr.f32.mxu0 %v1023_v21 }
  0x72   : > { %720 = vmatprep.mubr.f32.mxu1 %v198_v43 }
  0x74   : > { %986 = vmatmul.mubr.msk.f32.vlgmr.msra.gmra.mxu0 %vm369_vm0, %v1115_v18 }
  0x75   : > { %721 = vmatmul.mubr.f32.gmra.mxu1 %v197_v44  ;;  %803 = vmatprep.mubr.f32.mxu0 %v1023_v21 }
  0x76   : > { %726 = vmatprep.mubr.f32.mxu1 %v201_v46 }
  0x78   : > { %987 = vmatmul.mubr.msk.f32.gmra.mxu0 %vm369_vm0, %v1328_v27 }
  0x79   : > { %727 = vmatmul.mubr.f32.gmra.mxu1 %v200_v47  ;;  %809 = vmatprep.mubr.f32.mxu0 %v1023_v21 }
  0x7a   : > { %827 = vmatprep.mubr.f32.mxu1 %v1023_v21 }
  0x7c   : > { %988 = vmatmul.mubr.msk.f32.gmra.mxu0 %vm369_vm0, %v1358_v36 }
  0x7d   : > { %991 = vmatmul.mubr.msk.f32.vlgmr.msra.gmra.mxu1 %vm369_vm0, %v1448_v63  ;;  %815 = vmatprep.mubr.f32.mxu0 %v1023_v21 }
  0x7e   : > { %833 = vmatprep.mubr.f32.mxu1 %v1023_v21 }
  0x80   : > { %989 = vmatmul.mubr.msk.f32.gmra.mxu0 %vm369_vm0, %v1388_v45 }
  0x81   : > { %992 = vmatmul.mubr.msk.f32.gmra.mxu1 %vm369_vm0, %v1479_v9  ;;  %821 = vmatprep.mubr.f32.mxu0 %v1023_v21 }
  0x82   : > { %839 = vmatprep.mubr.f32.mxu1 %v1023_v21 }
  0x84   : > { %990 = vmatmul.mubr.msk.f32.gmra.mxu0 %vm369_vm0, %v1418_v54  ;;  %v351_v54 = vsub.s32 0, %v1582_v55 }
  0x85   : > { %993 = vmatmul.mubr.msk.f32.gmra.mxu1 %vm369_vm0, %v1505_v19 }
  0x86   : > { %v1598_v60 = vrot.slane %v1592_v57, %v351_v54 }
  0xd5   : > { %v573_v18 = vpop.f32.mrf.mxu1 }
  0xd7   : > { %v575_v27 = vpop.f32.mrf.mxu1 }
  0xf9   : > { %v579_v36 = vpop.f32.mrf.mxu1 }
  0xfb   : > { %v581_v48 = vpop.f32.mrf.mxu1 }
  0xfe   : > { %v585_v49 = vpop.f32.mrf.mxu1 }
 0x100   : > { %v587_v50 = vpop.f32.mrf.mxu1 }
 0x103   : > { %v591_v45 = vpop.f32.mrf.mxu1 }
 0x105   : > { %v593_v52 = vpop.f32.mrf.mxu1 }
 0x108   : > { %v1580_v53 = vpop.f32.mrf.mxu1 }
 0x10a   : > { %v1584_v21 = vpop.f32.mrf.mxu1 }
 0x10d   : > { %v1587_v56 = vpop.f32.mrf.mxu1 }
 0x10f   : > { %v1595_v59 = vpop.f32.mrf.mxu1 }
 0x112   : > { %v1600_v61 = vpop.f32.mrf.mxu1 }
 0x113   : > { %v460_v63 = vpop.f32.mrf.mxu0 }
 0x114   : > { %v461_v0 = vadd.f32 %v460_v63, %v1598_v60  ;;  %v1607_v1 = vpop.f32.mrf.mxu1 }
 0x115   : > { %v462_v2 = vpop.f32.mrf.mxu0 }
 0x116   : > { %v574_v3 = vadd.f32 %v573_v18, %v461_v0  ;;  %v463_v4 = vadd.f32 %v462_v2, %v1603_v62 }
 0x117   : > { %v1615_v5 = vpop.f32.mrf.mxu1 }
 0x118   : > { %v846_v6 = vmax.f32 %v574_v3, 0.0  ;;  %v576_v7 = vadd.f32 %v575_v27, %v463_v4  ;;  %v466_v8 = vpop.f32.mrf.mxu0 }
 0x119   : > { %v467_v9 = vadd.f32 %v466_v8, %v1598_v60  ;;  %v1619_v13 = vpop.f32.mrf.mxu1 }
 0x11a   : > { %878 = vst [vmem:[%s1613_s21] sm:$0xff] %v846_v6  ;;  %v847_v10 = vmax.f32 %v576_v7, 0.0  ;;  %v468_v11 = vpop.f32.mrf.mxu0 }
 0x11b   : > { %v580_v12 = vadd.f32 %v579_v36, %v467_v9  ;;  %v469_v14 = vadd.f32 %v468_v11, %v1603_v62 }
 0x11c   : > { %879 = vst [vmem:[%s1613_s21 + $0x8] sm:$0xff] %v847_v10  ;;  %v472_v15 = vpop.f32.mrf.mxu0 }
 0x11d   : > { %v850_v16 = vmax.f32 %v580_v12, 0.0  ;;  %v582_v17 = vadd.f32 %v581_v48, %v469_v14  ;;  %v473_v19 = vadd.f32 %v472_v15, %v1598_v60  ;;  %v1624_v20 = vpop.f32.mrf.mxu1 }
 0x11e   : > { %v474_v22 = vpop.f32.mrf.mxu0 }
 0x11f   : > { %882 = vst [vmem:[%s1613_s21 + $0x20] sm:$0xff] %v850_v16  ;;  %v851_v23 = vmax.f32 %v582_v17, 0.0  ;;  %v586_v24 = vadd.f32 %v585_v49, %v473_v19  ;;  %v475_v25 = vadd.f32 %v474_v22, %v1603_v62  ;;  %v1628_v26 = vpop.f32.mrf.mxu1 }
 0x120   : > { %v478_v28 = vpop.f32.mrf.mxu0 }
 0x121   : > { %883 = vst [vmem:[%s1613_s21 + $0x28] sm:$0xff] %v851_v23  ;;  %v854_v29 = vmax.f32 %v586_v24, 0.0  ;;  %v588_v30 = vadd.f32 %v587_v50, %v475_v25  ;;  %v479_v31 = vadd.f32 %v478_v28, %v1598_v60  ;;  %v1632_v32 = vpop.f32.mrf.mxu1 }
 0x122   : > { %v480_v33 = vpop.f32.mrf.mxu0 }
 0x123   : > { %886 = vst [vmem:[%s1613_s21 + $0x40] sm:$0xff] %v854_v29  ;;  %v855_v34 = vmax.f32 %v588_v30, 0.0  ;;  %v592_v35 = vadd.f32 %v591_v45, %v479_v31  ;;  %v481_v37 = vadd.f32 %v480_v33, %v1603_v62  ;;  %v1636_v38 = vpop.f32.mrf.mxu1 }
 0x124   : > { %v484_v39 = vpop.f32.mrf.mxu0 }
 0x125   : > { %887 = vst [vmem:[%s1613_s21 + $0x48] sm:$0xff] %v855_v34  ;;  %v858_v40 = vmax.f32 %v592_v35, 0.0  ;;  %v594_v41 = vadd.f32 %v593_v52, %v481_v37  ;;  %v485_v42 = vadd.f32 %v484_v39, %v1598_v60  ;;  %v1640_v43 = vpop.f32.mrf.mxu1  ;;  %v359_v52 = vsub.s32 2, %v1582_v55 }
 0x126   : > { %v486_v44 = vpop.f32.mrf.mxu0 }
 0x127   : > { %890 = vst [vmem:[%s1613_s21 + $0x60] sm:$0xff] %v858_v40  ;;  %v859_v46 = vmax.f32 %v594_v41, 0.0  ;;  %v598_v47 = vadd.f32 %v1580_v53, %v485_v42  ;;  %v487_v18 = vadd.f32 %v486_v44, %v1603_v62  ;;  %v1645_v27 = vpop.f32.mrf.mxu1 }
 0x128   : > { %v490_v36 = vpop.f32.mrf.mxu0 }
 0x129   : > { %891 = vst [vmem:[%s1613_s21 + $0x68] sm:$0xff] %v859_v46  ;;  %v862_v48 = vmax.f32 %v598_v47, 0.0  ;;  %v600_v49 = vadd.f32 %v1584_v21, %v487_v18  ;;  %v491_v50 = vadd.f32 %v490_v36, %v1598_v60  ;;  %v1650_v45 = vpop.f32.mrf.mxu1  ;;  %v363_v21 = vsub.s32 3, %v1582_v55 }
 0x12a   : > { %v492_v51 = vpop.f32.mrf.mxu0 }
 0x12b   : > { %894 = vst [vmem:[%s1613_s21 + $0x80] sm:$0xff] %v862_v48  ;;  %v863_v53 = vmax.f32 %v600_v49, 0.0  ;;  %v604_v54 = vadd.f32 %v1587_v56, %v491_v50  ;;  %v493_v58 = vadd.f32 %v492_v51, %v1603_v62  ;;  %v1656_v63 = vpop.f32.mrf.mxu1  ;;  %v1665_v56 = vrot.slane %v1592_v57, %v359_v52 }
 0x12c   : > { %v496_v0 = vpop.f32.mrf.mxu0 }
 0x12d   : > { %895 = vst [vmem:[%s1613_s21 + $0x88] sm:$0xff] %v863_v53  ;;  %v866_v2 = vmax.f32 %v604_v54, 0.0  ;;  %v606_v3 = vadd.f32 %v1595_v59, %v493_v58  ;;  %v497_v4 = vadd.f32 %v496_v0, %v1598_v60  ;;  %v1662_v6 = vpop.f32.mrf.mxu1  ;;  %v1673_v59 = vrot.slane %v1592_v57, %v363_v21 }
 0x12e   : > { %v498_v7 = vpop.f32.mrf.mxu0  ;;  %v699_v40 = vadd.f32 %v1640_v43, %v1665_v56  ;;  %v705_v50 = vadd.f32 %v1650_v45, %v1665_v56 }
 0x12f   : > { %898 = vst [vmem:[%s1613_s21 + $0xa0] sm:$0xff] %v866_v2  ;;  %v867_v8 = vmax.f32 %v606_v3, 0.0  ;;  %v610_v9 = vadd.f32 %v1600_v61, %v497_v4  ;;  %v499_v10 = vadd.f32 %v498_v7, %v1603_v62  ;;  %v1670_v55 = vpop.f32.mrf.mxu1  ;;  %v687_v61 = vadd.f32 %v1624_v20, %v1665_v56 }
 0x130   : > { %v502_v11 = vpop.f32.mrf.mxu0  ;;  %v707_v21 = vadd.f32 %v1656_v63, %v1673_v59 }
 0x131   : > { %899 = vst [vmem:[%s1613_s21 + $0xa8] sm:$0xff] %v867_v8  ;;  %v870_v12 = vmax.f32 %v610_v9, 0.0  ;;  %v612_v14 = vadd.f32 %v1607_v1, %v499_v10  ;;  %v503_v15 = vadd.f32 %v502_v11, %v1598_v60  ;;  %v716_v16 = vpop.f32.mrf.mxu1  ;;  %v689_v1 = vadd.f32 %v1628_v26, %v1673_v59 }
 0x132   : > { %v504_v17 = vpop.f32.mrf.mxu0  ;;  %v695_v26 = vadd.f32 %v1636_v38, %v1673_v59  ;;  %v717_v44 = vadd.f32 %v716_v16, %v1665_v56  ;;  %v701_v38 = vadd.f32 %v1645_v27, %v1673_v59  ;;  %v711_v10 = vadd.f32 %v1662_v6, %v1665_v56 }
 0x133   : > { %902 = vst [vmem:[%s1613_s21 + $0xc0] sm:$0xff] %v870_v12  ;;  %v871_v19 = vmax.f32 %v612_v14, 0.0  ;;  %v616_v22 = vadd.f32 %v1615_v5, %v503_v15  ;;  %v505_v23 = vadd.f32 %v504_v17, %v1603_v62  ;;  %v718_v57 = vpop.f32.mrf.mxu1  ;;  %v693_v5 = vadd.f32 %v1632_v32, %v1665_v56 }
 0x134   : > { %v799_v24 = vpop.f32.mrf.mxu0  ;;  %v719_v48 = vadd.f32 %v718_v57, %v1673_v59 }
 0x135   : > { %903 = vst [vmem:[%s1613_s21 + $0xc8] sm:$0xff] %v871_v19  ;;  %v874_v60 = vmax.f32 %v616_v22, 0.0  ;;  %v618_v25 = vadd.f32 %v1619_v13, %v505_v23  ;;  %v722_v28 = vpop.f32.mrf.mxu1  ;;  %v800_v29 = vadd.f32 %v799_v24, %v687_v61  ;;  %v713_v61 = vadd.f32 %v1670_v55, %v1673_v59 }
 0x136   : > { %v801_v20 = vpop.f32.mrf.mxu0  ;;  %v723_v27 = vadd.f32 %v722_v28, %v1665_v56 }
 0x137   : > { %906 = vst [vmem:[%s1613_s21 + $0xe0] sm:$0xff] %v874_v60  ;;  %v875_v62 = vmax.f32 %v618_v25, 0.0  ;;  %v848_v30 = vmax.f32 %v800_v29, 0.0  ;;  %v724_v31 = vpop.f32.mrf.mxu1  ;;  %v802_v33 = vadd.f32 %v801_v20, %v689_v1 }
 0x138   : > { %v805_v34 = vpop.f32.mrf.mxu0  ;;  %v725_v45 = vadd.f32 %v724_v31, %v1673_v59 }
 0x139   : > { %907 = vst [vmem:[%s1613_s21 + $0xe8] sm:$0xff] %v875_v62  ;;  %880 = vst [vmem:[%s1613_s21 + $0x10] sm:$0xff] %v848_v30  ;;  %v849_v13 = vmax.f32 %v802_v33, 0.0  ;;  %v728_v35 = vpop.f32.mrf.mxu1  ;;  %v806_v37 = vadd.f32 %v805_v34, %v693_v5 }
 0x13a   : > { %v807_v39 = vpop.f32.mrf.mxu0  ;;  %v729_v14 = vadd.f32 %v728_v35, %v1665_v56 }
 0x13b   : > { %881 = vst [vmem:[%s1613_s21 + $0x18] sm:$0xff] %v849_v13  ;;  %v852_v32 = vmax.f32 %v806_v37, 0.0  ;;  %v730_v41 = vpop.f32.mrf.mxu1  ;;  %v808_v42 = vadd.f32 %v807_v39, %v695_v26 }
 0x13c   : > { %v811_v46 = vpop.f32.mrf.mxu0  ;;  %v731_v23 = vadd.f32 %v730_v41, %v1673_v59 }
 0x13d   : > { %884 = vst [vmem:[%s1613_s21 + $0x30] sm:$0xff] %v852_v32  ;;  %v853_v47 = vmax.f32 %v808_v42, 0.0  ;;  %v812_v18 = vadd.f32 %v811_v46, %v699_v40  ;;  %v829_v36 = vpop.f32.mrf.mxu1 }
 0x13e   : > { %v830_v49 = vadd.f32 %v829_v36, %v717_v44  ;;  %v813_v43 = vpop.f32.mrf.mxu0 }
 0x13f   : > { %885 = vst [vmem:[%s1613_s21 + $0x38] sm:$0xff] %v853_v47  ;;  %v856_v51 = vmax.f32 %v812_v18, 0.0  ;;  %v814_v52 = vadd.f32 %v813_v43, %v701_v38  ;;  %v831_v53 = vpop.f32.mrf.mxu1 }
 0x140   : > { %v868_v54 = vmax.f32 %v830_v49, 0.0  ;;  %v832_v58 = vadd.f32 %v831_v53, %v719_v48  ;;  %v817_v0 = vpop.f32.mrf.mxu0 }
 0x141   : > { %888 = vst [vmem:[%s1613_s21 + $0x50] sm:$0xff] %v856_v51  ;;  %v857_v2 = vmax.f32 %v814_v52, 0.0  ;;  %v818_v3 = vadd.f32 %v817_v0, %v705_v50  ;;  %v835_v4 = vpop.f32.mrf.mxu1 }
 0x142   : > { %900 = vst [vmem:[%s1613_s21 + $0xb0] sm:$0xff] %v868_v54  ;;  %v869_v7 = vmax.f32 %v832_v58, 0.0  ;;  %v836_v8 = vadd.f32 %v835_v4, %v723_v27  ;;  %v819_v9 = vpop.f32.mrf.mxu0 }
 0x143   : > { %889 = vst [vmem:[%s1613_s21 + $0x58] sm:$0xff] %v857_v2  ;;  %v860_v11 = vmax.f32 %v818_v3, 0.0  ;;  %v820_v12 = vadd.f32 %v819_v9, %v707_v21  ;;  %v837_v63 = vpop.f32.mrf.mxu1 }
 0x144   : > { %901 = vst [vmem:[%s1613_s21 + $0xb8] sm:$0xff] %v869_v7  ;;  %v872_v15 = vmax.f32 %v836_v8, 0.0  ;;  %v838_v16 = vadd.f32 %v837_v63, %v725_v45  ;;  %v823_v17 = vpop.f32.mrf.mxu0 }
 0x145   : > { %892 = vst [vmem:[%s1613_s21 + $0x70] sm:$0xff] %v860_v11  ;;  %v861_v19 = vmax.f32 %v820_v12, 0.0  ;;  %v824_v6 = vadd.f32 %v823_v17, %v711_v10  ;;  %v841_v22 = vpop.f32.mrf.mxu1 }
 0x146   : > { %904 = vst [vmem:[%s1613_s21 + $0xd0] sm:$0xff] %v872_v15  ;;  %v873_v56 = vmax.f32 %v838_v16, 0.0  ;;  %v842_v57 = vadd.f32 %v841_v22, %v729_v14  ;;  %v825_v24 = vpop.f32.mrf.mxu0 }
 0x147   : > { %893 = vst [vmem:[%s1613_s21 + $0x78] sm:$0xff] %v861_v19  ;;  %v864_v1 = vmax.f32 %v824_v6, 0.0  ;;  %v826_v60 = vadd.f32 %v825_v24, %v713_v61  ;;  %v843_v25 = vpop.f32.mrf.mxu1 }
 0x148   : > { %905 = vst [vmem:[%s1613_s21 + $0xd8] sm:$0xff] %v873_v56  ;;  %v876_v55 = vmax.f32 %v842_v57, 0.0  ;;  %v844_v28 = vadd.f32 %v843_v25, %v731_v23 }
 0x149   : > { %896 = vst [vmem:[%s1613_s21 + $0x90] sm:$0xff] %v864_v1  ;;  %v865_v29 = vmax.f32 %v826_v60, 0.0 }
 0x14a   : > { %908 = vst [vmem:[%s1613_s21 + $0xf0] sm:$0xff] %v876_v55  ;;  %v877_v20 = vmax.f32 %v844_v28, 0.0 }
 0x14b   : > { %897 = vst [vmem:[%s1613_s21 + $0x98] sm:$0xff] %v865_v29 }
 0x14c   : > { %909 = vst [vmem:[%s1613_s21 + $0xf8] sm:$0xff] %v877_v20 }
 0x14d PF: > { %s13_s12 = sadd.s32 1, %s1021_s12  }
 0x14e   : > { %p10_p4 = scmp.ge.s32.totalorder %s13_s12, 4  }
 0x150   :  { %12 = sbr.rel (!%p10_p4) target bundleno = 1 (0x1), region = 62 }

// kernel: decoder_forward.3
= control target key start
LH: loop header
LB: loop body
LE: loop exit
PB: predicated region body
PF: predicated region fallthrough
CT: control target
= control target key end

     0   :  { %s3039_s12 = smov 0   ;;  %s5332_s0 = inlined_call_operand.vmem [shape: f32[512,576], index: 0, kind: input, shape index: {}]   ;;  %s5333_s1 = inlined_call_operand.vmem [shape: f32[576,512], index: 1, kind: input, shape index: {}]   ;;  %s5334_s2 = inlined_call_operand.vmem [shape: f32[1,512], index: 2, kind: input, shape index: {}]   ;;  %s5335_s3 = inlined_call_operand.vmem [shape: f32[512,512], index: 3, kind: output, shape index: {}]  }
   0x1 LB: > { %s2602_s13 = sadd.s32 4294967295, %s3016_s12   ;;  %p2606_p0 = scmp.ge.s32.totalorder %s3016_s12, 1  ;;  %s3016_s12 = sphi %s3039_s12, %s13_s12  }
   0x2   : > { %p139_p1 = scmp.lt.s32.totalorder %s3016_s12, 3 }
   0x4   : > { %p140_p2 = pnand %p2606_p0, %p139_p1 }
   0x6   : > { %143 = sbr.rel (%p140_p2) target bundleno = 672 (0x2a0), region = 32 }
   0xb   : > { %v400_v0 = vld [vmem:[%s5333_s1 + $0x1e8] sm:$0xff]  ;;  %v399_v1 = vld [vmem:[%s5333_s1 + $0x1e0] sm:$0xff]  ;;  %s3319_s19 = sshll.u32 %s2602_s13, 5  ;;  %vm649_vm0 = vcmask 523264  }
   0xc   : > { %v528_v2 = vld [vmem:[%s5333_s1 + $0x5e8] sm:$0xff]  ;;  %746 = vmatprep.subr.mxu0 %v400_v0  ;;  %v527_v4 = vld [vmem:[%s5333_s1 + $0x5e0] sm:$0xff]  ;;  %p166_p3 = scmp.lt.s32.totalorder %s3319_s19, 63 }
   0xd   : > { %1003 = vmatprep.subr.mxu1 %v528_v2  ;;  %v396_v3 = vld [vmem:[%s5333_s1 + $0x1c8] sm:$0xff]  ;;  %v395_v5 = vld [vmem:[%s5333_s1 + $0x1c0] sm:$0xff]  ;;  %747 = vmatpush1.msra.mxu0 %v399_v1 }
   0xe   : > { %1004 = vmatpush1.msra.mxu1 %v527_v4  ;;  %v524_v6 = vld [vmem:[%s5333_s1 + $0x5c8] sm:$0xff]  ;;  %v523_v8 = vld [vmem:[%s5333_s1 + $0x5c0] sm:$0xff]  ;;  %748 = vmatprep.subr.mxu0 %v396_v3  ;;  %s5463_s19 = smov (!%p166_p3, %s3319_s19), 63 }
   0xf   : > { %v392_v7 = vld [vmem:[%s5333_s1 + $0x1a8] sm:$0xff]  ;;  %1005 = vmatprep.subr.mxu1 %v524_v6  ;;  %v391_v9 = vld [vmem:[%s5333_s1 + $0x1a0] sm:$0xff]  ;;  %749 = vmatpush1.msra.mxu0 %v395_v5  ;;  %s2679_s11 = smul.u32 40, %s5463_s19  ;;  %s2678_s8 = sshll.u32 %s5463_s19, 5 }
  0x10   : > { %v520_v10 = vld [vmem:[%s5333_s1 + $0x5a8] sm:$0xff]  ;;  %1006 = vmatpush1.msra.mxu1 %v523_v8  ;;  %v519_v12 = vld [vmem:[%s5333_s1 + $0x5a0] sm:$0xff]  ;;  %750 = vmatprep.subr.mxu0 %v392_v7  ;;  %s4828_s19 = scalar_lea.vmem %s5335_s3, %s2678_s8 }
  0x11   : > { %v388_v11 = vld [vmem:[%s5333_s1 + $0x188] sm:$0xff]  ;;  %1007 = vmatprep.subr.mxu1 %v520_v10  ;;  %v387_v14 = vld [vmem:[%s5333_s1 + $0x180] sm:$0xff]  ;;  %751 = vmatpush1.msra.mxu0 %v391_v9  ;;  %s3421_s5 = scalar_lea.vmem %s5332_s0, %s2679_s11 }
  0x12   : > { %v516_v13 = vld [vmem:[%s5333_s1 + $0x588] sm:$0xff]  ;;  %v515_v15 = vld [vmem:[%s5333_s1 + $0x580] sm:$0xff]  ;;  %1008 = vmatpush1.msra.mxu1 %v519_v12  ;;  %752 = vmatprep.subr.mxu0 %v388_v11 }
  0x13   : > { %v384_v16 = vld [vmem:[%s5333_s1 + $0x168] sm:$0xff]  ;;  %1009 = vmatprep.subr.mxu1 %v516_v13  ;;  %v383_v18 = vld [vmem:[%s5333_s1 + $0x160] sm:$0xff]  ;;  %753 = vmatpush1.msra.mxu0 %v387_v14 }
  0x14   : > { %v512_v17 = vld [vmem:[%s5333_s1 + $0x568] sm:$0xff]  ;;  %v511_v19 = vld [vmem:[%s5333_s1 + $0x560] sm:$0xff]  ;;  %1010 = vmatpush1.msra.mxu1 %v515_v15  ;;  %754 = vmatprep.subr.mxu0 %v384_v16 }
  0x15   : > { %v380_v20 = vld [vmem:[%s5333_s1 + $0x148] sm:$0xff]  ;;  %1011 = vmatprep.subr.mxu1 %v512_v17  ;;  %v379_v22 = vld [vmem:[%s5333_s1 + $0x140] sm:$0xff]  ;;  %755 = vmatpush1.msra.mxu0 %v383_v18 }
  0x16   : > { %v508_v21 = vld [vmem:[%s5333_s1 + $0x548] sm:$0xff]  ;;  %v507_v23 = vld [vmem:[%s5333_s1 + $0x540] sm:$0xff]  ;;  %1012 = vmatpush1.msra.mxu1 %v511_v19  ;;  %756 = vmatprep.subr.mxu0 %v380_v20 }
  0x17   : > { %v376_v24 = vld [vmem:[%s5333_s1 + $0x128] sm:$0xff]  ;;  %1013 = vmatprep.subr.mxu1 %v508_v21  ;;  %v375_v26 = vld [vmem:[%s5333_s1 + $0x120] sm:$0xff]  ;;  %757 = vmatpush1.msra.mxu0 %v379_v22 }
  0x18   : > { %v504_v25 = vld [vmem:[%s5333_s1 + $0x528] sm:$0xff]  ;;  %v503_v27 = vld [vmem:[%s5333_s1 + $0x520] sm:$0xff]  ;;  %1014 = vmatpush1.msra.mxu1 %v507_v23  ;;  %758 = vmatprep.subr.mxu0 %v376_v24 }
  0x19   : > { %v372_v28 = vld [vmem:[%s5333_s1 + $0x108] sm:$0xff]  ;;  %1015 = vmatprep.subr.mxu1 %v504_v25  ;;  %v371_v30 = vld [vmem:[%s5333_s1 + $0x100] sm:$0xff]  ;;  %759 = vmatpush1.msra.mxu0 %v375_v26 }
  0x1a   : > { %v500_v29 = vld [vmem:[%s5333_s1 + $0x508] sm:$0xff]  ;;  %v499_v31 = vld [vmem:[%s5333_s1 + $0x500] sm:$0xff]  ;;  %1016 = vmatpush1.msra.mxu1 %v503_v27  ;;  %760 = vmatprep.subr.mxu0 %v372_v28 }
  0x1b   : > { %v368_v32 = vld [vmem:[%s5333_s1 + $0xe8] sm:$0xff]  ;;  %1017 = vmatprep.subr.mxu1 %v500_v29  ;;  %v367_v34 = vld [vmem:[%s5333_s1 + $0xe0] sm:$0xff]  ;;  %761 = vmatpush1.msra.mxu0 %v371_v30 }
  0x1c   : > { %v496_v33 = vld [vmem:[%s5333_s1 + $0x4e8] sm:$0xff]  ;;  %v495_v35 = vld [vmem:[%s5333_s1 + $0x4e0] sm:$0xff]  ;;  %1018 = vmatpush1.msra.mxu1 %v499_v31  ;;  %762 = vmatprep.subr.mxu0 %v368_v32 }
  0x1d   : > { %v364_v36 = vld [vmem:[%s5333_s1 + $0xc8] sm:$0xff]  ;;  %1019 = vmatprep.subr.mxu1 %v496_v33  ;;  %v363_v38 = vld [vmem:[%s5333_s1 + $0xc0] sm:$0xff]  ;;  %763 = vmatpush1.msra.mxu0 %v367_v34 }
  0x1e   : > { %v492_v37 = vld [vmem:[%s5333_s1 + $0x4c8] sm:$0xff]  ;;  %v491_v39 = vld [vmem:[%s5333_s1 + $0x4c0] sm:$0xff]  ;;  %1020 = vmatpush1.msra.mxu1 %v495_v35  ;;  %764 = vmatprep.subr.mxu0 %v364_v36 }
  0x1f   : > { %v360_v40 = vld [vmem:[%s5333_s1 + $0xa8] sm:$0xff]  ;;  %1021 = vmatprep.subr.mxu1 %v492_v37  ;;  %v359_v42 = vld [vmem:[%s5333_s1 + $0xa0] sm:$0xff]  ;;  %765 = vmatpush1.msra.mxu0 %v363_v38 }
  0x20   : > { %v488_v41 = vld [vmem:[%s5333_s1 + $0x4a8] sm:$0xff]  ;;  %v487_v43 = vld [vmem:[%s5333_s1 + $0x4a0] sm:$0xff]  ;;  %1022 = vmatpush1.msra.mxu1 %v491_v39  ;;  %766 = vmatprep.subr.mxu0 %v360_v40 }
  0x21   : > { %v356_v44 = vld [vmem:[%s5333_s1 + $0x88] sm:$0xff]  ;;  %1023 = vmatprep.subr.mxu1 %v488_v41  ;;  %v355_v46 = vld [vmem:[%s5333_s1 + $0x80] sm:$0xff]  ;;  %767 = vmatpush1.msra.mxu0 %v359_v42 }
  0x22   : > { %v484_v45 = vld [vmem:[%s5333_s1 + $0x488] sm:$0xff]  ;;  %v483_v47 = vld [vmem:[%s5333_s1 + $0x480] sm:$0xff]  ;;  %1024 = vmatpush1.msra.mxu1 %v487_v43  ;;  %768 = vmatprep.subr.mxu0 %v356_v44 }
  0x23   : > { %v352_v48 = vld [vmem:[%s5333_s1 + $0x68] sm:$0xff]  ;;  %1025 = vmatprep.subr.mxu1 %v484_v45  ;;  %v351_v50 = vld [vmem:[%s5333_s1 + $0x60] sm:$0xff]  ;;  %769 = vmatpush1.msra.mxu0 %v355_v46 }
  0x24   : > { %v480_v49 = vld [vmem:[%s5333_s1 + $0x468] sm:$0xff]  ;;  %v479_v51 = vld [vmem:[%s5333_s1 + $0x460] sm:$0xff]  ;;  %1026 = vmatpush1.msra.mxu1 %v483_v47  ;;  %770 = vmatprep.subr.mxu0 %v352_v48 }
  0x25   : > { %v348_v52 = vld [vmem:[%s5333_s1 + $0x48] sm:$0xff]  ;;  %1027 = vmatprep.subr.mxu1 %v480_v49  ;;  %v347_v54 = vld [vmem:[%s5333_s1 + $0x40] sm:$0xff]  ;;  %771 = vmatpush1.msra.mxu0 %v351_v50 }
  0x26   : > { %v476_v53 = vld [vmem:[%s5333_s1 + $0x448] sm:$0xff]  ;;  %v475_v55 = vld [vmem:[%s5333_s1 + $0x440] sm:$0xff]  ;;  %1028 = vmatpush1.msra.mxu1 %v479_v51  ;;  %772 = vmatprep.subr.mxu0 %v348_v52 }
  0x27   : > { %v344_v56 = vld [vmem:[%s5333_s1 + $0x28] sm:$0xff]  ;;  %1029 = vmatprep.subr.mxu1 %v476_v53  ;;  %v343_v58 = vld [vmem:[%s5333_s1 + $0x20] sm:$0xff]  ;;  %773 = vmatpush1.msra.mxu0 %v347_v54 }
  0x28   : > { %v472_v57 = vld [vmem:[%s5333_s1 + $0x428] sm:$0xff]  ;;  %v471_v59 = vld [vmem:[%s5333_s1 + $0x420] sm:$0xff]  ;;  %1030 = vmatpush1.msra.mxu1 %v475_v55  ;;  %774 = vmatprep.subr.mxu0 %v344_v56 }
  0x29   : > { %v340_v60 = vld [vmem:[%s5333_s1 + $0x8] sm:$0xff]  ;;  %1031 = vmatprep.subr.mxu1 %v472_v57  ;;  %v339_v62 = vld [vmem:[%s5333_s1] sm:$0xff]  ;;  %775 = vmatpush1.msra.mxu0 %v343_v58 }
  0x2a   : > { %v468_v61 = vld [vmem:[%s5333_s1 + $0x408] sm:$0xff]  ;;  %v467_v63 = vld [vmem:[%s5333_s1 + $0x400] sm:$0xff]  ;;  %1032 = vmatpush1.msra.mxu1 %v471_v59  ;;  %776 = vmatprep.subr.mxu0 %v340_v60 }
  0x2b   : > { %v464_v0 = vld [vmem:[%s5333_s1 + $0x3e8] sm:$0xff]  ;;  %1033 = vmatprep.subr.mxu1 %v468_v61  ;;  %v463_v2 = vld [vmem:[%s5333_s1 + $0x3e0] sm:$0xff]  ;;  %777 = vmatpush1.msra.mxu0 %v339_v62 }
  0x2c   : > { %v592_v1 = vld [vmem:[%s5333_s1 + $0x7e8] sm:$0xff]  ;;  %v591_v3 = vld [vmem:[%s5333_s1 + $0x7e0] sm:$0xff]  ;;  %1034 = vmatpush1.msra.mxu1 %v467_v63  ;;  %778 = vmatprep.subr.mxu0 %v464_v0 }
  0x2d   : > { %v460_v4 = vld [vmem:[%s5333_s1 + $0x3c8] sm:$0xff]  ;;  %1035 = vmatprep.subr.mxu1 %v592_v1  ;;  %v459_v6 = vld [vmem:[%s5333_s1 + $0x3c0] sm:$0xff]  ;;  %779 = vmatpush2.msra.mxu0 %v463_v2  ;;  %v182_v2 = vld [vmem:[%s3421_s5 + $0x18] sm:$0xff] }
  0x2e   : > { %v588_v5 = vld [vmem:[%s5333_s1 + $0x7c8] sm:$0xff]  ;;  %v587_v7 = vld [vmem:[%s5333_s1 + $0x7c0] sm:$0xff]  ;;  %1036 = vmatpush2.msra.mxu1 %v591_v3  ;;  %780 = vmatprep.subr.mxu0 %v460_v4  ;;  %v181_v4 = vld [vmem:[%s3421_s5 + $0x10] sm:$0xff] }
  0x2f   : > { %v456_v8 = vld [vmem:[%s5333_s1 + $0x3a8] sm:$0xff]  ;;  %1037 = vmatprep.subr.mxu1 %v588_v5  ;;  %v455_v10 = vld [vmem:[%s5333_s1 + $0x3a0] sm:$0xff]  ;;  %781 = vmatpush2.msra.mxu0 %v459_v6  ;;  %v402_v6 = vld [vmem:[%s5333_s1 + $0x1f8] sm:$0xff] }
  0x30   : > { %v584_v9 = vld [vmem:[%s5333_s1 + $0x7a8] sm:$0xff]  ;;  %v583_v11 = vld [vmem:[%s5333_s1 + $0x7a0] sm:$0xff]  ;;  %1038 = vmatpush2.msra.mxu1 %v587_v7  ;;  %782 = vmatprep.subr.mxu0 %v456_v8  ;;  %v3467_v7 = vld [vmem:[%s3421_s5 + $0x30] sm:$0xff] }
  0x31   : > { %v452_v12 = vld [vmem:[%s5333_s1 + $0x388] sm:$0xff]  ;;  %1039 = vmatprep.subr.mxu1 %v584_v9  ;;  %v451_v14 = vld [vmem:[%s5333_s1 + $0x380] sm:$0xff]  ;;  %783 = vmatpush2.msra.mxu0 %v455_v10  ;;  %v401_v8 = vld [vmem:[%s5333_s1 + $0x1f0] sm:$0xff] }
  0x32   : > { %v580_v13 = vld [vmem:[%s5333_s1 + $0x788] sm:$0xff]  ;;  %v579_v15 = vld [vmem:[%s5333_s1 + $0x780] sm:$0xff]  ;;  %1040 = vmatpush2.msra.mxu1 %v583_v11  ;;  %784 = vmatprep.subr.mxu0 %v452_v12  ;;  %v398_v11 = vld [vmem:[%s5333_s1 + $0x1d8] sm:$0xff] }
  0x33   : > { %v448_v16 = vld [vmem:[%s5333_s1 + $0x368] sm:$0xff]  ;;  %1041 = vmatprep.subr.mxu1 %v580_v13  ;;  %v447_v18 = vld [vmem:[%s5333_s1 + $0x360] sm:$0xff]  ;;  %785 = vmatpush2.msra.mxu0 %v451_v14  ;;  %v186_v12 = vld [vmem:[%s3421_s5 + $0x38] sm:$0xff] }
  0x34   : > { %v576_v17 = vld [vmem:[%s5333_s1 + $0x768] sm:$0xff]  ;;  %v575_v19 = vld [vmem:[%s5333_s1 + $0x760] sm:$0xff]  ;;  %1042 = vmatpush2.msra.mxu1 %v579_v15  ;;  %786 = vmatprep.subr.mxu0 %v448_v16  ;;  %v3482_v13 = vld [vmem:[%s3421_s5 + $0x58] sm:$0xff] }
  0x35   : > { %v444_v20 = vld [vmem:[%s5333_s1 + $0x348] sm:$0xff]  ;;  %1043 = vmatprep.subr.mxu1 %v576_v17  ;;  %v443_v22 = vld [vmem:[%s5333_s1 + $0x340] sm:$0xff]  ;;  %787 = vmatpush2.msra.mxu0 %v447_v18  ;;  %v397_v14 = vld [vmem:[%s5333_s1 + $0x1d0] sm:$0xff] }
  0x36   : > { %v572_v21 = vld [vmem:[%s5333_s1 + $0x748] sm:$0xff]  ;;  %v571_v23 = vld [vmem:[%s5333_s1 + $0x740] sm:$0xff]  ;;  %1044 = vmatpush2.msra.mxu1 %v575_v19  ;;  %788 = vmatprep.subr.mxu0 %v444_v20  ;;  %v3490_v16 = vld [vmem:[%s3421_s5 + $0x50] sm:$0xff] }
  0x37   : > { %v440_v24 = vld [vmem:[%s5333_s1 + $0x328] sm:$0xff]  ;;  %1045 = vmatprep.subr.mxu1 %v572_v21  ;;  %v439_v26 = vld [vmem:[%s5333_s1 + $0x320] sm:$0xff]  ;;  %789 = vmatpush2.msra.mxu0 %v443_v22  ;;  %v394_v17 = vld [vmem:[%s5333_s1 + $0x1b8] sm:$0xff] }
  0x38   : > { %v568_v25 = vld [vmem:[%s5333_s1 + $0x728] sm:$0xff]  ;;  %v567_v27 = vld [vmem:[%s5333_s1 + $0x720] sm:$0xff]  ;;  %1046 = vmatpush2.msra.mxu1 %v571_v23  ;;  %790 = vmatprep.subr.mxu0 %v440_v24  ;;  %v393_v19 = vld [vmem:[%s5333_s1 + $0x1b0] sm:$0xff] }
  0x39   : > { %v436_v28 = vld [vmem:[%s5333_s1 + $0x308] sm:$0xff]  ;;  %1047 = vmatprep.subr.mxu1 %v568_v25  ;;  %v435_v30 = vld [vmem:[%s5333_s1 + $0x300] sm:$0xff]  ;;  %791 = vmatpush2.msra.mxu0 %v439_v26  ;;  %v390_v21 = vld [vmem:[%s5333_s1 + $0x198] sm:$0xff] }
  0x3a   : > { %v564_v29 = vld [vmem:[%s5333_s1 + $0x708] sm:$0xff]  ;;  %v563_v31 = vld [vmem:[%s5333_s1 + $0x700] sm:$0xff]  ;;  %1048 = vmatpush2.msra.mxu1 %v567_v27  ;;  %792 = vmatprep.subr.mxu0 %v436_v28  ;;  %v197_v22 = vld [vmem:[%s3421_s5 + $0x90] sm:$0xff] }
  0x3b   : > { %v432_v32 = vld [vmem:[%s5333_s1 + $0x2e8] sm:$0xff]  ;;  %1049 = vmatprep.subr.mxu1 %v564_v29  ;;  %v431_v34 = vld [vmem:[%s5333_s1 + $0x2e0] sm:$0xff]  ;;  %793 = vmatpush2.msra.mxu0 %v435_v30  ;;  %v389_v23 = vld [vmem:[%s5333_s1 + $0x190] sm:$0xff] }
  0x3c   : > { %v560_v33 = vld [vmem:[%s5333_s1 + $0x6e8] sm:$0xff]  ;;  %v559_v35 = vld [vmem:[%s5333_s1 + $0x6e0] sm:$0xff]  ;;  %1050 = vmatpush2.msra.mxu1 %v563_v31  ;;  %794 = vmatprep.subr.mxu0 %v432_v32  ;;  %v3513_v24 = vld [vmem:[%s3421_s5 + $0x78] sm:$0xff] }
  0x3d   : > { %v428_v36 = vld [vmem:[%s5333_s1 + $0x2c8] sm:$0xff]  ;;  %1051 = vmatprep.subr.mxu1 %v560_v33  ;;  %v427_v38 = vld [vmem:[%s5333_s1 + $0x2c0] sm:$0xff]  ;;  %795 = vmatpush2.msra.mxu0 %v431_v34  ;;  %v386_v29 = vld [vmem:[%s5333_s1 + $0x178] sm:$0xff] }
  0x3e   : > { %v556_v37 = vld [vmem:[%s5333_s1 + $0x6c8] sm:$0xff]  ;;  %v555_v39 = vld [vmem:[%s5333_s1 + $0x6c0] sm:$0xff]  ;;  %1052 = vmatpush2.msra.mxu1 %v559_v35  ;;  %796 = vmatprep.subr.mxu0 %v428_v36  ;;  %v202_v30 = vld [vmem:[%s3421_s5 + $0xb8] sm:$0xff] }
  0x3f   : > { %v424_v40 = vld [vmem:[%s5333_s1 + $0x2a8] sm:$0xff]  ;;  %1053 = vmatprep.subr.mxu1 %v556_v37  ;;  %v423_v42 = vld [vmem:[%s5333_s1 + $0x2a0] sm:$0xff]  ;;  %797 = vmatpush2.msra.mxu0 %v427_v38  ;;  %v385_v31 = vld [vmem:[%s5333_s1 + $0x170] sm:$0xff] }
  0x40   : > { %v552_v41 = vld [vmem:[%s5333_s1 + $0x6a8] sm:$0xff]  ;;  %v551_v43 = vld [vmem:[%s5333_s1 + $0x6a0] sm:$0xff]  ;;  %1054 = vmatpush2.msra.mxu1 %v555_v39  ;;  %798 = vmatprep.subr.mxu0 %v424_v40  ;;  %v382_v33 = vld [vmem:[%s5333_s1 + $0x158] sm:$0xff] }
  0x41   : > { %v420_v44 = vld [vmem:[%s5333_s1 + $0x288] sm:$0xff]  ;;  %1055 = vmatprep.subr.mxu1 %v552_v41  ;;  %v419_v46 = vld [vmem:[%s5333_s1 + $0x280] sm:$0xff]  ;;  %799 = vmatpush2.msra.mxu0 %v423_v42  ;;  %v3541_v34 = vld [vmem:[%s3421_s5 + $0xd0] sm:$0xff] }
  0x42   : > { %v548_v45 = vld [vmem:[%s5333_s1 + $0x688] sm:$0xff]  ;;  %v547_v47 = vld [vmem:[%s5333_s1 + $0x680] sm:$0xff]  ;;  %1056 = vmatpush2.msra.mxu1 %v551_v43  ;;  %800 = vmatprep.subr.mxu0 %v420_v44  ;;  %v381_v35 = vld [vmem:[%s5333_s1 + $0x150] sm:$0xff] }
  0x43   : > { %v416_v48 = vld [vmem:[%s5333_s1 + $0x268] sm:$0xff]  ;;  %1057 = vmatprep.subr.mxu1 %v548_v45  ;;  %v415_v50 = vld [vmem:[%s5333_s1 + $0x260] sm:$0xff]  ;;  %801 = vmatpush2.msra.mxu0 %v419_v46  ;;  %v201_v36 = vld [vmem:[%s3421_s5 + $0xb0] sm:$0xff] }
  0x44   : > { %v544_v49 = vld [vmem:[%s5333_s1 + $0x668] sm:$0xff]  ;;  %v543_v51 = vld [vmem:[%s5333_s1 + $0x660] sm:$0xff]  ;;  %1058 = vmatpush2.msra.mxu1 %v547_v47  ;;  %802 = vmatprep.subr.mxu0 %v416_v48  ;;  %v378_v37 = vld [vmem:[%s5333_s1 + $0x138] sm:$0xff] }
  0x45   : > { %v412_v52 = vld [vmem:[%s5333_s1 + $0x248] sm:$0xff]  ;;  %1059 = vmatprep.subr.mxu1 %v544_v49  ;;  %v411_v54 = vld [vmem:[%s5333_s1 + $0x240] sm:$0xff]  ;;  %803 = vmatpush2.msra.mxu0 %v415_v50  ;;  %v377_v39 = vld [vmem:[%s5333_s1 + $0x130] sm:$0xff] }
  0x46   : > { %v540_v53 = vld [vmem:[%s5333_s1 + $0x648] sm:$0xff]  ;;  %v539_v55 = vld [vmem:[%s5333_s1 + $0x640] sm:$0xff]  ;;  %1060 = vmatpush2.msra.mxu1 %v543_v51  ;;  %804 = vmatprep.subr.mxu0 %v412_v52  ;;  %v374_v41 = vld [vmem:[%s5333_s1 + $0x118] sm:$0xff] }
  0x47   : > { %v408_v56 = vld [vmem:[%s5333_s1 + $0x228] sm:$0xff]  ;;  %1061 = vmatprep.subr.mxu1 %v540_v53  ;;  %v407_v58 = vld [vmem:[%s5333_s1 + $0x220] sm:$0xff]  ;;  %805 = vmatpush2.msra.mxu0 %v411_v54  ;;  %v3563_v42 = vld [vmem:[%s3421_s5 + $0xf8] sm:$0xff] }
  0x48   : > { %v536_v57 = vld [vmem:[%s5333_s1 + $0x628] sm:$0xff]  ;;  %v535_v59 = vld [vmem:[%s5333_s1 + $0x620] sm:$0xff]  ;;  %1062 = vmatpush2.msra.mxu1 %v539_v55  ;;  %806 = vmatprep.subr.mxu0 %v408_v56  ;;  %v373_v43 = vld [vmem:[%s5333_s1 + $0x110] sm:$0xff] }
  0x49   : > { %v404_v60 = vld [vmem:[%s5333_s1 + $0x208] sm:$0xff]  ;;  %1063 = vmatprep.subr.mxu1 %v536_v57  ;;  %v403_v62 = vld [vmem:[%s5333_s1 + $0x200] sm:$0xff]  ;;  %807 = vmatpush2.msra.mxu0 %v407_v58  ;;  %v206_v44 = vld [vmem:[%s3421_s5 + $0xd8] sm:$0xff] }
  0x4a   : > { %v3439_v61 = vld [vmem:[%s3421_s5 + $0x8] sm:$0xff]  ;;  %1064 = vmatpush2.msra.mxu1 %v535_v59  ;;  %v3448_v0 = vld [vmem:[%s3421_s5] sm:$0xff]  ;;  %808 = vmatprep.subr.mxu0 %v404_v60  ;;  %v3579_v48 = vld [vmem:[%s3421_s5 + $0xf0] sm:$0xff] }
  0x4b   : > { %v532_v63 = vld [vmem:[%s5333_s1 + $0x608] sm:$0xff]  ;;  %v531_v1 = vld [vmem:[%s5333_s1 + $0x600] sm:$0xff]  ;;  %810 = vmatprep.mubr.f32.mxu0 %v3439_v61  ;;  %809 = vmatpush2.msra.mxu0 %v403_v62  ;;  %v370_v49 = vld [vmem:[%s5333_s1 + $0xf8] sm:$0xff] }
  0x4c   : > { %v624_v3 = vld [vmem:[%s5333_s1 + $0x8e8] sm:$0xff]  ;;  %1065 = vmatprep.subr.mxu1 %v532_v63  ;;  %v623_v5 = vld [vmem:[%s5333_s1 + $0x8e0] sm:$0xff]  ;;  %811 = vmatmul.mubr.f32.vlgmr.msra.gmra.mxu0 %v3448_v0  ;;  %v369_v51 = vld [vmem:[%s5333_s1 + $0xf0] sm:$0xff] }
  0x4d   : > { %1066 = vmatpush2.msra.mxu1 %v531_v1  ;;  %1067 = vmatprep.mubr.f32.mxu1 %v182_v2  ;;  %v3473_v9 = vld [vmem:[%s3421_s5 + $0x28] sm:$0xff]  ;;  %v187_v10 = vld [vmem:[%s3421_s5 + $0x40] sm:$0xff]  ;;  %v366_v53 = vld [vmem:[%s5333_s1 + $0xd8] sm:$0xff] }
  0x4e   : > { %1276 = vmatprep.subr.mxu0 %v624_v3  ;;  %1068 = vmatmul.mubr.f32.vlgmr.msra.gmra.mxu1 %v181_v4  ;;  %v192_v15 = vld [vmem:[%s3421_s5 + $0x68] sm:$0xff]  ;;  %v3497_v18 = vld [vmem:[%s3421_s5 + $0x80] sm:$0xff]  ;;  %v217_v54 = vld [vmem:[%s3421_s5 + $0x130] sm:$0xff] }
  0x4f   : > { %1277 = vmatpush1.msra.mxu0 %v623_v5  ;;  %1517 = vmatprep.subr.mxu1 %v402_v6  ;;  %v191_v20 = vld [vmem:[%s3421_s5 + $0x60] sm:$0xff]  ;;  %v620_v25 = vld [vmem:[%s5333_s1 + $0x8c8] sm:$0xff]  ;;  %v365_v55 = vld [vmem:[%s5333_s1 + $0xd0] sm:$0xff] }
  0x50   : > { %816 = vmatprep.mubr.f32.mxu0 %v3467_v7  ;;  %1518 = vmatpush1.msra.mxu1 %v401_v8  ;;  %v3519_v26 = vld [vmem:[%s3421_s5 + $0xa8] sm:$0xff]  ;;  %v619_v27 = vld [vmem:[%s5333_s1 + $0x8c0] sm:$0xff]  ;;  %v3601_v56 = vld [vmem:[%s3421_s5 + $0x118] sm:$0xff] }
  0x51   : > { %817 = vmatmul.mubr.f32.gmra.mxu0 %v3473_v9  ;;  %1073 = vmatprep.mubr.f32.mxu1 %v187_v10  ;;  %v196_v28 = vld [vmem:[%s3421_s5 + $0x88] sm:$0xff]  ;;  %v3535_v32 = vld [vmem:[%s3421_s5 + $0xa0] sm:$0xff]  ;;  %v362_v57 = vld [vmem:[%s5333_s1 + $0xb8] sm:$0xff] }
  0x52   : > { %1519 = vmatprep.subr.mxu1 %v398_v11  ;;  %1074 = vmatmul.mubr.f32.gmra.mxu1 %v186_v12  ;;  %v207_v38 = vld [vmem:[%s3421_s5 + $0xe0] sm:$0xff]  ;;  %v3557_v40 = vld [vmem:[%s3421_s5 + $0xc8] sm:$0xff]  ;;  %v361_v59 = vld [vmem:[%s5333_s1 + $0xb0] sm:$0xff] }
  0x53   : > { %822 = vmatprep.mubr.f32.mxu0 %v3482_v13  ;;  %1520 = vmatpush1.msra.mxu1 %v397_v14  ;;  %v616_v45 = vld [vmem:[%s5333_s1 + $0x8a8] sm:$0xff]  ;;  %v615_v47 = vld [vmem:[%s5333_s1 + $0x8a0] sm:$0xff]  ;;  %v358_v62 = vld [vmem:[%s5333_s1 + $0x98] sm:$0xff] }
  0x54   : > { %1079 = vmatprep.mubr.f32.mxu1 %v192_v15  ;;  %1521 = vmatprep.subr.mxu1 %v394_v17  ;;  %v212_v46 = vld [vmem:[%s3421_s5 + $0x108] sm:$0xff]  ;;  %v3585_v50 = vld [vmem:[%s3421_s5 + $0x120] sm:$0xff]  ;;  %v222_v63 = vld [vmem:[%s3421_s5 + $0x158] sm:$0xff] }
  0x55   : > { %823 = vmatmul.mubr.f32.gmra.mxu0 %v3490_v16  ;;  %1522 = vmatpush1.msra.mxu1 %v393_v19  ;;  %v211_v52 = vld [vmem:[%s3421_s5 + $0x100] sm:$0xff]  ;;  %v3607_v58 = vld [vmem:[%s3421_s5 + $0x148] sm:$0xff]  ;;  %v357_v1 = vld [vmem:[%s5333_s1 + $0x90] sm:$0xff] }
  0x56   : > { %828 = vmatprep.mubr.f32.mxu0 %v3497_v18  ;;  %1080 = vmatmul.mubr.f32.gmra.mxu1 %v191_v20  ;;  %v216_v60 = vld [vmem:[%s3421_s5 + $0x128] sm:$0xff]  ;;  %v3623_v2 = vld [vmem:[%s3421_s5 + $0x140] sm:$0xff]  ;;  %v3629_v4 = vld [vmem:[%s3421_s5 + $0x170] sm:$0xff] }
  0x57   : > { %1523 = vmatprep.subr.mxu1 %v390_v21  ;;  %1085 = vmatprep.mubr.f32.mxu1 %v197_v22  ;;  %v612_v3 = vld [vmem:[%s5333_s1 + $0x888] sm:$0xff]  ;;  %v611_v5 = vld [vmem:[%s5333_s1 + $0x880] sm:$0xff]  ;;  %v221_v6 = vld [vmem:[%s3421_s5 + $0x150] sm:$0xff] }
  0x58   : > { %1524 = vmatpush1.msra.mxu1 %v389_v23  ;;  %1278 = vmatprep.subr.mxu0 %v620_v25  ;;  %v354_v8 = vld [vmem:[%s5333_s1 + $0x78] sm:$0xff]  ;;  %v227_v10 = vld [vmem:[%s3421_s5 + $0x180] sm:$0xff]  ;;  %v353_v11 = vld [vmem:[%s5333_s1 + $0x70] sm:$0xff] }
  0x59   : > { %829 = vmatmul.mubr.f32.gmra.mxu0 %v3513_v24  ;;  %1525 = vmatprep.subr.mxu1 %v386_v29  ;;  %v3645_v12 = vld [vmem:[%s3421_s5 + $0x168] sm:$0xff]  ;;  %v350_v14 = vld [vmem:[%s5333_s1 + $0x58] sm:$0xff]  ;;  %v349_v17 = vld [vmem:[%s5333_s1 + $0x50] sm:$0xff] }
  0x5a   : > { %834 = vmatprep.mubr.f32.mxu0 %v3519_v26  ;;  %1279 = vmatpush1.msra.mxu0 %v619_v27  ;;  %v3651_v15 = vld [vmem:[%s3421_s5 + $0x198] sm:$0xff]  ;;  %v232_v21 = vld [vmem:[%s3421_s5 + $0x1a8] sm:$0xff]  ;;  %v345_v22 = vld [vmem:[%s5333_s1 + $0x30] sm:$0xff] }
  0x5b   : > { %1086 = vmatmul.mubr.f32.gmra.mxu1 %v196_v28  ;;  %1280 = vmatprep.subr.mxu0 %v616_v45  ;;  %v226_v19 = vld [vmem:[%s3421_s5 + $0x178] sm:$0xff]  ;;  %v3667_v23 = vld [vmem:[%s3421_s5 + $0x190] sm:$0xff]  ;;  %v3673_v27 = vld [vmem:[%s3421_s5 + $0x1c0] sm:$0xff] }
  0x5c   : > { %1091 = vmatprep.mubr.f32.mxu1 %v202_v30  ;;  %1526 = vmatpush1.msra.mxu1 %v385_v31  ;;  %v346_v20 = vld [vmem:[%s5333_s1 + $0x38] sm:$0xff]  ;;  %v341_v28 = vld [vmem:[%s5333_s1 + $0x10] sm:$0xff]  ;;  %v231_v29 = vld [vmem:[%s3421_s5 + $0x1a0] sm:$0xff] }
  0x5d   : > { %835 = vmatmul.mubr.f32.gmra.mxu0 %v3535_v32  ;;  %1527 = vmatprep.subr.mxu1 %v382_v33  ;;  %v342_v25 = vld [vmem:[%s5333_s1 + $0x18] sm:$0xff]  ;;  %v608_v30 = vld [vmem:[%s5333_s1 + $0x868] sm:$0xff]  ;;  %v237_v31 = vld [vmem:[%s3421_s5 + $0x1d0] sm:$0xff] }
  0x5e   : > { %840 = vmatprep.mubr.f32.mxu0 %v3541_v34  ;;  %1528 = vmatpush1.msra.mxu1 %v381_v35  ;;  %v607_v33 = vld [vmem:[%s5333_s1 + $0x860] sm:$0xff]  ;;  %v3689_v35 = vld [vmem:[%s3421_s5 + $0x1b8] sm:$0xff] }
  0x5f   : > { %1092 = vmatmul.mubr.f32.gmra.mxu1 %v201_v36  ;;  %1529 = vmatprep.subr.mxu1 %v378_v37  ;;  %v466_v36 = vld [vmem:[%s5333_s1 + $0x3f8] sm:$0xff]  ;;  %v3695_v37 = vld [vmem:[%s3421_s5 + $0x1e8] sm:$0xff]  ;;  %v3711_v45 = vld [vmem:[%s3421_s5 + $0x1e0] sm:$0xff] }
  0x60   : > { %1097 = vmatprep.mubr.f32.mxu1 %v207_v38  ;;  %1530 = vmatpush1.msra.mxu1 %v377_v39  ;;  %v465_v38 = vld [vmem:[%s5333_s1 + $0x3f0] sm:$0xff]  ;;  %v236_v39 = vld [vmem:[%s3421_s5 + $0x1c8] sm:$0xff] }
  0x61   : > { %841 = vmatmul.mubr.f32.gmra.mxu0 %v3557_v40  ;;  %1531 = vmatprep.subr.mxu1 %v374_v41  ;;  %v462_v41 = vld [vmem:[%s5333_s1 + $0x3d8] sm:$0xff] }
  0x62   : > { %846 = vmatprep.mubr.f32.mxu0 %v3563_v42  ;;  %1532 = vmatpush1.msra.mxu1 %v373_v43  ;;  %v242_v43 = vld [vmem:[%s3421_s5 + $0x1f8] sm:$0xff] }
  0x63   : > { %1098 = vmatmul.mubr.f32.gmra.mxu1 %v206_v44  ;;  %1281 = vmatpush1.msra.mxu0 %v615_v47  ;;  %v461_v44 = vld [vmem:[%s5333_s1 + $0x3d0] sm:$0xff] }
  0x64   : > { %1103 = vmatprep.mubr.f32.mxu1 %v212_v46  ;;  %1533 = vmatprep.subr.mxu1 %v370_v49  ;;  %v458_v46 = vld [vmem:[%s5333_s1 + $0x3b8] sm:$0xff]  ;;  %v3717_v47 = vld [vmem:[%s3421_s5 + $0x210] sm:$0xff] }
  0x65   : > { %847 = vmatmul.mubr.f32.gmra.mxu0 %v3579_v48  ;;  %1534 = vmatpush1.msra.mxu1 %v369_v51  ;;  %v457_v49 = vld [vmem:[%s5333_s1 + $0x3b0] sm:$0xff] }
  0x66   : > { %852 = vmatprep.mubr.f32.mxu0 %v3585_v50  ;;  %1535 = vmatprep.subr.mxu1 %v366_v53  ;;  %v241_v51 = vld [vmem:[%s3421_s5 + $0x1f0] sm:$0xff]  ;;  %v247_v53 = vld [vmem:[%s3421_s5 + $0x220] sm:$0xff] }
  0x67   : > { %1104 = vmatmul.mubr.f32.gmra.mxu1 %v211_v52  ;;  %1282 = vmatprep.subr.mxu0 %v612_v3  ;;  %v454_v52 = vld [vmem:[%s5333_s1 + $0x398] sm:$0xff]  ;;  %v449_v3 = vld [vmem:[%s5333_s1 + $0x370] sm:$0xff] }
  0x68   : > { %1109 = vmatprep.mubr.f32.mxu1 %v217_v54  ;;  %1536 = vmatpush1.msra.mxu1 %v365_v55  ;;  %v453_v54 = vld [vmem:[%s5333_s1 + $0x390] sm:$0xff]  ;;  %v3733_v55 = vld [vmem:[%s3421_s5 + $0x208] sm:$0xff] }
  0x69   : > { %853 = vmatmul.mubr.f32.gmra.mxu0 %v3601_v56  ;;  %1537 = vmatprep.subr.mxu1 %v362_v57  ;;  %v604_v57 = vld [vmem:[%s5333_s1 + $0x848] sm:$0xff] }
  0x6a   : > { %858 = vmatprep.mubr.f32.mxu0 %v3607_v58  ;;  %1538 = vmatpush1.msra.mxu1 %v361_v59  ;;  %v3739_v59 = vld [vmem:[%s3421_s5 + $0x238] sm:$0xff] }
  0x6b   : > { %1110 = vmatmul.mubr.f32.gmra.mxu1 %v216_v60  ;;  %1539 = vmatprep.subr.mxu1 %v358_v62  ;;  %v603_v60 = vld [vmem:[%s5333_s1 + $0x840] sm:$0xff]  ;;  %v246_v62 = vld [vmem:[%s3421_s5 + $0x218] sm:$0xff] }
  0x6c   : > { %1115 = vmatprep.mubr.f32.mxu1 %v222_v63  ;;  %1540 = vmatpush1.msra.mxu1 %v357_v1  ;;  %v450_v63 = vld [vmem:[%s5333_s1 + $0x378] sm:$0xff]  ;;  %v252_v1 = vld [vmem:[%s3421_s5 + $0x248] sm:$0xff] }
  0x6d   : > { %859 = vmatmul.mubr.f32.gmra.mxu0 %v3623_v2  ;;  %1541 = vmatprep.subr.mxu1 %v354_v8  ;;  %v3761_v8 = vld [vmem:[%s3421_s5 + $0x260] sm:$0xff] }
  0x6e   : > { %864 = vmatprep.mubr.f32.mxu0 %v3629_v4  ;;  %1283 = vmatpush1.msra.mxu0 %v611_v5  ;;  %v3755_v5 = vld [vmem:[%s3421_s5 + $0x230] sm:$0xff] }
  0x6f   : > { %1116 = vmatmul.mubr.f32.gmra.mxu1 %v221_v6  ;;  %1284 = vmatprep.subr.mxu0 %v608_v30  ;;  %v446_v6 = vld [vmem:[%s5333_s1 + $0x358] sm:$0xff] }
  0x70   : > { %1121 = vmatprep.mubr.f32.mxu1 %v227_v10  ;;  %1542 = vmatpush1.msra.mxu1 %v353_v11  ;;  %v445_v10 = vld [vmem:[%s5333_s1 + $0x350] sm:$0xff]  ;;  %v251_v11 = vld [vmem:[%s3421_s5 + $0x240] sm:$0xff]  ;;  %v262_v30 = vld [vmem:[%s3421_s5 + $0x298] sm:$0xff] }
  0x71   : > { %865 = vmatmul.mubr.f32.gmra.mxu0 %v3645_v12  ;;  %1543 = vmatprep.subr.mxu1 %v350_v14  ;;  %v442_v14 = vld [vmem:[%s5333_s1 + $0x338] sm:$0xff] }
  0x72   : > { %870 = vmatprep.mubr.f32.mxu0 %v3651_v15  ;;  %1544 = vmatpush1.msra.mxu1 %v349_v17  ;;  %v257_v17 = vld [vmem:[%s3421_s5 + $0x270] sm:$0xff] }
  0x73   : > { %1122 = vmatmul.mubr.f32.gmra.mxu1 %v226_v19  ;;  %1545 = vmatprep.subr.mxu1 %v346_v20  ;;  %v441_v19 = vld [vmem:[%s5333_s1 + $0x330] sm:$0xff]  ;;  %v3777_v20 = vld [vmem:[%s3421_s5 + $0x258] sm:$0xff] }
  0x74   : > { %1127 = vmatprep.mubr.f32.mxu1 %v232_v21  ;;  %1546 = vmatpush1.msra.mxu1 %v345_v22  ;;  %v438_v21 = vld [vmem:[%s5333_s1 + $0x318] sm:$0xff]  ;;  %v3783_v22 = vld [vmem:[%s3421_s5 + $0x288] sm:$0xff] }
  0x75   : > { %871 = vmatmul.mubr.f32.gmra.mxu0 %v3667_v23  ;;  %1547 = vmatprep.subr.mxu1 %v342_v25  ;;  %v437_v25 = vld [vmem:[%s5333_s1 + $0x310] sm:$0xff] }
  0x76   : > { %876 = vmatprep.mubr.f32.mxu0 %v3673_v27  ;;  %1548 = vmatpush1.msra.mxu1 %v341_v28  ;;  %v256_v28 = vld [vmem:[%s3421_s5 + $0x268] sm:$0xff] }
  0x77   : > { %1128 = vmatmul.mubr.f32.gmra.mxu1 %v231_v29  ;;  %1285 = vmatpush1.msra.mxu0 %v607_v33  ;;  %v600_v29 = vld [vmem:[%s5333_s1 + $0x828] sm:$0xff]  ;;  %v3799_v33 = vld [vmem:[%s3421_s5 + $0x280] sm:$0xff] }
  0x78   : > { %1133 = vmatprep.mubr.f32.mxu1 %v237_v31  ;;  %1549 = vmatprep.subr.mxu1 %v466_v36  ;;  %v599_v31 = vld [vmem:[%s5333_s1 + $0x820] sm:$0xff]  ;;  %v434_v36 = vld [vmem:[%s5333_s1 + $0x2f8] sm:$0xff] }
  0x79   : > { %877 = vmatmul.mubr.f32.gmra.mxu0 %v3689_v35  ;;  %1550 = vmatpush2.msra.mxu1 %v465_v38  ;;  %v3805_v38 = vld [vmem:[%s3421_s5 + $0x2b0] sm:$0xff] }
  0x7a   : > { %882 = vmatprep.mubr.f32.mxu0 %v3695_v37  ;;  %1551 = vmatprep.subr.mxu1 %v462_v41  ;;  %v261_v41 = vld [vmem:[%s3421_s5 + $0x290] sm:$0xff] }
  0x7b   : > { %1134 = vmatmul.mubr.f32.gmra.mxu1 %v236_v39  ;;  %1286 = vmatprep.subr.mxu0 %v604_v57  ;;  %v433_v39 = vld [vmem:[%s5333_s1 + $0x2f0] sm:$0xff]  ;;  %v422_v57 = vld [vmem:[%s5333_s1 + $0x298] sm:$0xff] }
  0x7c   : > { %1139 = vmatprep.mubr.f32.mxu1 %v242_v43  ;;  %1552 = vmatpush2.msra.mxu1 %v461_v44  ;;  %v430_v43 = vld [vmem:[%s5333_s1 + $0x2d8] sm:$0xff]  ;;  %v267_v44 = vld [vmem:[%s3421_s5 + $0x2c0] sm:$0xff] }
  0x7d   : > { %883 = vmatmul.mubr.f32.gmra.mxu0 %v3711_v45  ;;  %1553 = vmatprep.subr.mxu1 %v458_v46  ;;  %v429_v46 = vld [vmem:[%s5333_s1 + $0x2d0] sm:$0xff] }
  0x7e   : > { %888 = vmatprep.mubr.f32.mxu0 %v3717_v47  ;;  %1554 = vmatpush2.msra.mxu1 %v457_v49  ;;  %v3821_v49 = vld [vmem:[%s3421_s5 + $0x2a8] sm:$0xff] }
  0x7f   : > { %1140 = vmatmul.mubr.f32.gmra.mxu1 %v241_v51  ;;  %1555 = vmatprep.subr.mxu1 %v454_v52  ;;  %v426_v51 = vld [vmem:[%s5333_s1 + $0x2b8] sm:$0xff] }
  0x80   : > { %1145 = vmatprep.mubr.f32.mxu1 %v247_v53  ;;  %1556 = vmatpush2.msra.mxu1 %v453_v54  ;;  %v3827_v52 = vld [vmem:[%s3421_s5 + $0x2d8] sm:$0xff]  ;;  %v425_v53 = vld [vmem:[%s5333_s1 + $0x2b0] sm:$0xff] }
  0x81   : > { %889 = vmatmul.mubr.f32.gmra.mxu0 %v3733_v55  ;;  %1557 = vmatprep.subr.mxu1 %v450_v63  ;;  %v266_v54 = vld [vmem:[%s3421_s5 + $0x2b8] sm:$0xff]  ;;  %v3843_v63 = vld [vmem:[%s3421_s5 + $0x2d0] sm:$0xff] }
  0x82   : > { %894 = vmatprep.mubr.f32.mxu0 %v3739_v59  ;;  %1287 = vmatpush1.msra.mxu0 %v603_v60  ;;  %v272_v60 = vld [vmem:[%s3421_s5 + $0x2e8] sm:$0xff] }
  0x83   : > { %1146 = vmatmul.mubr.f32.gmra.mxu1 %v246_v62  ;;  %1288 = vmatprep.subr.mxu0 %v600_v29  ;;  %v421_v62 = vld [vmem:[%s5333_s1 + $0x290] sm:$0xff]  ;;  %v276_v29 = vld [vmem:[%s3421_s5 + $0x308] sm:$0xff] }
  0x84   : > { %1151 = vmatprep.mubr.f32.mxu1 %v252_v1  ;;  %1558 = vmatpush2.msra.mxu1 %v449_v3  ;;  %v596_v1 = vld [vmem:[%s5333_s1 + $0x808] sm:$0xff]  ;;  %v3849_v3 = vld [vmem:[%s3421_s5 + $0x300] sm:$0xff] }
  0x85   : > { %895 = vmatmul.mubr.f32.gmra.mxu0 %v3755_v5  ;;  %1559 = vmatprep.subr.mxu1 %v446_v6  ;;  %v595_v6 = vld [vmem:[%s5333_s1 + $0x800] sm:$0xff] }
  0x86   : > { %900 = vmatprep.mubr.f32.mxu0 %v3761_v8  ;;  %1560 = vmatpush2.msra.mxu1 %v445_v10  ;;  %v271_v10 = vld [vmem:[%s3421_s5 + $0x2e0] sm:$0xff] }
  0x87   : > { %1152 = vmatmul.mubr.f32.gmra.mxu1 %v251_v11  ;;  %1561 = vmatprep.subr.mxu1 %v442_v14  ;;  %v418_v11 = vld [vmem:[%s5333_s1 + $0x278] sm:$0xff]  ;;  %v277_v14 = vld [vmem:[%s3421_s5 + $0x310] sm:$0xff] }
  0x88   : > { %1157 = vmatprep.mubr.f32.mxu1 %v257_v17  ;;  %1562 = vmatpush2.msra.mxu1 %v441_v19  ;;  %v417_v17 = vld [vmem:[%s5333_s1 + $0x270] sm:$0xff]  ;;  %v3865_v19 = vld [vmem:[%s3421_s5 + $0x2f8] sm:$0xff] }
  0x89   : > { %901 = vmatmul.mubr.f32.gmra.mxu0 %v3777_v20  ;;  %1563 = vmatprep.subr.mxu1 %v438_v21  ;;  %v414_v21 = vld [vmem:[%s5333_s1 + $0x258] sm:$0xff] }
  0x8a   : > { %906 = vmatprep.mubr.f32.mxu0 %v3783_v22  ;;  %1564 = vmatpush2.msra.mxu1 %v437_v25  ;;  %v3871_v25 = vld [vmem:[%s3421_s5 + $0x328] sm:$0xff] }
  0x8b   : > { %1158 = vmatmul.mubr.f32.gmra.mxu1 %v256_v28  ;;  %1289 = vmatpush1.msra.mxu0 %v599_v31  ;;  %v413_v28 = vld [vmem:[%s5333_s1 + $0x250] sm:$0xff]  ;;  %v282_v31 = vld [vmem:[%s3421_s5 + $0x338] sm:$0xff] }
  0x8c   : > { %1163 = vmatprep.mubr.f32.mxu1 %v262_v30  ;;  %1565 = vmatprep.subr.mxu1 %v434_v36  ;;  %v410_v30 = vld [vmem:[%s5333_s1 + $0x238] sm:$0xff]  ;;  %v409_v36 = vld [vmem:[%s5333_s1 + $0x230] sm:$0xff] }
  0x8d   : > { %907 = vmatmul.mubr.f32.gmra.mxu0 %v3799_v33  ;;  %1566 = vmatpush2.msra.mxu1 %v433_v39  ;;  %v3887_v39 = vld [vmem:[%s3421_s5 + $0x320] sm:$0xff] }
  0x8e   : > { %912 = vmatprep.mubr.f32.mxu0 %v3805_v38  ;;  %1567 = vmatprep.subr.mxu1 %v430_v43  ;;  %v3893_v43 = vld [vmem:[%s3421_s5 + $0x350] sm:$0xff] }
  0x8f   : > { %1164 = vmatmul.mubr.f32.gmra.mxu1 %v261_v41  ;;  %1290 = vmatprep.subr.mxu0 %v596_v1  ;;  %v406_v41 = vld [vmem:[%s5333_s1 + $0x218] sm:$0xff]  ;;  %v292_v1 = vld [vmem:[%s3421_s5 + $0x388] sm:$0xff] }
  0x90   : > { %1169 = vmatprep.mubr.f32.mxu1 %v267_v44  ;;  %1568 = vmatpush2.msra.mxu1 %v429_v46  ;;  %v405_v44 = vld [vmem:[%s5333_s1 + $0x210] sm:$0xff] }
  0x91   : > { %913 = vmatmul.mubr.f32.gmra.mxu0 %v3821_v49  ;;  %1569 = vmatprep.subr.mxu1 %v426_v51  ;;  %v281_v46 = vld [vmem:[%s3421_s5 + $0x330] sm:$0xff]  ;;  %v530_v51 = vld [vmem:[%s5333_s1 + $0x5f8] sm:$0xff] }
  0x92   : > { %918 = vmatprep.mubr.f32.mxu0 %v3827_v52  ;;  %1570 = vmatpush2.msra.mxu1 %v425_v53  ;;  %v287_v53 = vld [vmem:[%s3421_s5 + $0x360] sm:$0xff] }
  0x93   : > { %1170 = vmatmul.mubr.f32.gmra.mxu1 %v266_v54  ;;  %1571 = vmatprep.subr.mxu1 %v422_v57  ;;  %v626_v54 = vld [vmem:[%s5333_s1 + $0x8f8] sm:$0xff]  ;;  %v3909_v57 = vld [vmem:[%s3421_s5 + $0x348] sm:$0xff] }
  0x94   : > { %1175 = vmatprep.mubr.f32.mxu1 %v272_v60  ;;  %1572 = vmatpush2.msra.mxu1 %v421_v62  ;;  %v3912_v60 = vld [vmem:[%s3421_s5 + $0x378] sm:$0xff] }
  0x95   : > { %919 = vmatmul.mubr.f32.gmra.mxu0 %v3843_v63  ;;  %1573 = vmatprep.subr.mxu1 %v418_v11  ;;  %v286_v62 = vld [vmem:[%s3421_s5 + $0x358] sm:$0xff]  ;;  %v291_v11 = vld [vmem:[%s3421_s5 + $0x380] sm:$0xff] }
  0x96   : > { %924 = vmatprep.mubr.f32.mxu0 %v3849_v3  ;;  %1291 = vmatpush1.msra.mxu0 %v595_v6  ;;  %v3919_v6 = vld [vmem:[%s3421_s5 + $0x370] sm:$0xff] }
  0x97   : > { %1176 = vmatmul.mubr.f32.gmra.mxu1 %v271_v10  ;;  %1774 = vmatprep.subr.mxu0 %v530_v51  ;;  %v3922_v10 = vld [vmem:[%s3421_s5 + $0x3a0] sm:$0xff]  ;;  %v306_v51 = vld [vmem:[%s3421_s5 + $0x3f8] sm:$0xff] }
  0x98   : > { %1181 = vmatprep.mubr.f32.mxu1 %v277_v14  ;;  %1574 = vmatpush2.msra.mxu1 %v417_v17  ;;  %v297_v14 = vld [vmem:[%s3421_s5 + $0x3b0] sm:$0xff]  ;;  %v3929_v17 = vld [vmem:[%s3421_s5 + $0x398] sm:$0xff] }
  0x99   : > { %925 = vmatmul.mubr.f32.gmra.mxu0 %v3865_v19  ;;  %1575 = vmatprep.subr.mxu1 %v414_v21  ;;  %v3932_v21 = vld [vmem:[%s3421_s5 + $0x3c8] sm:$0xff] }
  0x9a   : > { %930 = vmatprep.mubr.f32.mxu0 %v3871_v25  ;;  %1576 = vmatpush2.msra.mxu1 %v413_v28  ;;  %v296_v28 = vld [vmem:[%s3421_s5 + $0x3a8] sm:$0xff] }
  0x9b   : > { %1182 = vmatmul.mubr.f32.gmra.mxu1 %v276_v29  ;;  %1577 = vmatprep.subr.mxu1 %v410_v30  ;;  %v302_v29 = vld [vmem:[%s3421_s5 + $0x3d8] sm:$0xff]  ;;  %v3939_v30 = vld [vmem:[%s3421_s5 + $0x3c0] sm:$0xff] }
  0x9c   : > { %1187 = vmatprep.mubr.f32.mxu1 %v282_v31  ;;  %1578 = vmatpush2.msra.mxu1 %v409_v36  ;;  %v3942_v31 = vld [vmem:[%s3421_s5 + $0x3f0] sm:$0xff] }
  0x9d   : > { %931 = vmatmul.mubr.f32.gmra.mxu0 %v3887_v39  ;;  %1579 = vmatprep.subr.mxu1 %v406_v41  ;;  %v301_v36 = vld [vmem:[%s3421_s5 + $0x3d0] sm:$0xff]  ;;  %v307_v41 = vld [vmem:[%s3421_s5 + $0x400] sm:$0xff] }
  0x9e   : > { %936 = vmatprep.mubr.f32.mxu0 %v3893_v43  ;;  %1580 = vmatpush2.msra.mxu1 %v405_v44  ;;  %v3949_v44 = vld [vmem:[%s3421_s5 + $0x3e8] sm:$0xff] }
  0x9f   : > { %1188 = vmatmul.mubr.f32.gmra.mxu1 %v281_v46  ;;  %2047 = vmatprep.subr.mxu1 %v626_v54  ;;  %v3952_v46 = vld [vmem:[%s3421_s5 + $0x418] sm:$0xff]  ;;  %v3959_v54 = vld [vmem:[%s3421_s5 + $0x410] sm:$0xff] }
  0xa0   : > { %1193 = vmatprep.mubr.f32.mxu1 %v287_v53  ;;  %v312_v53 = vld [vmem:[%s3421_s5 + $0x428] sm:$0xff] }
  0xa1   : > { %937 = vmatmul.mubr.f32.gmra.mxu0 %v3909_v57 }
  0xa2   : > { %942 = vmatprep.mubr.f32.mxu0 %v3912_v60 }
  0xa3   : > { %1194 = vmatmul.mubr.f32.gmra.mxu1 %v286_v62  ;;  %v3962_v62 = vld [vmem:[%s3421_s5 + $0x440] sm:$0xff] }
  0xa4   : > { %1199 = vmatprep.mubr.f32.mxu1 %v292_v1  ;;  %v311_v1 = vld [vmem:[%s3421_s5 + $0x420] sm:$0xff] }
  0xa5   : > { %943 = vmatmul.mubr.f32.gmra.mxu0 %v3919_v6 }
  0xa6   : > { %948 = vmatprep.mubr.f32.mxu0 %v3922_v10 }
  0xa7   : > { %1200 = vmatmul.mubr.f32.gmra.mxu1 %v291_v11  ;;  %v317_v11 = vld [vmem:[%s3421_s5 + $0x450] sm:$0xff] }
  0xa8   : > { %1205 = vmatprep.mubr.f32.mxu1 %v297_v14  ;;  %v3969_v14 = vld [vmem:[%s3421_s5 + $0x438] sm:$0xff] }
  0xa9   : > { %949 = vmatmul.mubr.f32.gmra.mxu0 %v3929_v17  ;;  %5353 = vst [vmem:[#allocation2_spill] sm:$0xff] %v3969_v14 }
  0xaa   : > { %954 = vmatprep.mubr.f32.mxu0 %v3932_v21 }
  0xab   : > { %1206 = vmatmul.mubr.f32.gmra.mxu1 %v296_v28  ;;  %v3972_v28 = vld [vmem:[%s3421_s5 + $0x468] sm:$0xff] }
  0xac   : > { %1211 = vmatprep.mubr.f32.mxu1 %v302_v29  ;;  %5354 = vst [vmem:[#allocation3_spill] sm:$0xff] %v3972_v28  ;;  %v316_v29 = vld [vmem:[%s3421_s5 + $0x448] sm:$0xff] }
  0xad   : > { %955 = vmatmul.mubr.f32.gmra.mxu0 %v3939_v30 }
  0xae   : > { %960 = vmatprep.mubr.f32.mxu0 %v3942_v31 }
  0xaf   : > { %1212 = vmatmul.mubr.f32.gmra.mxu1 %v301_v36  ;;  %v322_v36 = vld [vmem:[%s3421_s5 + $0x478] sm:$0xff] }
  0xb0   : > { %1217 = vmatprep.mubr.f32.mxu1 %v307_v41  ;;  %v3979_v41 = vld [vmem:[%s3421_s5 + $0x460] sm:$0xff] }
  0xb1   : > { %961 = vmatmul.mubr.f32.gmra.mxu0 %v3949_v44  ;;  %5355 = vst [vmem:[#allocation4_spill] sm:$0xff] %v3979_v41 }
  0xb2   : > { %966 = vmatprep.mubr.f32.mxu0 %v3952_v46 }
  0xb3   : > { %1218 = vmatmul.mubr.f32.gmra.mxu1 %v306_v51  ;;  %v3982_v51 = vld [vmem:[%s3421_s5 + $0x490] sm:$0xff] }
  0xb4   : > { %1223 = vmatprep.mubr.f32.mxu1 %v312_v53  ;;  %5356 = vst [vmem:[#allocation5_spill] sm:$0xff] %v3982_v51  ;;  %v321_v53 = vld [vmem:[%s3421_s5 + $0x470] sm:$0xff] }
  0xb5   : > { %967 = vmatmul.mubr.f32.gmra.mxu0 %v3959_v54 }
  0xb6   : > { %972 = vmatprep.mubr.f32.mxu0 %v3962_v62 }
  0xb7   : > { %1224 = vmatmul.mubr.f32.gmra.mxu1 %v311_v1  ;;  %v327_v1 = vld [vmem:[%s3421_s5 + $0x4a0] sm:$0xff] }
  0xb8   : > { %1229 = vmatprep.mubr.f32.mxu1 %v317_v11  ;;  %v3989_v11 = vld [vmem:[%s3421_s5 + $0x488] sm:$0xff] }
  0xb9   : > { %973 = vmatmul.mubr.f32.gmra.mxu0 %v3969_v14  ;;  %5357 = vst [vmem:[#allocation6_spill] sm:$0xff] %v3989_v11  ;;  %v4002_v14 = vld [vmem:[%s3421_s5 + $0x4e0] sm:$0xff] }
  0xba   : > { %978 = vmatprep.mubr.f32.mxu0 %v3972_v28  ;;  %v3992_v28 = vld [vmem:[%s3421_s5 + $0x4b8] sm:$0xff] }
  0xbb   : > { %1230 = vmatmul.mubr.f32.gmra.mxu1 %v316_v29  ;;  %5358 = vst [vmem:[#allocation7_spill] sm:$0xff] %v3992_v28  ;;  %v326_v29 = vld [vmem:[%s3421_s5 + $0x498] sm:$0xff] }
  0xbc   : > { %1235 = vmatprep.mubr.f32.mxu1 %v322_v36  ;;  %v332_v36 = vld [vmem:[%s3421_s5 + $0x4c8] sm:$0xff] }
  0xbd   : > { %979 = vmatmul.mubr.f32.gmra.mxu0 %v3979_v41  ;;  %v3999_v41 = vld [vmem:[%s3421_s5 + $0x4b0] sm:$0xff] }
  0xbe   : > { %984 = vmatprep.mubr.f32.mxu0 %v3982_v51  ;;  %v331_v51 = vld [vmem:[%s3421_s5 + $0x4c0] sm:$0xff] }
  0xbf   : > { %1236 = vmatmul.mubr.f32.gmra.mxu1 %v321_v53  ;;  %v337_v53 = vld [vmem:[%s3421_s5 + $0x4f0] sm:$0xff] }
  0xc0   : > { %1241 = vmatprep.mubr.f32.mxu1 %v327_v1  ;;  %v4009_v1 = vld [vmem:[%s3421_s5 + $0x4d8] sm:$0xff] }
  0xc1   : > { %985 = vmatmul.mubr.f32.gmra.mxu0 %v3989_v11  ;;  %v336_v11 = vld [vmem:[%s3421_s5 + $0x4e8] sm:$0xff] }
  0xc2   : > { %990 = vmatprep.mubr.f32.mxu0 %v3992_v28  ;;  %v5343_v28 = vmov 0.0  }
  0xc3   : > { %1242 = vmatmul.mubr.f32.gmra.mxu1 %v326_v29  ;;  %v4015_v29 = vld [vmem:[%s3421_s5 + $0x20] sm:$0xff] }
  0xc4   : > { %1247 = vmatprep.mubr.f32.mxu1 %v332_v36  ;;  %5359 = vst [vmem:[#allocation8_spill] sm:$0xff] %v4015_v29  ;;  %v529_v36 = vld [vmem:[%s5333_s1 + $0x5f0] sm:$0xff] }
  0xc5   : > { %991 = vmatmul.mubr.f32.gmra.mxu0 %v3999_v41 }
  0xc6   : > { %996 = vmatprep.mubr.f32.mxu0 %v4002_v14 }
  0xc7   : > { %1248 = vmatmul.mubr.f32.gmra.mxu1 %v331_v51  ;;  %v526_v51 = vld [vmem:[%s5333_s1 + $0x5d8] sm:$0xff] }
  0xc8   : > { %1253 = vmatprep.mubr.f32.mxu1 %v337_v53  ;;  %v625_v53 = vld [vmem:[%s5333_s1 + $0x8f0] sm:$0xff] }
  0xc9   : > { %997 = vmatmul.mubr.f32.gmra.mxu0 %v4009_v1 }
  0xca   : > { %1324 = vmatprep.mubr.f32.mxu0 %v5343_v28 }
  0xcb   : > { %1254 = vmatmul.mubr.f32.gmra.mxu1 %v336_v11  ;;  %v4031_v11 = vld [vmem:[%s3421_s5 + $0x48] sm:$0xff] }
  0xcc   : > { %1581 = vmatprep.mubr.f32.mxu1 %v3439_v61  ;;  %v622_v61 = vld [vmem:[%s5333_s1 + $0x8d8] sm:$0xff] }
  0xcd   : > { %2612 = vmatmul.mubr.msk.f32.vlgmr.msra.gmra.mxu0 %vm649_vm0, %v4015_v29  ;;  %v525_v29 = vld [vmem:[%s5333_s1 + $0x5d0] sm:$0xff] }
  0xce   : > { %1775 = vmatpush1.msra.mxu0 %v529_v36  ;;  %1330 = vmatprep.mubr.f32.mxu0 %v5343_v28  ;;  %v522_v36 = vld [vmem:[%s5333_s1 + $0x5b8] sm:$0xff]  ;;  %v521_v28 = vld [vmem:[%s5333_s1 + $0x5b0] sm:$0xff] }
  0xcf   : > { %1582 = vmatmul.mubr.f32.vlgmr.msra.gmra.mxu1 %v3448_v0  ;;  %1776 = vmatprep.subr.mxu0 %v526_v51  ;;  %v5360_v0 = vmov 0.0   ;;  %v4051_v51 = vld [vmem:[%s3421_s5 + $0x70] sm:$0xff] }
  0xd0   : > { %2048 = vmatpush1.msra.mxu1 %v625_v53  ;;  %1587 = vmatprep.mubr.f32.mxu1 %v3467_v7  ;;  %v518_v7 = vld [vmem:[%s5333_s1 + $0x598] sm:$0xff]  ;;  %v517_v53 = vld [vmem:[%s5333_s1 + $0x590] sm:$0xff] }
  0xd1   : > { %2613 = vmatmul.mubr.msk.f32.gmra.mxu0 %vm649_vm0, %v4031_v11  ;;  %2049 = vmatprep.subr.mxu1 %v622_v61  ;;  %v4071_v61 = vld [vmem:[%s3421_s5 + $0x98] sm:$0xff] }
  0xd2   : > { %1777 = vmatpush1.msra.mxu0 %v525_v29  ;;  %1336 = vmatprep.mubr.f32.mxu0 %v5360_v0  ;;  %v514_v29 = vld [vmem:[%s5333_s1 + $0x578] sm:$0xff] }
  0xd3   : > { %1588 = vmatmul.mubr.f32.gmra.mxu1 %v3473_v9  ;;  %1778 = vmatprep.subr.mxu0 %v522_v36  ;;  %v513_v9 = vld [vmem:[%s5333_s1 + $0x570] sm:$0xff] }
  0xd4   : > { %1593 = vmatprep.mubr.f32.mxu1 %v3482_v13  ;;  %1779 = vmatpush1.msra.mxu0 %v521_v28  ;;  %v621_v13 = vld [vmem:[%s5333_s1 + $0x8d0] sm:$0xff]  ;;  %v510_v28 = vld [vmem:[%s5333_s1 + $0x558] sm:$0xff] }
  0xd5   : > { %2614 = vmatmul.mubr.msk.f32.gmra.mxu0 %vm649_vm0, %v4051_v51  ;;  %1780 = vmatprep.subr.mxu0 %v518_v7  ;;  %v509_v36 = vld [vmem:[%s5333_s1 + $0x550] sm:$0xff]  ;;  %v4091_v7 = vld [vmem:[%s3421_s5 + $0xc0] sm:$0xff] }
  0xd6   : > { %1342 = vmatprep.mubr.f32.mxu0 %v5360_v0  ;;  %1781 = vmatpush1.msra.mxu0 %v517_v53  ;;  %v505_v53 = vld [vmem:[%s5333_s1 + $0x530] sm:$0xff] }
  0xd7   : > { %1594 = vmatmul.mubr.f32.gmra.mxu1 %v3490_v16  ;;  %1782 = vmatprep.subr.mxu0 %v514_v29  ;;  %v506_v16 = vld [vmem:[%s5333_s1 + $0x538] sm:$0xff] }
  0xd8   : > { %1599 = vmatprep.mubr.f32.mxu1 %v3497_v18  ;;  %1783 = vmatpush1.msra.mxu0 %v513_v9  ;;  %v618_v18 = vld [vmem:[%s5333_s1 + $0x8b8] sm:$0xff]  ;;  %v501_v9 = vld [vmem:[%s5333_s1 + $0x510] sm:$0xff] }
  0xd9   : > { %2615 = vmatmul.mubr.msk.f32.gmra.mxu0 %vm649_vm0, %v4071_v61  ;;  %2050 = vmatpush1.msra.mxu1 %v621_v13  ;;  %v502_v29 = vld [vmem:[%s5333_s1 + $0x518] sm:$0xff]  ;;  %v497_v13 = vld [vmem:[%s5333_s1 + $0x4f0] sm:$0xff] }
  0xda   : > { %1348 = vmatprep.mubr.f32.mxu0 %v5360_v0  ;;  %1784 = vmatprep.subr.mxu0 %v510_v28  ;;  %v494_v28 = vld [vmem:[%s5333_s1 + $0x4d8] sm:$0xff] }
  0xdb   : > { %1600 = vmatmul.mubr.f32.gmra.mxu1 %v3513_v24  ;;  %1785 = vmatpush1.msra.mxu0 %v509_v36  ;;  %v4111_v24 = vld [vmem:[%s3421_s5 + $0xe8] sm:$0xff]  ;;  %v4131_v36 = vld [vmem:[%s3421_s5 + $0x110] sm:$0xff] }
  0xdc   : > { %1605 = vmatprep.mubr.f32.mxu1 %v3519_v26  ;;  %1786 = vmatprep.subr.mxu0 %v506_v16  ;;  %v498_v26 = vld [vmem:[%s5333_s1 + $0x4f8] sm:$0xff]  ;;  %v493_v16 = vld [vmem:[%s5333_s1 + $0x4d0] sm:$0xff] }
  0xdd   : > { %2616 = vmatmul.mubr.msk.f32.gmra.mxu0 %vm649_vm0, %v4091_v7  ;;  %2051 = vmatprep.subr.mxu1 %v618_v18  ;;  %v490_v18 = vld [vmem:[%s5333_s1 + $0x4b8] sm:$0xff] }
  0xde   : > { %1354 = vmatprep.mubr.f32.mxu0 %v5360_v0  ;;  %1787 = vmatpush1.msra.mxu0 %v505_v53  ;;  %v489_v53 = vld [vmem:[%s5333_s1 + $0x4b0] sm:$0xff] }
  0xdf   : > { %1606 = vmatmul.mubr.f32.gmra.mxu1 %v3535_v32  ;;  %1788 = vmatprep.subr.mxu0 %v502_v29  ;;  %v617_v32 = vld [vmem:[%s5333_s1 + $0x8b0] sm:$0xff] }
  0xe0   : > { %1611 = vmatprep.mubr.f32.mxu1 %v3541_v34  ;;  %1789 = vmatpush1.msra.mxu0 %v501_v9  ;;  %v614_v34 = vld [vmem:[%s5333_s1 + $0x898] sm:$0xff]  ;;  %v485_v29 = vld [vmem:[%s5333_s1 + $0x490] sm:$0xff] }
  0xe1   : > { %2617 = vmatmul.mubr.msk.f32.gmra.mxu0 %vm649_vm0, %v4111_v24  ;;  %1790 = vmatprep.subr.mxu0 %v498_v26  ;;  %v482_v9 = vld [vmem:[%s5333_s1 + $0x478] sm:$0xff]  ;;  %v4171_v26 = vld [vmem:[%s3421_s5 + $0x160] sm:$0xff] }
  0xe2   : > { %1360 = vmatprep.mubr.f32.mxu0 %v5360_v0  ;;  %1791 = vmatpush1.msra.mxu0 %v497_v13  ;;  %v478_v13 = vld [vmem:[%s5333_s1 + $0x458] sm:$0xff] }
  0xe3   : > { %1612 = vmatmul.mubr.f32.gmra.mxu1 %v3557_v40  ;;  %1792 = vmatprep.subr.mxu0 %v494_v28  ;;  %v4151_v40 = vld [vmem:[%s3421_s5 + $0x138] sm:$0xff]  ;;  %v477_v28 = vld [vmem:[%s5333_s1 + $0x450] sm:$0xff] }
  0xe4   : > { %1617 = vmatprep.mubr.f32.mxu1 %v3563_v42  ;;  %2052 = vmatpush1.msra.mxu1 %v617_v32  ;;  %v486_v42 = vld [vmem:[%s5333_s1 + $0x498] sm:$0xff]  ;;  %v4191_v32 = vld [vmem:[%s3421_s5 + $0x188] sm:$0xff] }
  0xe5   : > { %2618 = vmatmul.mubr.msk.f32.gmra.mxu0 %vm649_vm0, %v4131_v36  ;;  %2053 = vmatprep.subr.mxu1 %v614_v34  ;;  %v473_v34 = vld [vmem:[%s5333_s1 + $0x430] sm:$0xff] }
  0xe6   : > { %1366 = vmatprep.mubr.f32.mxu0 %v5360_v0  ;;  %1793 = vmatpush1.msra.mxu0 %v493_v16  ;;  %v470_v16 = vld [vmem:[%s5333_s1 + $0x418] sm:$0xff] }
  0xe7   : > { %1618 = vmatmul.mubr.f32.gmra.mxu1 %v3579_v48  ;;  %1794 = vmatprep.subr.mxu0 %v490_v18  ;;  %v481_v48 = vld [vmem:[%s5333_s1 + $0x470] sm:$0xff] }
  0xe8   : > { %1623 = vmatprep.mubr.f32.mxu1 %v3585_v50  ;;  %1795 = vmatpush1.msra.mxu0 %v489_v53  ;;  %v613_v50 = vld [vmem:[%s5333_s1 + $0x890] sm:$0xff] }
  0xe9   : > { %2619 = vmatmul.mubr.msk.f32.gmra.mxu0 %vm649_vm0, %v4151_v40  ;;  %1796 = vmatprep.subr.mxu0 %v486_v42  ;;  %v469_v18 = vld [vmem:[%s5333_s1 + $0x410] sm:$0xff]  ;;  %v590_v42 = vld [vmem:[%s5333_s1 + $0x7d8] sm:$0xff] }
  0xea   : > { %1372 = vmatprep.mubr.f32.mxu0 %v5360_v0  ;;  %1797 = vmatpush1.msra.mxu0 %v485_v29  ;;  %v593_v53 = vld [vmem:[%s5333_s1 + $0x7f0] sm:$0xff]  ;;  %v4231_v29 = vld [vmem:[%s3421_s5 + $0x1d8] sm:$0xff] }
  0xeb   : > { %1624 = vmatmul.mubr.f32.gmra.mxu1 %v3601_v56  ;;  %1798 = vmatprep.subr.mxu0 %v482_v9  ;;  %v474_v56 = vld [vmem:[%s5333_s1 + $0x438] sm:$0xff]  ;;  %v589_v9 = vld [vmem:[%s5333_s1 + $0x7d0] sm:$0xff] }
  0xec   : > { %1629 = vmatprep.mubr.f32.mxu1 %v3607_v58  ;;  %1799 = vmatpush1.msra.mxu0 %v481_v48  ;;  %v610_v58 = vld [vmem:[%s5333_s1 + $0x878] sm:$0xff] }
  0xed   : > { %2620 = vmatmul.mubr.msk.f32.gmra.mxu0 %vm649_vm0, %v4171_v26  ;;  %2054 = vmatpush1.msra.mxu1 %v613_v50  ;;  %v586_v48 = vld [vmem:[%s5333_s1 + $0x7b8] sm:$0xff]  ;;  %v585_v50 = vld [vmem:[%s5333_s1 + $0x7b0] sm:$0xff] }
  0xee   : > { %1378 = vmatprep.mubr.f32.mxu0 %v5360_v0  ;;  %1800 = vmatprep.subr.mxu0 %v478_v13  ;;  %v581_v13 = vld [vmem:[%s5333_s1 + $0x790] sm:$0xff] }
  0xef   : > { %1630 = vmatmul.mubr.f32.gmra.mxu1 %v3623_v2  ;;  %1801 = vmatpush1.msra.mxu0 %v477_v28  ;;  %v4211_v2 = vld [vmem:[%s3421_s5 + $0x1b0] sm:$0xff]  ;;  %v578_v28 = vld [vmem:[%s5333_s1 + $0x778] sm:$0xff] }
  0xf0   : > { %1635 = vmatprep.mubr.f32.mxu1 %v3629_v4  ;;  %1802 = vmatprep.subr.mxu0 %v474_v56  ;;  %v594_v4 = vld [vmem:[%s5333_s1 + $0x7f8] sm:$0xff]  ;;  %v4271_v56 = vld [vmem:[%s3421_s5 + $0x228] sm:$0xff] }
  0xf1   : > { %2621 = vmatmul.mubr.msk.f32.gmra.mxu0 %vm649_vm0, %v4191_v32  ;;  %2055 = vmatprep.subr.mxu1 %v610_v58  ;;  %v629_v58 = vlaneseq }
  0xf2   : > { %1384 = vmatprep.mubr.f32.mxu0 %v5360_v0  ;;  %1803 = vmatpush1.msra.mxu0 %v473_v34  ;;  %v574_v34 = vld [vmem:[%s5333_s1 + $0x758] sm:$0xff] }
  0xf3   : > { %1636 = vmatmul.mubr.f32.gmra.mxu1 %v3645_v12  ;;  %1804 = vmatprep.subr.mxu0 %v470_v16  ;;  %v609_v12 = vld [vmem:[%s5333_s1 + $0x870] sm:$0xff] }
  0xf4   : > { %1641 = vmatprep.mubr.f32.mxu1 %v3651_v15  ;;  %1805 = vmatpush1.msra.mxu0 %v469_v18  ;;  %v606_v15 = vld [vmem:[%s5333_s1 + $0x858] sm:$0xff]  ;;  %v573_v16 = vld [vmem:[%s5333_s1 + $0x750] sm:$0xff] }
  0xf5   : > { %2622 = vmatmul.mubr.msk.f32.gmra.mxu0 %vm649_vm0, %v4211_v2  ;;  %1806 = vmatprep.subr.mxu0 %v594_v4  ;;  %v4291_v18 = vld [vmem:[%s3421_s5 + $0x250] sm:$0xff]  ;;  %v4293_v4 = vshrl.u32 %v629_v58, 7 }
  0xf6   : > { %1390 = vmatprep.mubr.f32.mxu0 %v5360_v0  ;;  %1807 = vmatpush2.msra.mxu0 %v593_v53  ;;  %v569_v53 = vld [vmem:[%s5333_s1 + $0x730] sm:$0xff] }
  0xf7   : > { %1642 = vmatmul.mubr.f32.gmra.mxu1 %v3667_v23  ;;  %1808 = vmatprep.subr.mxu0 %v590_v42  ;;  %v4251_v23 = vld [vmem:[%s3421_s5 + $0x200] sm:$0xff]  ;;  %5361 = vst [vmem:[#allocation9_spill] sm:$0xff] %v4293_v4  ;;  %v566_v42 = vld [vmem:[%s5333_s1 + $0x718] sm:$0xff] }
  0xf8   : > { %1647 = vmatprep.mubr.f32.mxu1 %v3673_v27  ;;  %2056 = vmatpush1.msra.mxu1 %v609_v12  ;;  %v582_v27 = vld [vmem:[%s5333_s1 + $0x798] sm:$0xff]  ;;  %v565_v12 = vld [vmem:[%s5333_s1 + $0x710] sm:$0xff] }
  0xf9   : > { %2623 = vmatmul.mubr.msk.f32.gmra.mxu0 %vm649_vm0, %v4231_v29  ;;  %2057 = vmatprep.subr.mxu1 %v606_v15  ;;  %v631_v15 = vsub.s32 0, %v4293_v4 }
  0xfa   : > { %1396 = vmatprep.mubr.f32.mxu0 %v5360_v0  ;;  %1809 = vmatpush2.msra.mxu0 %v589_v9  ;;  %v627_v9 = vld [vmem:[%s5334_s2] sm:$0xf] }
  0xfb   : > { %1648 = vmatmul.mubr.f32.gmra.mxu1 %v3689_v35  ;;  %1810 = vmatprep.subr.mxu0 %v586_v48  ;;  %v577_v35 = vld [vmem:[%s5333_s1 + $0x770] sm:$0xff] }
  0xfc   : > { %1653 = vmatprep.mubr.f32.mxu1 %v3695_v37  ;;  %1811 = vmatpush2.msra.mxu0 %v585_v50  ;;  %v605_v37 = vld [vmem:[%s5333_s1 + $0x850] sm:$0xff]  ;;  %v635_v50 = vsub.s32 1, %v4293_v4 }
  0xfd   : > { %2624 = vmatmul.mubr.msk.f32.gmra.mxu0 %vm649_vm0, %v4251_v23  ;;  %1812 = vmatprep.subr.mxu0 %v582_v27  ;;  %v561_v48 = vld [vmem:[%s5333_s1 + $0x6f0] sm:$0xff]  ;;  %v558_v27 = vld [vmem:[%s5333_s1 + $0x6d8] sm:$0xff] }
  0xfe   : > { %1402 = vmatprep.mubr.f32.mxu0 %v5360_v0  ;;  %1813 = vmatpush2.msra.mxu0 %v581_v13  ;;  %v4337_v13 = vrot.slane %v627_v9, %v631_v15  ;;  %v4350_v58 = vrot.slane %v627_v9, %v635_v50 }
  0xff   : > { %1654 = vmatmul.mubr.f32.gmra.mxu1 %v3711_v45  ;;  %1814 = vmatprep.subr.mxu0 %v578_v28  ;;  %v570_v45 = vld [vmem:[%s5333_s1 + $0x738] sm:$0xff] }
 0x100   : > { %1659 = vmatprep.mubr.f32.mxu1 %v3717_v47  ;;  %1815 = vmatpush2.msra.mxu0 %v577_v35  ;;  %v602_v47 = vld [vmem:[%s5333_s1 + $0x838] sm:$0xff]  ;;  %v557_v35 = vld [vmem:[%s5333_s1 + $0x6d0] sm:$0xff] }
 0x101   : > { %2625 = vmatmul.mubr.msk.f32.gmra.mxu0 %vm649_vm0, %v4271_v56  ;;  %2058 = vmatpush1.msra.mxu1 %v605_v37  ;;  %v598_v28 = vld [vmem:[%s5333_s1 + $0x818] sm:$0xff] }
 0x102   : > { %1408 = vmatprep.mubr.f32.mxu0 %v5360_v0  ;;  %1816 = vmatprep.subr.mxu0 %v574_v34  ;;  %v554_v37 = vld [vmem:[%s5333_s1 + $0x6b8] sm:$0xff] }
 0x103   : > { %1660 = vmatmul.mubr.f32.gmra.mxu1 %v3733_v55  ;;  %1817 = vmatpush2.msra.mxu0 %v573_v16  ;;  %v4313_v55 = vld [vmem:[%s3421_s5 + $0x278] sm:$0xff] }
 0x104   : > { %1665 = vmatprep.mubr.f32.mxu1 %v3739_v59  ;;  %1818 = vmatprep.subr.mxu0 %v570_v45  ;;  %v562_v59 = vld [vmem:[%s5333_s1 + $0x6f8] sm:$0xff] }
 0x105   : > { %2626 = vmatmul.mubr.msk.f32.gmra.mxu0 %vm649_vm0, %v4291_v18  ;;  %2059 = vmatprep.subr.mxu1 %v602_v47  ;;  %v550_v45 = vld [vmem:[%s5333_s1 + $0x698] sm:$0xff] }
 0x106   : > { %1414 = vmatprep.mubr.f32.mxu0 %v5360_v0  ;;  %1819 = vmatpush2.msra.mxu0 %v569_v53 }
 0x107   : > { %1666 = vmatmul.mubr.f32.gmra.mxu1 %v3755_v5  ;;  %1820 = vmatprep.subr.mxu0 %v566_v42  ;;  %v601_v5 = vld [vmem:[%s5333_s1 + $0x830] sm:$0xff] }
 0x108   : > { %1671 = vmatprep.mubr.f32.mxu1 %v3761_v8  ;;  %1821 = vmatpush2.msra.mxu0 %v565_v12  ;;  %v4340_v8 = vld [vmem:[%s3421_s5 + $0x2a0] sm:$0xff]  ;;  %v549_v42 = vld [vmem:[%s5333_s1 + $0x690] sm:$0xff] }
 0x109   : > { %2627 = vmatmul.mubr.msk.f32.gmra.mxu0 %vm649_vm0, %v4313_v55  ;;  %1822 = vmatprep.subr.mxu0 %v562_v59  ;;  %v546_v59 = vld [vmem:[%s5333_s1 + $0x678] sm:$0xff] }
 0x10a   : > { %1420 = vmatprep.mubr.f32.mxu0 %v5360_v0  ;;  %1823 = vmatpush2.msra.mxu0 %v561_v48  ;;  %v545_v48 = vld [vmem:[%s5333_s1 + $0x670] sm:$0xff] }
 0x10b   : > { %1672 = vmatmul.mubr.f32.gmra.mxu1 %v3777_v20  ;;  %1824 = vmatprep.subr.mxu0 %v558_v27  ;;  %v553_v20 = vld [vmem:[%s5333_s1 + $0x6b0] sm:$0xff] }
 0x10c   : > { %1677 = vmatprep.mubr.f32.mxu1 %v3783_v22  ;;  %2060 = vmatpush1.msra.mxu1 %v601_v5  ;;  %v812_v34 = vpop.f32.mrf.mxu0  ;;  %v4363_v22 = vld [vmem:[%s3421_s5 + $0x2c8] sm:$0xff]  ;;  %v597_v5 = vld [vmem:[%s5333_s1 + $0x810] sm:$0xff] }
 0x10d   : > { %2628 = vmatmul.mubr.msk.f32.gmra.mxu0 %vm649_vm0, %v4340_v8  ;;  %2061 = vmatprep.subr.mxu1 %v598_v28  ;;  %v813_v16 = vadd.f32 %v812_v34, %v4337_v13 }
 0x10e   : > { %1426 = vmatprep.mubr.f32.mxu0 %v5360_v0  ;;  %1825 = vmatpush2.msra.mxu0 %v557_v35  ;;  %v1069_v47 = vpop.f32.mrf.mxu1  ;;  %v814_v53 = vpop.f32.mrf.mxu0 }
 0x10f   : > { %1678 = vmatmul.mubr.f32.gmra.mxu1 %v3799_v33  ;;  %1826 = vmatprep.subr.mxu0 %v554_v37  ;;  %v4372_v12 = vadd.f32 %v1069_v47, %v813_v16  ;;  %v815_v15 = vadd.f32 %v814_v53, %v4350_v58  ;;  %v542_v37 = vld [vmem:[%s5333_s1 + $0x658] sm:$0xff]  ;;  %v541_v16 = vld [vmem:[%s5333_s1 + $0x650] sm:$0xff] }
 0x110   : > { %1683 = vmatprep.mubr.f32.mxu1 %v3805_v38  ;;  %1827 = vmatpush2.msra.mxu0 %v553_v20  ;;  %v1071_v9 = vpop.f32.mrf.mxu1  ;;  %v4389_v38 = vld [vmem:[%s3421_s5 + $0x2f0] sm:$0xff]  ;;  %v538_v47 = vld [vmem:[%s5333_s1 + $0x638] sm:$0xff] }
 0x111   : > { %v818_v33 = vpop.f32.mrf.mxu0  ;;  %2629 = vmatmul.mubr.msk.f32.gmra.mxu0 %vm649_vm0, %v4363_v22  ;;  %1828 = vmatprep.subr.mxu0 %v550_v45  ;;  %v4384_v50 = vadd.f32 %v1071_v9, %v815_v15  ;;  %v537_v9 = vld [vmem:[%s5333_s1 + $0x630] sm:$0xff] }
 0x112   : > { %v819_v27 = vadd.f32 %v818_v33, %v4337_v13  ;;  %1432 = vmatprep.mubr.f32.mxu0 %v5360_v0  ;;  %1829 = vmatpush2.msra.mxu0 %v549_v42  ;;  %v1075_v28 = vpop.f32.mrf.mxu1 }
 0x113   : > { %1684 = vmatmul.mubr.f32.gmra.mxu1 %v3821_v49  ;;  %v820_v35 = vpop.f32.mrf.mxu0  ;;  %1830 = vmatprep.subr.mxu0 %v546_v59 }
 0x114   : > { %v4398_v34 = vadd.f32 %v1075_v28, %v819_v27  ;;  %v821_v20 = vadd.f32 %v820_v35, %v4350_v58  ;;  %1689 = vmatprep.mubr.f32.mxu1 %v3827_v52  ;;  %1831 = vmatpush2.msra.mxu0 %v545_v48  ;;  %v1077_v45 = vpop.f32.mrf.mxu1  ;;  %v4415_v52 = vld [vmem:[%s3421_s5 + $0x318] sm:$0xff]  ;;  %v533_v28 = vld [vmem:[%s5333_s1 + $0x610] sm:$0xff] }
 0x115   : > { %v824_v49 = vpop.f32.mrf.mxu0  ;;  %2630 = vmatmul.mubr.msk.f32.gmra.mxu0 %vm649_vm0, %v4389_v38  ;;  %2062 = vmatpush1.msra.mxu1 %v597_v5  ;;  %v534_v27 = vld [vmem:[%s5333_s1 + $0x618] sm:$0xff] }
 0x116   : > { %v4410_v53 = vadd.f32 %v1077_v45, %v821_v20  ;;  %v825_v42 = vadd.f32 %v824_v49, %v4337_v13  ;;  %1438 = vmatprep.mubr.f32.mxu0 %v5360_v0  ;;  %1832 = vmatprep.subr.mxu0 %v542_v37  ;;  %v1081_v15 = vpop.f32.mrf.mxu1 }
 0x117   : > { %1690 = vmatmul.mubr.f32.gmra.mxu1 %v3843_v63  ;;  %v826_v59 = vpop.f32.mrf.mxu0  ;;  %1833 = vmatpush2.msra.mxu0 %v541_v16 }
 0x118   : > { %v4421_v33 = vadd.f32 %v1081_v15, %v825_v42  ;;  %v827_v48 = vadd.f32 %v826_v59, %v4350_v58  ;;  %1695 = vmatprep.mubr.f32.mxu1 %v3849_v3  ;;  %1834 = vmatprep.subr.mxu0 %v538_v47  ;;  %v1083_v5 = vpop.f32.mrf.mxu1  ;;  %v4438_v3 = vld [vmem:[%s3421_s5 + $0x340] sm:$0xff] }
 0x119   : > { %v830_v63 = vpop.f32.mrf.mxu0  ;;  %2631 = vmatmul.mubr.msk.f32.gmra.mxu0 %vm649_vm0, %v4415_v52 }
 0x11a   : > { %v4433_v35 = vadd.f32 %v1083_v5, %v827_v48  ;;  %v831_v37 = vadd.f32 %v830_v63, %v4337_v13  ;;  %1444 = vmatprep.mubr.f32.mxu0 %v5360_v0  ;;  %1835 = vmatpush2.msra.mxu0 %v537_v9 }
 0x11b   : > { %v1087_v20 = vpop.f32.mrf.mxu1  ;;  %1696 = vmatmul.mubr.f32.gmra.mxu1 %v3865_v19  ;;  %v832_v16 = vpop.f32.mrf.mxu0  ;;  %1836 = vmatprep.subr.mxu0 %v534_v27  ;;  %v4452_v19 = vld [vmem:[%s3421_s5 + $0x368] sm:$0xff] }
 0x11c   : > { %v4441_v45 = vadd.f32 %v1087_v20, %v831_v37  ;;  %v833_v49 = vadd.f32 %v832_v16, %v4350_v58  ;;  %1701 = vmatprep.mubr.f32.mxu1 %v3871_v25  ;;  %1837 = vmatpush2.msra.mxu0 %v533_v28 }
 0x11d   : > { %v1089_v47 = vpop.f32.mrf.mxu1  ;;  %v836_v42 = vpop.f32.mrf.mxu0  ;;  %2632 = vmatmul.mubr.msk.f32.gmra.mxu0 %vm649_vm0, %v4438_v3 }
 0x11e   : > { %v4447_v15 = vadd.f32 %v1089_v47, %v833_v49  ;;  %v837_v59 = vadd.f32 %v836_v42, %v4337_v13  ;;  %1450 = vmatprep.mubr.f32.mxu0 %v5360_v0 }
 0x11f   : > { %v1093_v9 = vpop.f32.mrf.mxu1  ;;  %1702 = vmatmul.mubr.f32.gmra.mxu1 %v3887_v39  ;;  %v838_v48 = vpop.f32.mrf.mxu0  ;;  %v4466_v39 = vld [vmem:[%s3421_s5 + $0x390] sm:$0xff] }
 0x120   : > { %v4455_v25 = vadd.f32 %v1093_v9, %v837_v59  ;;  %v839_v27 = vadd.f32 %v838_v48, %v4350_v58  ;;  %1707 = vmatprep.mubr.f32.mxu1 %v3893_v43 }
 0x121   : > { %v1095_v5 = vpop.f32.mrf.mxu1  ;;  %v842_v63 = vpop.f32.mrf.mxu0  ;;  %2633 = vmatmul.mubr.msk.f32.gmra.mxu0 %vm649_vm0, %v4452_v19 }
 0x122   : > { %v4461_v28 = vadd.f32 %v1095_v5, %v839_v27  ;;  %v843_v37 = vadd.f32 %v842_v63, %v4337_v13  ;;  %1456 = vmatprep.mubr.f32.mxu0 %v5360_v0 }
 0x123   : > { %v1099_v20 = vpop.f32.mrf.mxu1  ;;  %1708 = vmatmul.mubr.f32.gmra.mxu1 %v3909_v57  ;;  %v844_v16 = vpop.f32.mrf.mxu0  ;;  %v4480_v57 = vld [vmem:[%s3421_s5 + $0x3b8] sm:$0xff] }
 0x124   : > { %v4469_v49 = vadd.f32 %v1099_v20, %v843_v37  ;;  %v845_v43 = vadd.f32 %v844_v16, %v4350_v58  ;;  %1713 = vmatprep.mubr.f32.mxu1 %v3912_v60 }
 0x125   : > { %v1101_v47 = vpop.f32.mrf.mxu1  ;;  %v848_v42 = vpop.f32.mrf.mxu0  ;;  %2634 = vmatmul.mubr.msk.f32.gmra.mxu0 %vm649_vm0, %v4466_v39 }
 0x126   : > { %v4475_v59 = vadd.f32 %v1101_v47, %v845_v43  ;;  %v849_v9 = vadd.f32 %v848_v42, %v4337_v13  ;;  %1462 = vmatprep.mubr.f32.mxu0 %v5360_v0 }
 0x127   : > { %v1105_v48 = vpop.f32.mrf.mxu1  ;;  %1714 = vmatmul.mubr.f32.gmra.mxu1 %v3919_v6  ;;  %v850_v27 = vpop.f32.mrf.mxu0  ;;  %v4494_v6 = vld [vmem:[%s3421_s5 + $0x3e0] sm:$0xff] }
 0x128   : > { %v4483_v5 = vadd.f32 %v1105_v48, %v849_v9  ;;  %v851_v60 = vadd.f32 %v850_v27, %v4350_v58  ;;  %1719 = vmatprep.mubr.f32.mxu1 %v3922_v10 }
 0x129   : > { %v1107_v63 = vpop.f32.mrf.mxu1  ;;  %v854_v37 = vpop.f32.mrf.mxu0  ;;  %2635 = vmatmul.mubr.msk.f32.gmra.mxu0 %vm649_vm0, %v4480_v57 }
 0x12a   : > { %v4489_v20 = vadd.f32 %v1107_v63, %v851_v60  ;;  %v855_v16 = vadd.f32 %v854_v37, %v4337_v13  ;;  %1468 = vmatprep.mubr.f32.mxu0 %v5360_v0 }
 0x12b   : > { %v1111_v43 = vpop.f32.mrf.mxu1  ;;  %1720 = vmatmul.mubr.f32.gmra.mxu1 %v3929_v17  ;;  %v856_v47 = vpop.f32.mrf.mxu0  ;;  %v4508_v17 = vld [vmem:[%s3421_s5 + $0x408] sm:$0xff] }
 0x12c   : > { %v4497_v42 = vadd.f32 %v1111_v43, %v855_v16  ;;  %v857_v10 = vadd.f32 %v856_v47, %v4350_v58  ;;  %1725 = vmatprep.mubr.f32.mxu1 %v3932_v21 }
 0x12d   : > { %v1113_v9 = vpop.f32.mrf.mxu1  ;;  %v860_v48 = vpop.f32.mrf.mxu0  ;;  %2636 = vmatmul.mubr.msk.f32.gmra.mxu0 %vm649_vm0, %v4494_v6 }
 0x12e   : > { %v4503_v27 = vadd.f32 %v1113_v9, %v857_v10  ;;  %v861_v60 = vadd.f32 %v860_v48, %v4337_v13  ;;  %1474 = vmatprep.mubr.f32.mxu0 %v5360_v0 }
 0x12f   : > { %v1117_v63 = vpop.f32.mrf.mxu1  ;;  %1726 = vmatmul.mubr.f32.gmra.mxu1 %v3939_v30  ;;  %v862_v37 = vpop.f32.mrf.mxu0  ;;  %v4522_v30 = vld [vmem:[%s3421_s5 + $0x430] sm:$0xff] }
 0x130   : > { %v4511_v16 = vadd.f32 %v1117_v63, %v861_v60  ;;  %v863_v21 = vadd.f32 %v862_v37, %v4350_v58  ;;  %1731 = vmatprep.mubr.f32.mxu1 %v3942_v31  ;;  %5362 = vst [vmem:[#allocation10_spill] sm:$0xff] %v4522_v30 }
 0x131   : > { %v1119_v43 = vpop.f32.mrf.mxu1  ;;  %v866_v47 = vpop.f32.mrf.mxu0  ;;  %2637 = vmatmul.mubr.msk.f32.gmra.mxu0 %vm649_vm0, %v4508_v17 }
 0x132   : > { %v4517_v10 = vadd.f32 %v1119_v43, %v863_v21  ;;  %v867_v9 = vadd.f32 %v866_v47, %v4337_v13  ;;  %1480 = vmatprep.mubr.f32.mxu0 %v5360_v0 }
 0x133   : > { %v1123_v48 = vpop.f32.mrf.mxu1  ;;  %1732 = vmatmul.mubr.f32.gmra.mxu1 %v3949_v44  ;;  %v868_v60 = vpop.f32.mrf.mxu0  ;;  %v4536_v44 = vld [vmem:[%s3421_s5 + $0x458] sm:$0xff] }
 0x134   : > { %v4525_v63 = vadd.f32 %v1123_v48, %v867_v9  ;;  %v869_v31 = vadd.f32 %v868_v60, %v4350_v58  ;;  %1737 = vmatprep.mubr.f32.mxu1 %v3952_v46  ;;  %5363 = vst [vmem:[#allocation11_spill] sm:$0xff] %v4536_v44 }
 0x135   : > { %v1125_v37 = vpop.f32.mrf.mxu1  ;;  %v872_v21 = vpop.f32.mrf.mxu0  ;;  %2638 = vmatmul.mubr.msk.f32.gmra.mxu0 %vm649_vm0, %v4522_v30 }
 0x136   : > { %v4531_v43 = vadd.f32 %v1125_v37, %v869_v31  ;;  %v873_v47 = vadd.f32 %v872_v21, %v4337_v13  ;;  %1486 = vmatprep.mubr.f32.mxu0 %v5360_v0 }
 0x137   : > { %v1129_v9 = vpop.f32.mrf.mxu1  ;;  %1738 = vmatmul.mubr.f32.gmra.mxu1 %v3959_v54  ;;  %v874_v48 = vpop.f32.mrf.mxu0  ;;  %v4550_v54 = vld [vmem:[%s3421_s5 + $0x480] sm:$0xff] }
 0x138   : > { %v4539_v60 = vadd.f32 %v1129_v9, %v873_v47  ;;  %v875_v46 = vadd.f32 %v874_v48, %v4350_v58  ;;  %1743 = vmatprep.mubr.f32.mxu1 %v3962_v62  ;;  %5366 = vst [vmem:[#allocation14_spill] sm:$0xff] %v4550_v54  ;;  %v5367_v9 = vld [vmem:[#allocation2_spill] sm:$0xff] }
 0x139   : > { %v1131_v4 = vpop.f32.mrf.mxu1  ;;  %v878_v31 = vpop.f32.mrf.mxu0  ;;  %2639 = vmatmul.mubr.msk.f32.gmra.mxu0 %vm649_vm0, %v4536_v44 }
 0x13a   : > { %5364 = vst [vmem:[#allocation12_spill] sm:$0xff] %v4539_v60  ;;  %v4545_v37 = vadd.f32 %v1131_v4, %v875_v46  ;;  %v879_v21 = vadd.f32 %v878_v31, %v4337_v13  ;;  %1492 = vmatprep.mubr.f32.mxu0 %v5360_v0  ;;  %v5369_v60 = vld [vmem:[#allocation3_spill] sm:$0xff] }
 0x13b   : > { %v1135_v47 = vpop.f32.mrf.mxu1  ;;  %1744 = vmatmul.mubr.f32.gmra.mxu1 %v5367_v9  ;;  %v880_v48 = vpop.f32.mrf.mxu0  ;;  %v4564_v9 = vld [vmem:[%s3421_s5 + $0x4a8] sm:$0xff] }
 0x13c   : > { %5365 = vst [vmem:[#allocation13_spill] sm:$0xff] %v4545_v37  ;;  %v4553_v30 = vadd.f32 %v1135_v47, %v879_v21  ;;  %v881_v62 = vadd.f32 %v880_v48, %v4350_v58  ;;  %1749 = vmatprep.mubr.f32.mxu1 %v5369_v60  ;;  %5371 = vst [vmem:[#allocation15_spill] sm:$0xff] %v4564_v9  ;;  %v5372_v47 = vld [vmem:[#allocation4_spill] sm:$0xff]  ;;  %v5374_v37 = vld [vmem:[#allocation5_spill] sm:$0xff] }
 0x13d   : > { %v1137_v44 = vpop.f32.mrf.mxu1  ;;  %v884_v4 = vpop.f32.mrf.mxu0  ;;  %2640 = vmatmul.mubr.msk.f32.gmra.mxu0 %vm649_vm0, %v4550_v54 }
 0x13e   : > { %5368 = vst [vmem:[#allocation2_spill] sm:$0xff] %v4553_v30  ;;  %v4559_v46 = vadd.f32 %v1137_v44, %v881_v62  ;;  %v885_v31 = vadd.f32 %v884_v4, %v4337_v13  ;;  %1498 = vmatprep.mubr.f32.mxu0 %v5360_v0 }
 0x13f   : > { %v1141_v21 = vpop.f32.mrf.mxu1  ;;  %1750 = vmatmul.mubr.f32.gmra.mxu1 %v5372_v47  ;;  %v886_v48 = vpop.f32.mrf.mxu0  ;;  %v4578_v47 = vld [vmem:[%s3421_s5 + $0x4d0] sm:$0xff] }
 0x140   : > { %5370 = vst [vmem:[#allocation3_spill] sm:$0xff] %v4559_v46  ;;  %v4567_v30 = vadd.f32 %v1141_v21, %v885_v31  ;;  %v887_v60 = vadd.f32 %v886_v48, %v4350_v58  ;;  %1755 = vmatprep.mubr.f32.mxu1 %v5374_v37  ;;  %5375 = vst [vmem:[#allocation5_spill] sm:$0xff] %v4578_v47  ;;  %v5376_v21 = vld [vmem:[#allocation6_spill] sm:$0xff]  ;;  %v5377_v46 = vld [vmem:[#allocation7_spill] sm:$0xff] }
 0x141   : > { %v1143_v54 = vpop.f32.mrf.mxu1  ;;  %v890_v44 = vpop.f32.mrf.mxu0  ;;  %2641 = vmatmul.mubr.msk.f32.gmra.mxu0 %vm649_vm0, %v4564_v9 }
 0x142   : > { %5373 = vst [vmem:[#allocation4_spill] sm:$0xff] %v4567_v30  ;;  %v4573_v62 = vadd.f32 %v1143_v54, %v887_v60  ;;  %v891_v4 = vadd.f32 %v890_v44, %v4337_v13  ;;  %1504 = vmatprep.mubr.f32.mxu0 %v5360_v0 }
 0x143   : > { %v1147_v31 = vpop.f32.mrf.mxu1  ;;  %1756 = vmatmul.mubr.f32.gmra.mxu1 %v5376_v21  ;;  %v892_v48 = vpop.f32.mrf.mxu0  ;;  %v4592_v21 = vld [vmem:[%s3421_s5 + $0x4f8] sm:$0xff] }
 0x144   : > { %v4581_v30 = vadd.f32 %v1147_v31, %v891_v4  ;;  %v893_v37 = vadd.f32 %v892_v48, %v4350_v58  ;;  %1761 = vmatprep.mubr.f32.mxu1 %v5377_v46  ;;  %5379 = vst [vmem:[#allocation7_spill] sm:$0xff] %v4592_v21 }
 0x145   : > { %v1149_v9 = vpop.f32.mrf.mxu1  ;;  %v896_v54 = vpop.f32.mrf.mxu0  ;;  %2642 = vmatmul.mubr.msk.f32.gmra.mxu0 %vm649_vm0, %v4578_v47 }
 0x146   : > { %v4587_v60 = vadd.f32 %v1149_v9, %v893_v37  ;;  %v897_v44 = vadd.f32 %v896_v54, %v4337_v13  ;;  %1510 = vmatprep.mubr.f32.mxu0 %v5360_v0 }
 0x147   : > { %v1153_v4 = vpop.f32.mrf.mxu1  ;;  %1762 = vmatmul.mubr.f32.gmra.mxu1 %v3999_v41  ;;  %v898_v31 = vpop.f32.mrf.mxu0 }
 0x148   : > { %5378 = vst [vmem:[#allocation6_spill] sm:$0xff] %v4587_v60  ;;  %v4595_v48 = vadd.f32 %v1153_v4, %v897_v44  ;;  %v899_v46 = vadd.f32 %v898_v31, %v4350_v58  ;;  %1767 = vmatprep.mubr.f32.mxu1 %v4002_v14  ;;  %v2945_v60 = vld [vmem:[%s3421_s5 + $0x18] sm:$0xff] }
 0x149   : > { %v1155_v47 = vpop.f32.mrf.mxu1  ;;  %v902_v9 = vpop.f32.mrf.mxu0  ;;  %2643 = vmatmul.mubr.msk.f32.gmra.mxu0 %vm649_vm0, %v4592_v21 }
 0x14a   : > { %v4601_v37 = vadd.f32 %v1155_v47, %v899_v46  ;;  %v903_v54 = vadd.f32 %v902_v9, %v4337_v13  ;;  %1838 = vmatprep.mubr.f32.mxu0 %v2945_v60  ;;  %v2946_v47 = vld [vmem:[%s3421_s5 + $0x10] sm:$0xff]  ;;  %v2947_v9 = vld [vmem:[%s3421_s5 + $0x40] sm:$0xff] }
 0x14b   : > { %v1159_v41 = vpop.f32.mrf.mxu1  ;;  %1768 = vmatmul.mubr.f32.gmra.mxu1 %v4009_v1  ;;  %v904_v44 = vpop.f32.mrf.mxu0 }
 0x14c   : > { %5380 = vst [vmem:[#allocation16_spill] sm:$0xff] %v4601_v37  ;;  %v4606_v4 = vadd.f32 %v1159_v41, %v903_v54  ;;  %v905_v14 = vadd.f32 %v904_v44, %v4350_v58  ;;  %2095 = vmatprep.mubr.f32.mxu1 %v5360_v0  ;;  %v5382_v37 = vld [vmem:[#allocation8_spill] sm:$0xff] }
 0x14d   : > { %v1161_v31 = vpop.f32.mrf.mxu1  ;;  %v908_v21 = vpop.f32.mrf.mxu0  ;;  %1839 = vmatmul.mubr.f32.vlgmr.msra.gmra.mxu0 %v2946_v47 }
 0x14e   : > { %5381 = vst [vmem:[#allocation17_spill] sm:$0xff] %v4606_v4  ;;  %v4611_v46 = vadd.f32 %v1161_v31, %v905_v14  ;;  %v909_v60 = vadd.f32 %v908_v21, %v4337_v13  ;;  %1844 = vmatprep.mubr.f32.mxu0 %v2947_v9  ;;  %v2948_v31 = vld [vmem:[%s3421_s5 + $0x38] sm:$0xff]  ;;  %v2949_v9 = vld [vmem:[%s3421_s5 + $0x68] sm:$0xff] }
 0x14f   : > { %v1165_v1 = vpop.f32.mrf.mxu1  ;;  %2644 = vmatmul.mubr.msk.f32.vlgmr.msra.gmra.mxu1 %vm649_vm0, %v5382_v37  ;;  %v910_v54 = vpop.f32.mrf.mxu0 }
 0x150   : > { %v4617_v41 = vadd.f32 %v1165_v1, %v909_v60  ;;  %v911_v44 = vadd.f32 %v910_v54, %v4350_v58  ;;  %2101 = vmatprep.mubr.f32.mxu1 %v5360_v0 }
 0x151   : > { %v1167_v4 = vpop.f32.mrf.mxu1  ;;  %v914_v14 = vpop.f32.mrf.mxu0  ;;  %1845 = vmatmul.mubr.f32.gmra.mxu0 %v2948_v31 }
 0x152   : > { %5383 = vst [vmem:[#allocation8_spill] sm:$0xff] %v4617_v41  ;;  %v4622_v47 = vadd.f32 %v1167_v4, %v911_v44  ;;  %v915_v21 = vadd.f32 %v914_v14, %v4337_v13  ;;  %1850 = vmatprep.mubr.f32.mxu0 %v2949_v9  ;;  %v2950_v44 = vld [vmem:[%s3421_s5 + $0x60] sm:$0xff]  ;;  %v2951_v9 = vld [vmem:[%s3421_s5 + $0x90] sm:$0xff] }
 0x153   : > { %v1171_v37 = vpop.f32.mrf.mxu1  ;;  %2645 = vmatmul.mubr.msk.f32.gmra.mxu1 %vm649_vm0, %v4031_v11  ;;  %v916_v60 = vpop.f32.mrf.mxu0 }
 0x154   : > { %v4628_v1 = vadd.f32 %v1171_v37, %v915_v21  ;;  %v917_v54 = vadd.f32 %v916_v60, %v4350_v58  ;;  %2107 = vmatprep.mubr.f32.mxu1 %v5360_v0 }
 0x155   : > { %v1173_v41 = vpop.f32.mrf.mxu1  ;;  %v920_v4 = vpop.f32.mrf.mxu0  ;;  %1851 = vmatmul.mubr.f32.gmra.mxu0 %v2950_v44 }
 0x156   : > { %5384 = vst [vmem:[#allocation18_spill] sm:$0xff] %v4628_v1  ;;  %v4633_v31 = vadd.f32 %v1173_v41, %v917_v54  ;;  %v921_v14 = vadd.f32 %v920_v4, %v4337_v13  ;;  %1856 = vmatprep.mubr.f32.mxu0 %v2951_v9  ;;  %v2952_v54 = vld [vmem:[%s3421_s5 + $0x88] sm:$0xff]  ;;  %v2953_v9 = vld [vmem:[%s3421_s5 + $0xb8] sm:$0xff] }
 0x157   : > { %v1177_v11 = vpop.f32.mrf.mxu1  ;;  %2646 = vmatmul.mubr.msk.f32.gmra.mxu1 %vm649_vm0, %v4051_v51  ;;  %v922_v21 = vpop.f32.mrf.mxu0 }
 0x158   : > { %v4639_v37 = vadd.f32 %v1177_v11, %v921_v14  ;;  %v923_v60 = vadd.f32 %v922_v21, %v4350_v58  ;;  %2113 = vmatprep.mubr.f32.mxu1 %v5360_v0 }
 0x159   : > { %v1179_v1 = vpop.f32.mrf.mxu1  ;;  %v926_v41 = vpop.f32.mrf.mxu0  ;;  %1857 = vmatmul.mubr.f32.gmra.mxu0 %v2952_v54 }
 0x15a   : > { %5385 = vst [vmem:[#allocation19_spill] sm:$0xff] %v4639_v37  ;;  %v4644_v44 = vadd.f32 %v1179_v1, %v923_v60  ;;  %v927_v4 = vadd.f32 %v926_v41, %v4337_v13  ;;  %1862 = vmatprep.mubr.f32.mxu0 %v2953_v9  ;;  %v2954_v60 = vld [vmem:[%s3421_s5 + $0xb0] sm:$0xff]  ;;  %v2955_v9 = vld [vmem:[%s3421_s5 + $0xe0] sm:$0xff] }
 0x15b   : > { %v1183_v51 = vpop.f32.mrf.mxu1  ;;  %2647 = vmatmul.mubr.msk.f32.gmra.mxu1 %vm649_vm0, %v4071_v61  ;;  %v928_v14 = vpop.f32.mrf.mxu0 }
 0x15c   : > { %v4650_v11 = vadd.f32 %v1183_v51, %v927_v4  ;;  %v929_v21 = vadd.f32 %v928_v14, %v4350_v58  ;;  %2119 = vmatprep.mubr.f32.mxu1 %v5360_v0 }
 0x15d   : > { %v1185_v37 = vpop.f32.mrf.mxu1  ;;  %v932_v1 = vpop.f32.mrf.mxu0  ;;  %1863 = vmatmul.mubr.f32.gmra.mxu0 %v2954_v60 }
 0x15e   : > { %5386 = vst [vmem:[#allocation20_spill] sm:$0xff] %v4650_v11  ;;  %v4655_v54 = vadd.f32 %v1185_v37, %v929_v21  ;;  %v933_v41 = vadd.f32 %v932_v1, %v4337_v13  ;;  %1868 = vmatprep.mubr.f32.mxu0 %v2955_v9  ;;  %v2956_v21 = vld [vmem:[%s3421_s5 + $0xd8] sm:$0xff]  ;;  %v2957_v9 = vld [vmem:[%s3421_s5 + $0x108] sm:$0xff] }
 0x15f   : > { %v1189_v61 = vpop.f32.mrf.mxu1  ;;  %2648 = vmatmul.mubr.msk.f32.gmra.mxu1 %vm649_vm0, %v4091_v7  ;;  %v934_v4 = vpop.f32.mrf.mxu0 }
 0x160   : > { %v4661_v51 = vadd.f32 %v1189_v61, %v933_v41  ;;  %v935_v14 = vadd.f32 %v934_v4, %v4350_v58  ;;  %2125 = vmatprep.mubr.f32.mxu1 %v5360_v0 }
 0x161   : > { %v1191_v11 = vpop.f32.mrf.mxu1  ;;  %v938_v37 = vpop.f32.mrf.mxu0  ;;  %1869 = vmatmul.mubr.f32.gmra.mxu0 %v2956_v21 }
 0x162   : > { %5387 = vst [vmem:[#allocation21_spill] sm:$0xff] %v4661_v51  ;;  %v4666_v60 = vadd.f32 %v1191_v11, %v935_v14  ;;  %v939_v1 = vadd.f32 %v938_v37, %v4337_v13  ;;  %1874 = vmatprep.mubr.f32.mxu0 %v2957_v9  ;;  %v2958_v14 = vld [vmem:[%s3421_s5 + $0x100] sm:$0xff]  ;;  %v2959_v9 = vld [vmem:[%s3421_s5 + $0x130] sm:$0xff] }
 0x163   : > { %v1195_v7 = vpop.f32.mrf.mxu1  ;;  %2649 = vmatmul.mubr.msk.f32.gmra.mxu1 %vm649_vm0, %v4111_v24  ;;  %v940_v41 = vpop.f32.mrf.mxu0 }
 0x164   : > { %v4672_v61 = vadd.f32 %v1195_v7, %v939_v1  ;;  %v941_v4 = vadd.f32 %v940_v41, %v4350_v58  ;;  %2131 = vmatprep.mubr.f32.mxu1 %v5360_v0 }
 0x165   : > { %v1197_v51 = vpop.f32.mrf.mxu1  ;;  %v944_v11 = vpop.f32.mrf.mxu0  ;;  %1875 = vmatmul.mubr.f32.gmra.mxu0 %v2958_v14 }
 0x166   : > { %5388 = vst [vmem:[#allocation22_spill] sm:$0xff] %v4672_v61  ;;  %v4677_v21 = vadd.f32 %v1197_v51, %v941_v4  ;;  %v945_v37 = vadd.f32 %v944_v11, %v4337_v13  ;;  %1880 = vmatprep.mubr.f32.mxu0 %v2959_v9  ;;  %v2960_v4 = vld [vmem:[%s3421_s5 + $0x128] sm:$0xff]  ;;  %v2961_v9 = vld [vmem:[%s3421_s5 + $0x158] sm:$0xff] }
 0x167   : > { %v1201_v24 = vpop.f32.mrf.mxu1  ;;  %2650 = vmatmul.mubr.msk.f32.gmra.mxu1 %vm649_vm0, %v4131_v36  ;;  %v946_v1 = vpop.f32.mrf.mxu0 }
 0x168   : > { %v4683_v7 = vadd.f32 %v1201_v24, %v945_v37  ;;  %v947_v41 = vadd.f32 %v946_v1, %v4350_v58  ;;  %2137 = vmatprep.mubr.f32.mxu1 %v5360_v0 }
 0x169   : > { %v1203_v61 = vpop.f32.mrf.mxu1  ;;  %v950_v51 = vpop.f32.mrf.mxu0  ;;  %1881 = vmatmul.mubr.f32.gmra.mxu0 %v2960_v4 }
 0x16a   : > { %5389 = vst [vmem:[#allocation23_spill] sm:$0xff] %v4683_v7  ;;  %v4688_v14 = vadd.f32 %v1203_v61, %v947_v41  ;;  %v951_v11 = vadd.f32 %v950_v51, %v4337_v13  ;;  %1886 = vmatprep.mubr.f32.mxu0 %v2961_v9  ;;  %v2962_v41 = vld [vmem:[%s3421_s5 + $0x150] sm:$0xff]  ;;  %v2963_v9 = vld [vmem:[%s3421_s5 + $0x180] sm:$0xff] }
 0x16b   : > { %v1207_v36 = vpop.f32.mrf.mxu1  ;;  %2651 = vmatmul.mubr.msk.f32.gmra.mxu1 %vm649_vm0, %v4151_v40  ;;  %v952_v37 = vpop.f32.mrf.mxu0 }
 0x16c   : > { %v4694_v24 = vadd.f32 %v1207_v36, %v951_v11  ;;  %v953_v1 = vadd.f32 %v952_v37, %v4350_v58  ;;  %2143 = vmatprep.mubr.f32.mxu1 %v5360_v0 }
 0x16d   : > { %v1209_v7 = vpop.f32.mrf.mxu1  ;;  %v956_v61 = vpop.f32.mrf.mxu0  ;;  %1887 = vmatmul.mubr.f32.gmra.mxu0 %v2962_v41 }
 0x16e   : > { %5390 = vst [vmem:[#allocation24_spill] sm:$0xff] %v4694_v24  ;;  %v4699_v4 = vadd.f32 %v1209_v7, %v953_v1  ;;  %v957_v51 = vadd.f32 %v956_v61, %v4337_v13  ;;  %1892 = vmatprep.mubr.f32.mxu0 %v2963_v9  ;;  %v2964_v1 = vld [vmem:[%s3421_s5 + $0x178] sm:$0xff]  ;;  %v2965_v9 = vld [vmem:[%s3421_s5 + $0x1a8] sm:$0xff] }
 0x16f   : > { %v1213_v40 = vpop.f32.mrf.mxu1  ;;  %2652 = vmatmul.mubr.msk.f32.gmra.mxu1 %vm649_vm0, %v4171_v26  ;;  %v958_v11 = vpop.f32.mrf.mxu0 }
 0x170   : > { %v4705_v36 = vadd.f32 %v1213_v40, %v957_v51  ;;  %v959_v37 = vadd.f32 %v958_v11, %v4350_v58  ;;  %2149 = vmatprep.mubr.f32.mxu1 %v5360_v0 }
 0x171   : > { %v1215_v24 = vpop.f32.mrf.mxu1  ;;  %v962_v7 = vpop.f32.mrf.mxu0  ;;  %1893 = vmatmul.mubr.f32.gmra.mxu0 %v2964_v1 }
 0x172   : > { %5391 = vst [vmem:[#allocation25_spill] sm:$0xff] %v4705_v36  ;;  %v4710_v41 = vadd.f32 %v1215_v24, %v959_v37  ;;  %v963_v61 = vadd.f32 %v962_v7, %v4337_v13  ;;  %1898 = vmatprep.mubr.f32.mxu0 %v2965_v9  ;;  %v2966_v37 = vld [vmem:[%s3421_s5 + $0x1a0] sm:$0xff]  ;;  %v2967_v9 = vld [vmem:[%s3421_s5 + $0x1d0] sm:$0xff] }
 0x173   : > { %v1219_v26 = vpop.f32.mrf.mxu1  ;;  %2653 = vmatmul.mubr.msk.f32.gmra.mxu1 %vm649_vm0, %v4191_v32  ;;  %v964_v51 = vpop.f32.mrf.mxu0 }
 0x174   : > { %v4716_v40 = vadd.f32 %v1219_v26, %v963_v61  ;;  %v965_v11 = vadd.f32 %v964_v51, %v4350_v58  ;;  %2155 = vmatprep.mubr.f32.mxu1 %v5360_v0 }
 0x175   : > { %v1221_v36 = vpop.f32.mrf.mxu1  ;;  %v968_v24 = vpop.f32.mrf.mxu0  ;;  %1899 = vmatmul.mubr.f32.gmra.mxu0 %v2966_v37 }
 0x176   : > { %5392 = vst [vmem:[#allocation26_spill] sm:$0xff] %v4716_v40  ;;  %v4721_v1 = vadd.f32 %v1221_v36, %v965_v11  ;;  %v969_v7 = vadd.f32 %v968_v24, %v4337_v13  ;;  %1904 = vmatprep.mubr.f32.mxu0 %v2967_v9  ;;  %v2968_v11 = vld [vmem:[%s3421_s5 + $0x1c8] sm:$0xff]  ;;  %v2969_v9 = vld [vmem:[%s3421_s5 + $0x1f8] sm:$0xff] }
 0x177   : > { %v1225_v32 = vpop.f32.mrf.mxu1  ;;  %2654 = vmatmul.mubr.msk.f32.gmra.mxu1 %vm649_vm0, %v4211_v2  ;;  %v970_v61 = vpop.f32.mrf.mxu0 }
 0x178   : > { %v4727_v26 = vadd.f32 %v1225_v32, %v969_v7  ;;  %v971_v51 = vadd.f32 %v970_v61, %v4350_v58  ;;  %2161 = vmatprep.mubr.f32.mxu1 %v5360_v0 }
 0x179   : > { %v1227_v40 = vpop.f32.mrf.mxu1  ;;  %v974_v36 = vpop.f32.mrf.mxu0  ;;  %1905 = vmatmul.mubr.f32.gmra.mxu0 %v2968_v11 }
 0x17a   : > { %5393 = vst [vmem:[#allocation27_spill] sm:$0xff] %v4727_v26  ;;  %v4732_v37 = vadd.f32 %v1227_v40, %v971_v51  ;;  %v975_v24 = vadd.f32 %v974_v36, %v4337_v13  ;;  %1910 = vmatprep.mubr.f32.mxu0 %v2969_v9  ;;  %v2970_v51 = vld [vmem:[%s3421_s5 + $0x1f0] sm:$0xff]  ;;  %v2971_v9 = vld [vmem:[%s3421_s5 + $0x220] sm:$0xff] }
 0x17b   : > { %v1231_v2 = vpop.f32.mrf.mxu1  ;;  %2655 = vmatmul.mubr.msk.f32.gmra.mxu1 %vm649_vm0, %v4231_v29  ;;  %v976_v7 = vpop.f32.mrf.mxu0 }
 0x17c   : > { %v4738_v32 = vadd.f32 %v1231_v2, %v975_v24  ;;  %v977_v61 = vadd.f32 %v976_v7, %v4350_v58  ;;  %2167 = vmatprep.mubr.f32.mxu1 %v5360_v0 }
 0x17d   : > { %v1233_v26 = vpop.f32.mrf.mxu1  ;;  %v980_v40 = vpop.f32.mrf.mxu0  ;;  %1911 = vmatmul.mubr.f32.gmra.mxu0 %v2970_v51 }
 0x17e   : > { %5394 = vst [vmem:[#allocation28_spill] sm:$0xff] %v4738_v32  ;;  %v4743_v11 = vadd.f32 %v1233_v26, %v977_v61  ;;  %v981_v36 = vadd.f32 %v980_v40, %v4337_v13  ;;  %1916 = vmatprep.mubr.f32.mxu0 %v2971_v9  ;;  %v2972_v61 = vld [vmem:[%s3421_s5 + $0x218] sm:$0xff]  ;;  %v2973_v9 = vld [vmem:[%s3421_s5 + $0x248] sm:$0xff] }
 0x17f   : > { %v1237_v29 = vpop.f32.mrf.mxu1  ;;  %2656 = vmatmul.mubr.msk.f32.gmra.mxu1 %vm649_vm0, %v4251_v23  ;;  %v982_v24 = vpop.f32.mrf.mxu0 }
 0x180   : > { %v4749_v2 = vadd.f32 %v1237_v29, %v981_v36  ;;  %v983_v7 = vadd.f32 %v982_v24, %v4350_v58  ;;  %2173 = vmatprep.mubr.f32.mxu1 %v5360_v0 }
 0x181   : > { %v1239_v32 = vpop.f32.mrf.mxu1  ;;  %v986_v26 = vpop.f32.mrf.mxu0  ;;  %1917 = vmatmul.mubr.f32.gmra.mxu0 %v2972_v61 }
 0x182   : > { %5395 = vst [vmem:[#allocation29_spill] sm:$0xff] %v4749_v2  ;;  %v4754_v51 = vadd.f32 %v1239_v32, %v983_v7  ;;  %v987_v40 = vadd.f32 %v986_v26, %v4337_v13  ;;  %1922 = vmatprep.mubr.f32.mxu0 %v2973_v9  ;;  %v2974_v7 = vld [vmem:[%s3421_s5 + $0x240] sm:$0xff]  ;;  %v2975_v9 = vld [vmem:[%s3421_s5 + $0x270] sm:$0xff] }
 0x183   : > { %v1243_v23 = vpop.f32.mrf.mxu1  ;;  %2657 = vmatmul.mubr.msk.f32.gmra.mxu1 %vm649_vm0, %v4271_v56  ;;  %v988_v36 = vpop.f32.mrf.mxu0 }
 0x184   : > { %v4760_v29 = vadd.f32 %v1243_v23, %v987_v40  ;;  %v989_v24 = vadd.f32 %v988_v36, %v4350_v58  ;;  %2179 = vmatprep.mubr.f32.mxu1 %v5360_v0 }
 0x185   : > { %v1245_v2 = vpop.f32.mrf.mxu1  ;;  %v992_v32 = vpop.f32.mrf.mxu0  ;;  %1923 = vmatmul.mubr.f32.gmra.mxu0 %v2974_v7 }
 0x186   : > { %5396 = vst [vmem:[#allocation30_spill] sm:$0xff] %v4760_v29  ;;  %v4765_v61 = vadd.f32 %v1245_v2, %v989_v24  ;;  %v993_v26 = vadd.f32 %v992_v32, %v4337_v13  ;;  %1928 = vmatprep.mubr.f32.mxu0 %v2975_v9  ;;  %v2976_v24 = vld [vmem:[%s3421_s5 + $0x268] sm:$0xff]  ;;  %v2977_v9 = vld [vmem:[%s3421_s5 + $0x298] sm:$0xff] }
 0x187   : > { %v1249_v56 = vpop.f32.mrf.mxu1  ;;  %2658 = vmatmul.mubr.msk.f32.gmra.mxu1 %vm649_vm0, %v4291_v18  ;;  %v994_v40 = vpop.f32.mrf.mxu0 }
 0x188   : > { %v4771_v23 = vadd.f32 %v1249_v56, %v993_v26  ;;  %v995_v36 = vadd.f32 %v994_v40, %v4350_v58  ;;  %2185 = vmatprep.mubr.f32.mxu1 %v5360_v0 }
 0x189   : > { %v1251_v29 = vpop.f32.mrf.mxu1  ;;  %v998_v2 = vpop.f32.mrf.mxu0  ;;  %1929 = vmatmul.mubr.f32.gmra.mxu0 %v2976_v24 }
 0x18a   : > { %5397 = vst [vmem:[#allocation31_spill] sm:$0xff] %v4771_v23  ;;  %v4776_v7 = vadd.f32 %v1251_v29, %v995_v36  ;;  %v999_v32 = vadd.f32 %v998_v2, %v4337_v13  ;;  %1934 = vmatprep.mubr.f32.mxu0 %v2977_v9  ;;  %v2978_v36 = vld [vmem:[%s3421_s5 + $0x290] sm:$0xff]  ;;  %v2979_v2 = vld [vmem:[%s3421_s5 + $0x2c0] sm:$0xff] }
 0x18b   : > { %v1255_v18 = vpop.f32.mrf.mxu1  ;;  %2659 = vmatmul.mubr.msk.f32.gmra.mxu1 %vm649_vm0, %v4313_v55  ;;  %v1000_v26 = vpop.f32.mrf.mxu0 }
 0x18c   : > { %v4782_v56 = vadd.f32 %v1255_v18, %v999_v32  ;;  %v1001_v40 = vadd.f32 %v1000_v26, %v4350_v58  ;;  %2191 = vmatprep.mubr.f32.mxu1 %v5360_v0  ;;  %v2980_v18 = vld [vmem:[%s3421_s5 + $0x2b8] sm:$0xff]  ;;  %v2981_v26 = vld [vmem:[%s3421_s5 + $0x2e8] sm:$0xff] }
 0x18d   : > { %v1257_v23 = vpop.f32.mrf.mxu1  ;;  %v1326_v29 = vpop.f32.mrf.mxu0  ;;  %1935 = vmatmul.mubr.f32.gmra.mxu0 %v2978_v36 }
 0x18e   : > { %v4787_v24 = vadd.f32 %v1257_v23, %v1001_v40  ;;  %v1327_v13 = vadd.f32 %v1326_v29, %v4372_v12  ;;  %1940 = vmatprep.mubr.f32.mxu0 %v2979_v2  ;;  %v2983_v2 = vld [vmem:[%s3421_s5 + $0x310] sm:$0xff] }
 0x18f   : > { %v4791_v55 = vpop.f32.mrf.mxu1  ;;  %2660 = vmatmul.mubr.msk.f32.gmra.mxu1 %vm649_vm0, %v4340_v8  ;;  %v1328_v58 = vpop.f32.mrf.mxu0 }
 0x190   : > { %2689 = vtanh.f32 %v1327_v13  ;;  %v1329_v32 = vadd.f32 %v1328_v58, %v4384_v50  ;;  %2197 = vmatprep.mubr.f32.mxu1 %v5360_v0  ;;  %v2982_v13 = vld [vmem:[%s3421_s5 + $0x2e0] sm:$0xff] }
 0x191   : > { %v4797_v9 = vpop.f32.mrf.mxu1  ;;  %v1332_v23 = vpop.f32.mrf.mxu0  ;;  %1941 = vmatmul.mubr.f32.gmra.mxu0 %v2980_v18  ;;  %v2984_v18 = vld [vmem:[%s3421_s5 + $0x308] sm:$0xff] }
 0x192   : > { %2691 = vtanh.f32 %v1329_v32  ;;  %v1333_v12 = vadd.f32 %v1332_v23, %v4398_v34  ;;  %1946 = vmatprep.mubr.f32.mxu0 %v2981_v26 }
 0x193   : > { %v4802_v40 = vpop.f32.mrf.mxu1  ;;  %2661 = vmatmul.mubr.msk.f32.gmra.mxu1 %vm649_vm0, %v4363_v22  ;;  %v1334_v8 = vpop.f32.mrf.mxu0 }
 0x194   : > { %2693 = vtanh.f32 %v1333_v12  ;;  %v1335_v50 = vadd.f32 %v1334_v8, %v4410_v53  ;;  %2203 = vmatprep.mubr.f32.mxu1 %v5360_v0  ;;  %v2985_v12 = vld [vmem:[%s3421_s5 + $0x338] sm:$0xff] }
 0x195   : > { %v4808_v29 = vpop.f32.mrf.mxu1  ;;  %v1338_v36 = vpop.f32.mrf.mxu0  ;;  %1947 = vmatmul.mubr.f32.gmra.mxu0 %v2982_v13 }
 0x196   : > { %2695 = vtanh.f32 %v1335_v50  ;;  %v1339_v34 = vadd.f32 %v1338_v36, %v4421_v33  ;;  %1952 = vmatprep.mubr.f32.mxu0 %v2983_v2  ;;  %v2986_v36 = vld [vmem:[%s3421_s5 + $0x330] sm:$0xff] }
 0x197   : > { %v4813_v22 = vpop.f32.mrf.mxu1  ;;  %2662 = vmatmul.mubr.msk.f32.gmra.mxu1 %vm649_vm0, %v4389_v38  ;;  %v1340_v53 = vpop.f32.mrf.mxu0 }
 0x198   : > { %2697 = vtanh.f32 %v1339_v34  ;;  %v1341_v58 = vadd.f32 %v1340_v53, %v4433_v35  ;;  %2209 = vmatprep.mubr.f32.mxu1 %v5360_v0 }
 0x199   : > { %v4820_v32 = vpop.f32.mrf.mxu1  ;;  %v1344_v23 = vpop.f32.mrf.mxu0  ;;  %1953 = vmatmul.mubr.f32.gmra.mxu0 %v2984_v18  ;;  %v2988_v18 = vld [vmem:[%s3421_s5 + $0x358] sm:$0xff] }
 0x19a   : > { %2699 = vtanh.f32 %v1341_v58  ;;  %v1345_v33 = vadd.f32 %v1344_v23, %v4441_v45  ;;  %1958 = vmatprep.mubr.f32.mxu0 %v2985_v12 }
 0x19b   : > { %v4830_v38 = vpop.f32.mrf.mxu1  ;;  %2663 = vmatmul.mubr.msk.f32.gmra.mxu1 %vm649_vm0, %v4415_v52  ;;  %v1346_v35 = vpop.f32.mrf.mxu0  ;;  %v2987_v52 = vld [vmem:[%s3421_s5 + $0x360] sm:$0xff] }
 0x19c   : > { %2701 = vtanh.f32 %v1345_v33  ;;  %v1347_v26 = vadd.f32 %v1346_v35, %v4447_v15  ;;  %2215 = vmatprep.mubr.f32.mxu1 %v5360_v0 }
 0x19d   : > { %v2690_v45 = vpop.eup %2689  ;;  %v4836_v8 = vpop.f32.mrf.mxu1  ;;  %1959 = vmatmul.mubr.f32.gmra.mxu0 %v2986_v36  ;;  %v2990_v36 = vld [vmem:[%s3421_s5 + $0x380] sm:$0xff] }
 0x19e   : > { %v1350_v50 = vpop.f32.mrf.mxu0  ;;  %2416 = vst [vmem:[%s4828_s19] sm:$0xff] %v2690_v45  ;;  %2703 = vtanh.f32 %v1347_v26  ;;  %1964 = vmatprep.mubr.f32.mxu0 %v2987_v52 }
 0x19f   : > { %v1351_v13 = vadd.f32 %v1350_v50, %v4455_v25  ;;  %v2692_v34 = vpop.eup %2691  ;;  %v4842_v15 = vpop.f32.mrf.mxu1  ;;  %2664 = vmatmul.mubr.msk.f32.gmra.mxu1 %vm649_vm0, %v4438_v3  ;;  %v2989_v3 = vld [vmem:[%s3421_s5 + $0x388] sm:$0xff] }
 0x1a0   : > { %v1352_v2 = vpop.f32.mrf.mxu0  ;;  %2417 = vst [vmem:[%s4828_s19 + $0x8] sm:$0xff] %v2692_v34  ;;  %2221 = vmatprep.mubr.f32.mxu1 %v5360_v0 }
 0x1a1   : > { %2705 = vtanh.f32 %v1351_v13  ;;  %v1353_v53 = vadd.f32 %v1352_v2, %v4461_v28  ;;  %v2694_v58 = vpop.eup %2693  ;;  %v4849_v25 = vpop.f32.mrf.mxu1  ;;  %1965 = vmatmul.mubr.f32.gmra.mxu0 %v2988_v18 }
 0x1a2   : > { %v1356_v23 = vpop.f32.mrf.mxu0  ;;  %2420 = vst [vmem:[%s4828_s19 + $0x20] sm:$0xff] %v2694_v58  ;;  %1970 = vmatprep.mubr.f32.mxu0 %v2989_v3 }
 0x1a3   : > { %2707 = vtanh.f32 %v1353_v53  ;;  %v1357_v33 = vadd.f32 %v1356_v23, %v4469_v49  ;;  %v2696_v12 = vpop.eup %2695  ;;  %v4855_v28 = vpop.f32.mrf.mxu1  ;;  %2665 = vmatmul.mubr.msk.f32.gmra.mxu1 %vm649_vm0, %v4452_v19  ;;  %v2991_v19 = vld [vmem:[%s3421_s5 + $0x3b0] sm:$0xff]  ;;  %v2992_v23 = vld [vmem:[%s3421_s5 + $0x3a8] sm:$0xff] }
 0x1a4   : > { %v1358_v35 = vpop.f32.mrf.mxu0  ;;  %2421 = vst [vmem:[%s4828_s19 + $0x28] sm:$0xff] %v2696_v12  ;;  %2227 = vmatprep.mubr.f32.mxu1 %v5360_v0 }
 0x1a5   : > { %2709 = vtanh.f32 %v1357_v33  ;;  %v1359_v26 = vadd.f32 %v1358_v35, %v4475_v59  ;;  %v2698_v45 = vpop.eup %2697  ;;  %v4862_v49 = vpop.f32.mrf.mxu1  ;;  %1971 = vmatmul.mubr.f32.gmra.mxu0 %v2990_v36 }
 0x1a6   : > { %v1362_v50 = vpop.f32.mrf.mxu0  ;;  %2424 = vst [vmem:[%s4828_s19 + $0x40] sm:$0xff] %v2698_v45  ;;  %1976 = vmatprep.mubr.f32.mxu0 %v2991_v19  ;;  %v2994_v45 = vld [vmem:[%s3421_s5 + $0x3d0] sm:$0xff] }
 0x1a7   : > { %2711 = vtanh.f32 %v1359_v26  ;;  %v1363_v13 = vadd.f32 %v1362_v50, %v4483_v5  ;;  %v2700_v52 = vpop.eup %2699  ;;  %v4868_v59 = vpop.f32.mrf.mxu1  ;;  %2666 = vmatmul.mubr.msk.f32.gmra.mxu1 %vm649_vm0, %v4466_v39  ;;  %v2993_v39 = vld [vmem:[%s3421_s5 + $0x3d8] sm:$0xff] }
 0x1a8   : > { %v1364_v34 = vpop.f32.mrf.mxu0  ;;  %2425 = vst [vmem:[%s4828_s19 + $0x48] sm:$0xff] %v2700_v52  ;;  %2233 = vmatprep.mubr.f32.mxu1 %v5360_v0 }
 0x1a9   : > { %2713 = vtanh.f32 %v1363_v13  ;;  %v1365_v2 = vadd.f32 %v1364_v34, %v4489_v20  ;;  %v2702_v53 = vpop.eup %2701  ;;  %v4875_v5 = vpop.f32.mrf.mxu1  ;;  %1977 = vmatmul.mubr.f32.gmra.mxu0 %v2992_v23 }
 0x1aa   : > { %v1368_v58 = vpop.f32.mrf.mxu0  ;;  %2428 = vst [vmem:[%s4828_s19 + $0x60] sm:$0xff] %v2702_v53  ;;  %1982 = vmatprep.mubr.f32.mxu0 %v2993_v39 }
 0x1ab   : > { %2715 = vtanh.f32 %v1365_v2  ;;  %v1369_v18 = vadd.f32 %v1368_v58, %v4497_v42  ;;  %v2704_v33 = vpop.eup %2703  ;;  %v4881_v20 = vpop.f32.mrf.mxu1  ;;  %2667 = vmatmul.mubr.msk.f32.gmra.mxu1 %vm649_vm0, %v4480_v57  ;;  %v2995_v57 = vld [vmem:[%s3421_s5 + $0x400] sm:$0xff]  ;;  %v2996_v2 = vld [vmem:[%s3421_s5 + $0x3f8] sm:$0xff] }
 0x1ac   : > { %v1370_v3 = vpop.f32.mrf.mxu0  ;;  %2429 = vst [vmem:[%s4828_s19 + $0x68] sm:$0xff] %v2704_v33  ;;  %2239 = vmatprep.mubr.f32.mxu1 %v5360_v0 }
 0x1ad   : > { %2717 = vtanh.f32 %v1369_v18  ;;  %v1371_v12 = vadd.f32 %v1370_v3, %v4503_v27  ;;  %v4888_v42 = vpop.f32.mrf.mxu1  ;;  %1983 = vmatmul.mubr.f32.gmra.mxu0 %v2994_v45  ;;  %v2998_v3 = vld [vmem:[%s3421_s5 + $0x420] sm:$0xff] }
 0x1ae   : > { %v2706_v35 = vpop.eup %2705  ;;  %v1374_v26 = vpop.f32.mrf.mxu0  ;;  %1988 = vmatprep.mubr.f32.mxu0 %v2995_v57  ;;  %v5399_v45 = vld [vmem:[#allocation10_spill] sm:$0xff]  ;;  %v5400_v57 = vld [vmem:[#allocation13_spill] sm:$0xff] }
 0x1af   : > { %2432 = vst [vmem:[%s4828_s19 + $0x80] sm:$0xff] %v2706_v35  ;;  %2719 = vtanh.f32 %v1371_v12  ;;  %v1375_v50 = vadd.f32 %v1374_v26, %v4511_v16  ;;  %v4894_v27 = vpop.f32.mrf.mxu1  ;;  %2668 = vmatmul.mubr.msk.f32.gmra.mxu1 %vm649_vm0, %v4494_v6  ;;  %v2997_v6 = vld [vmem:[%s3421_s5 + $0x428] sm:$0xff]  ;;  %v5398_v12 = vld [vmem:[#allocation12_spill] sm:$0xff] }
 0x1b0   : > { %v2708_v36 = vpop.eup %2707  ;;  %v1376_v13 = vpop.f32.mrf.mxu0  ;;  %2245 = vmatprep.mubr.f32.mxu1 %v5360_v0 }
 0x1b1   : > { %2433 = vst [vmem:[%s4828_s19 + $0x88] sm:$0xff] %v2708_v36  ;;  %2721 = vtanh.f32 %v1375_v50  ;;  %v1377_v19 = vadd.f32 %v1376_v13, %v4517_v10  ;;  %v4901_v16 = vpop.f32.mrf.mxu1  ;;  %1989 = vmatmul.mubr.f32.gmra.mxu0 %v2996_v2  ;;  %v5401_v2 = vld [vmem:[#allocation2_spill] sm:$0xff] }
 0x1b2   : > { %v2710_v52 = vpop.eup %2709  ;;  %v1380_v34 = vpop.f32.mrf.mxu0  ;;  %1994 = vmatprep.mubr.f32.mxu0 %v2997_v6  ;;  %v3001_v6 = vld [vmem:[%s3421_s5 + $0x478] sm:$0xff] }
 0x1b3   : > { %2436 = vst [vmem:[%s4828_s19 + $0xa0] sm:$0xff] %v2710_v52  ;;  %2723 = vtanh.f32 %v1377_v19  ;;  %v1381_v53 = vadd.f32 %v1380_v34, %v4525_v63  ;;  %v4907_v10 = vpop.f32.mrf.mxu1  ;;  %2669 = vmatmul.mubr.msk.f32.gmra.mxu1 %vm649_vm0, %v4508_v17  ;;  %v2999_v17 = vld [vmem:[%s3421_s5 + $0x450] sm:$0xff]  ;;  %v3000_v34 = vld [vmem:[%s3421_s5 + $0x448] sm:$0xff] }
 0x1b4   : > { %v2712_v58 = vpop.eup %2711  ;;  %v1382_v23 = vpop.f32.mrf.mxu0  ;;  %2251 = vmatprep.mubr.f32.mxu1 %v5360_v0 }
 0x1b5   : > { %2437 = vst [vmem:[%s4828_s19 + $0xa8] sm:$0xff] %v2712_v58  ;;  %2725 = vtanh.f32 %v1381_v53  ;;  %v1383_v18 = vadd.f32 %v1382_v23, %v4531_v43  ;;  %v4914_v63 = vpop.f32.mrf.mxu1  ;;  %1995 = vmatmul.mubr.f32.gmra.mxu0 %v2998_v3 }
 0x1b6   : > { %v2714_v39 = vpop.eup %2713  ;;  %v1386_v33 = vpop.f32.mrf.mxu0  ;;  %2000 = vmatprep.mubr.f32.mxu0 %v2999_v17 }
 0x1b7   : > { %2440 = vst [vmem:[%s4828_s19 + $0xc0] sm:$0xff] %v2714_v39  ;;  %2727 = vtanh.f32 %v1383_v18  ;;  %v1387_v35 = vadd.f32 %v1386_v33, %v5398_v12  ;;  %v4920_v43 = vpop.f32.mrf.mxu1  ;;  %2670 = vmatmul.mubr.msk.f32.gmra.mxu1 %vm649_vm0, %v5399_v45  ;;  %v5402_v18 = vld [vmem:[#allocation11_spill] sm:$0xff]  ;;  %v5404_v45 = vld [vmem:[#allocation4_spill] sm:$0xff] }
 0x1b8   : > { %v2716_v26 = vpop.eup %2715  ;;  %v1388_v50 = vpop.f32.mrf.mxu0  ;;  %2257 = vmatprep.mubr.f32.mxu1 %v5360_v0  ;;  %v5403_v33 = vld [vmem:[#allocation3_spill] sm:$0xff] }
 0x1b9   : > { %2441 = vst [vmem:[%s4828_s19 + $0xc8] sm:$0xff] %v2716_v26  ;;  %2729 = vtanh.f32 %v1387_v35  ;;  %v1389_v36 = vadd.f32 %v1388_v50, %v5400_v57  ;;  %v4927_v19 = vpop.f32.mrf.mxu1  ;;  %2001 = vmatmul.mubr.f32.gmra.mxu0 %v3000_v34  ;;  %v3002_v26 = vld [vmem:[%s3421_s5 + $0x470] sm:$0xff]  ;;  %v3003_v57 = vld [vmem:[%s3421_s5 + $0x4a0] sm:$0xff] }
 0x1ba   : > { %v2718_v13 = vpop.eup %2717  ;;  %v1392_v52 = vpop.f32.mrf.mxu0  ;;  %2006 = vmatprep.mubr.f32.mxu0 %v3001_v6 }
 0x1bb   : > { %2444 = vst [vmem:[%s4828_s19 + $0xe0] sm:$0xff] %v2718_v13  ;;  %2731 = vtanh.f32 %v1389_v36  ;;  %v1393_v53 = vadd.f32 %v1392_v52, %v5401_v2  ;;  %v4933_v23 = vpop.f32.mrf.mxu1  ;;  %2671 = vmatmul.mubr.msk.f32.gmra.mxu1 %vm649_vm0, %v5402_v18  ;;  %v5405_v52 = vld [vmem:[#allocation14_spill] sm:$0xff]  ;;  %v3004_v18 = vld [vmem:[%s3421_s5 + $0x498] sm:$0xff] }
 0x1bc   : > { %v2720_v58 = vpop.eup %2719  ;;  %v1394_v39 = vpop.f32.mrf.mxu0  ;;  %2263 = vmatprep.mubr.f32.mxu1 %v5360_v0 }
 0x1bd   : > { %2445 = vst [vmem:[%s4828_s19 + $0xe8] sm:$0xff] %v2720_v58  ;;  %2733 = vtanh.f32 %v1393_v53  ;;  %v1395_v3 = vadd.f32 %v1394_v39, %v5403_v33  ;;  %v4940_v35 = vpop.f32.mrf.mxu1  ;;  %2007 = vmatmul.mubr.f32.gmra.mxu0 %v3002_v26  ;;  %v3005_v33 = vld [vmem:[%s3421_s5 + $0x4c8] sm:$0xff]  ;;  %v5407_v26 = vld [vmem:[#allocation6_spill] sm:$0xff] }
 0x1be   : > { %v2722_v12 = vpop.eup %2721  ;;  %v1398_v17 = vpop.f32.mrf.mxu0  ;;  %2012 = vmatprep.mubr.f32.mxu0 %v3003_v57 }
 0x1bf   : > { %2448 = vst [vmem:[%s4828_s19 + $0x100] sm:$0xff] %v2722_v12  ;;  %2735 = vtanh.f32 %v1395_v3  ;;  %v1399_v50 = vadd.f32 %v1398_v17, %v5404_v45  ;;  %v4946_v13 = vpop.f32.mrf.mxu1  ;;  %2672 = vmatmul.mubr.msk.f32.gmra.mxu1 %vm649_vm0, %v5405_v52  ;;  %v5406_v12 = vld [vmem:[#allocation15_spill] sm:$0xff] }
 0x1c0   : > { %v2724_v36 = vpop.eup %2723  ;;  %v1400_v34 = vpop.f32.mrf.mxu0  ;;  %2269 = vmatprep.mubr.f32.mxu1 %v5360_v0 }
 0x1c1   : > { %2449 = vst [vmem:[%s4828_s19 + $0x108] sm:$0xff] %v2724_v36  ;;  %2737 = vtanh.f32 %v1399_v50  ;;  %v1401_v2 = vadd.f32 %v1400_v34, %v4573_v62  ;;  %v4953_v6 = vpop.f32.mrf.mxu1  ;;  %2013 = vmatmul.mubr.f32.gmra.mxu0 %v3004_v18  ;;  %v3006_v36 = vld [vmem:[%s3421_s5 + $0x4c0] sm:$0xff]  ;;  %v3007_v34 = vld [vmem:[%s3421_s5 + $0x4f0] sm:$0xff] }
 0x1c2   : > { %v2726_v53 = vpop.eup %2725  ;;  %v1404_v58 = vpop.f32.mrf.mxu0  ;;  %2018 = vmatprep.mubr.f32.mxu0 %v3005_v33 }
 0x1c3   : > { %2452 = vst [vmem:[%s4828_s19 + $0x120] sm:$0xff] %v2726_v53  ;;  %2739 = vtanh.f32 %v1401_v2  ;;  %v1405_v39 = vadd.f32 %v1404_v58, %v4581_v30  ;;  %v4959_v62 = vpop.f32.mrf.mxu1  ;;  %2673 = vmatmul.mubr.msk.f32.gmra.mxu1 %vm649_vm0, %v5406_v12  ;;  %v5408_v58 = vld [vmem:[#allocation5_spill] sm:$0xff] }
 0x1c4   : > { %v2728_v3 = vpop.eup %2727  ;;  %v1406_v17 = vpop.f32.mrf.mxu0  ;;  %2275 = vmatprep.mubr.f32.mxu1 %v5360_v0 }
 0x1c5   : > { %2453 = vst [vmem:[%s4828_s19 + $0x128] sm:$0xff] %v2728_v3  ;;  %2741 = vtanh.f32 %v1405_v39  ;;  %v1407_v45 = vadd.f32 %v1406_v17, %v5407_v26  ;;  %v4966_v30 = vpop.f32.mrf.mxu1  ;;  %2019 = vmatmul.mubr.f32.gmra.mxu0 %v3006_v36  ;;  %v5409_v39 = vld [vmem:[#allocation16_spill] sm:$0xff]  ;;  %v3008_v17 = vld [vmem:[%s3421_s5 + $0x4e8] sm:$0xff]  ;;  %v5410_v26 = vld [vmem:[#allocation17_spill] sm:$0xff] }
 0x1c6   : > { %v2730_v50 = vpop.eup %2729  ;;  %v1410_v57 = vpop.f32.mrf.mxu0  ;;  %2024 = vmatprep.mubr.f32.mxu0 %v3007_v34  ;;  %v5411_v36 = vld [vmem:[#allocation7_spill] sm:$0xff] }
 0x1c7   : > { %2456 = vst [vmem:[%s4828_s19 + $0x140] sm:$0xff] %v2730_v50  ;;  %2743 = vtanh.f32 %v1407_v45  ;;  %v1411_v52 = vadd.f32 %v1410_v57, %v4595_v48  ;;  %v4972_v53 = vpop.f32.mrf.mxu1  ;;  %2674 = vmatmul.mubr.msk.f32.gmra.mxu1 %vm649_vm0, %v5408_v58 }
 0x1c8   : > { %v2732_v2 = vpop.eup %2731  ;;  %v1412_v18 = vpop.f32.mrf.mxu0  ;;  %2281 = vmatprep.mubr.f32.mxu1 %v5360_v0 }
 0x1c9   : > { %2457 = vst [vmem:[%s4828_s19 + $0x148] sm:$0xff] %v2732_v2  ;;  %2745 = vtanh.f32 %v1411_v52  ;;  %v1413_v33 = vadd.f32 %v1412_v18, %v5409_v39  ;;  %v4979_v12 = vpop.f32.mrf.mxu1  ;;  %2025 = vmatmul.mubr.f32.gmra.mxu0 %v3008_v17  ;;  %v5412_v18 = vld [vmem:[#allocation8_spill] sm:$0xff] }
 0x1ca   : > { %v2734_v3 = vpop.eup %2733  ;;  %v1416_v48 = vpop.f32.mrf.mxu0 }
 0x1cb   : > { %2460 = vst [vmem:[%s4828_s19 + $0x160] sm:$0xff] %v2734_v3  ;;  %2747 = vtanh.f32 %v1413_v33  ;;  %v1417_v45 = vadd.f32 %v1416_v48, %v5410_v26  ;;  %v4984_v57 = vpop.f32.mrf.mxu1  ;;  %2675 = vmatmul.mubr.msk.f32.gmra.mxu1 %vm649_vm0, %v5411_v36 }
 0x1cc   : > { %v2736_v50 = vpop.eup %2735  ;;  %v1418_v52 = vpop.f32.mrf.mxu0 }
 0x1cd   : > { %2461 = vst [vmem:[%s4828_s19 + $0x168] sm:$0xff] %v2736_v50  ;;  %2749 = vtanh.f32 %v1417_v45  ;;  %v1419_v0 = vadd.f32 %v1418_v52, %v4611_v46  ;;  %v4990_v2 = vpop.f32.mrf.mxu1  ;;  %v5413_v50 = vld [vmem:[#allocation18_spill] sm:$0xff] }
 0x1ce   : > { %v2738_v34 = vpop.eup %2737  ;;  %v1422_v58 = vpop.f32.mrf.mxu0 }
 0x1cf   : > { %2464 = vst [vmem:[%s4828_s19 + $0x180] sm:$0xff] %v2738_v34  ;;  %2751 = vtanh.f32 %v1419_v0  ;;  %v1423_v39 = vadd.f32 %v1422_v58, %v5412_v18  ;;  %v4994_v3 = vpop.f32.mrf.mxu1 }
 0x1d0   : > { %v2740_v33 = vpop.eup %2739  ;;  %v1424_v48 = vpop.f32.mrf.mxu0 }
 0x1d1   : > { %2465 = vst [vmem:[%s4828_s19 + $0x188] sm:$0xff] %v2740_v33  ;;  %2753 = vtanh.f32 %v1423_v39  ;;  %v1425_v17 = vadd.f32 %v1424_v48, %v4622_v47  ;;  %v4998_v26 = vpop.f32.mrf.mxu1  ;;  %v5414_v33 = vld [vmem:[#allocation19_spill] sm:$0xff] }
 0x1d2   : > { %v2742_v46 = vpop.eup %2741  ;;  %v1428_v45 = vpop.f32.mrf.mxu0 }
 0x1d3   : > { %2468 = vst [vmem:[%s4828_s19 + $0x1a0] sm:$0xff] %v2742_v46  ;;  %2755 = vtanh.f32 %v1425_v17  ;;  %v1429_v36 = vadd.f32 %v1428_v45, %v5413_v50  ;;  %v5002_v0 = vpop.f32.mrf.mxu1 }
 0x1d4   : > { %v2744_v52 = vpop.eup %2743  ;;  %v1430_v34 = vpop.f32.mrf.mxu0 }
 0x1d5   : > { %2469 = vst [vmem:[%s4828_s19 + $0x1a8] sm:$0xff] %v2744_v52  ;;  %2757 = vtanh.f32 %v1429_v36  ;;  %v1431_v58 = vadd.f32 %v1430_v34, %v4633_v31  ;;  %v5006_v18 = vpop.f32.mrf.mxu1  ;;  %v5416_v34 = vld [vmem:[#allocation20_spill] sm:$0xff] }
 0x1d6   : > { %v2746_v47 = vpop.eup %2745  ;;  %v1434_v39 = vpop.f32.mrf.mxu0 }
 0x1d7   : > { %2472 = vst [vmem:[%s4828_s19 + $0x1c0] sm:$0xff] %v2746_v47  ;;  %2759 = vtanh.f32 %v1431_v58  ;;  %v1435_v48 = vadd.f32 %v1434_v39, %v5414_v33  ;;  %v5010_v46 = vpop.f32.mrf.mxu1 }
 0x1d8   : > { %v2748_v17 = vpop.eup %2747  ;;  %v1436_v45 = vpop.f32.mrf.mxu0 }
 0x1d9   : > { %2473 = vst [vmem:[%s4828_s19 + $0x1c8] sm:$0xff] %v2748_v17  ;;  %2761 = vtanh.f32 %v1435_v48  ;;  %v1437_v50 = vadd.f32 %v1436_v45, %v4644_v44  ;;  %v5014_v36 = vpop.f32.mrf.mxu1 }
 0x1da   : > { %v2750_v31 = vpop.eup %2749  ;;  %5415 = vst [vmem:[#allocation12_spill] sm:$0xff] %v5014_v36  ;;  %v1440_v52 = vpop.f32.mrf.mxu0 }
 0x1db   : > { %2476 = vst [vmem:[%s4828_s19 + $0x1e0] sm:$0xff] %v2750_v31  ;;  %2763 = vtanh.f32 %v1437_v50  ;;  %v1441_v58 = vadd.f32 %v1440_v52, %v5416_v34  ;;  %v5018_v39 = vpop.f32.mrf.mxu1  ;;  %v5418_v31 = vld [vmem:[#allocation21_spill] sm:$0xff] }
 0x1dc   : > { %v2752_v47 = vpop.eup %2751  ;;  %v1442_v33 = vpop.f32.mrf.mxu0 }
 0x1dd   : > { %2477 = vst [vmem:[%s4828_s19 + $0x1e8] sm:$0xff] %v2752_v47  ;;  %2765 = vtanh.f32 %v1441_v58  ;;  %v1443_v48 = vadd.f32 %v1442_v33, %v4655_v54  ;;  %v5022_v17 = vpop.f32.mrf.mxu1 }
 0x1de   : > { %v2754_v44 = vpop.eup %2753  ;;  %5417 = vst [vmem:[#allocation10_spill] sm:$0xff] %v5022_v17  ;;  %v1446_v45 = vpop.f32.mrf.mxu0 }
 0x1df   : > { %2480 = vst [vmem:[%s4828_s19 + $0x200] sm:$0xff] %v2754_v44  ;;  %2767 = vtanh.f32 %v1443_v48  ;;  %v1447_v50 = vadd.f32 %v1446_v45, %v5418_v31  ;;  %v5026_v34 = vpop.f32.mrf.mxu1  ;;  %v5420_v44 = vld [vmem:[#allocation22_spill] sm:$0xff] }
 0x1e0   : > { %v2756_v52 = vpop.eup %2755  ;;  %v1448_v36 = vpop.f32.mrf.mxu0 }
 0x1e1   : > { %2481 = vst [vmem:[%s4828_s19 + $0x208] sm:$0xff] %v2756_v52  ;;  %2769 = vtanh.f32 %v1447_v50  ;;  %v1449_v58 = vadd.f32 %v1448_v36, %v4666_v60  ;;  %v5030_v47 = vpop.f32.mrf.mxu1 }
 0x1e2   : > { %v2758_v54 = vpop.eup %2757  ;;  %5419 = vst [vmem:[#allocation13_spill] sm:$0xff] %v5030_v47  ;;  %v1452_v33 = vpop.f32.mrf.mxu0 }
 0x1e3   : > { %2484 = vst [vmem:[%s4828_s19 + $0x220] sm:$0xff] %v2758_v54  ;;  %2771 = vtanh.f32 %v1449_v58  ;;  %v1453_v48 = vadd.f32 %v1452_v33, %v5420_v44  ;;  %v5034_v31 = vpop.f32.mrf.mxu1  ;;  %v5422_v54 = vld [vmem:[#allocation23_spill] sm:$0xff] }
 0x1e4   : > { %v2760_v45 = vpop.eup %2759  ;;  %v1454_v17 = vpop.f32.mrf.mxu0 }
 0x1e5   : > { %2485 = vst [vmem:[%s4828_s19 + $0x228] sm:$0xff] %v2760_v45  ;;  %2773 = vtanh.f32 %v1453_v48  ;;  %v1455_v50 = vadd.f32 %v1454_v17, %v4677_v21  ;;  %v5038_v36 = vpop.f32.mrf.mxu1 }
 0x1e6   : > { %v2762_v60 = vpop.eup %2761  ;;  %5421 = vst [vmem:[#allocation2_spill] sm:$0xff] %v5038_v36  ;;  %v1458_v52 = vpop.f32.mrf.mxu0 }
 0x1e7   : > { %2488 = vst [vmem:[%s4828_s19 + $0x240] sm:$0xff] %v2762_v60  ;;  %2775 = vtanh.f32 %v1455_v50  ;;  %v1459_v58 = vadd.f32 %v1458_v52, %v5422_v54  ;;  %v5042_v44 = vpop.f32.mrf.mxu1  ;;  %v5424_v60 = vld [vmem:[#allocation24_spill] sm:$0xff] }
 0x1e8   : > { %v2764_v33 = vpop.eup %2763  ;;  %v1460_v47 = vpop.f32.mrf.mxu0 }
 0x1e9   : > { %2489 = vst [vmem:[%s4828_s19 + $0x248] sm:$0xff] %v2764_v33  ;;  %2777 = vtanh.f32 %v1459_v58  ;;  %v1461_v48 = vadd.f32 %v1460_v47, %v4688_v14  ;;  %v5046_v17 = vpop.f32.mrf.mxu1 }
 0x1ea   : > { %v2766_v21 = vpop.eup %2765  ;;  %5423 = vst [vmem:[#allocation11_spill] sm:$0xff] %v5046_v17  ;;  %v1464_v45 = vpop.f32.mrf.mxu0 }
 0x1eb   : > { %2492 = vst [vmem:[%s4828_s19 + $0x260] sm:$0xff] %v2766_v21  ;;  %2779 = vtanh.f32 %v1461_v48  ;;  %v1465_v50 = vadd.f32 %v1464_v45, %v5424_v60  ;;  %v5050_v54 = vpop.f32.mrf.mxu1  ;;  %v5426_v21 = vld [vmem:[#allocation25_spill] sm:$0xff] }
 0x1ec   : > { %v2768_v52 = vpop.eup %2767  ;;  %v1466_v36 = vpop.f32.mrf.mxu0 }
 0x1ed   : > { %2493 = vst [vmem:[%s4828_s19 + $0x268] sm:$0xff] %v2768_v52  ;;  %2781 = vtanh.f32 %v1465_v50  ;;  %v1467_v58 = vadd.f32 %v1466_v36, %v4699_v4  ;;  %v5054_v47 = vpop.f32.mrf.mxu1 }
 0x1ee   : > { %v2770_v14 = vpop.eup %2769  ;;  %5425 = vst [vmem:[#allocation3_spill] sm:$0xff] %v5054_v47  ;;  %v1470_v33 = vpop.f32.mrf.mxu0 }
 0x1ef   : > { %2496 = vst [vmem:[%s4828_s19 + $0x280] sm:$0xff] %v2770_v14  ;;  %2783 = vtanh.f32 %v1467_v58  ;;  %v1471_v48 = vadd.f32 %v1470_v33, %v5426_v21  ;;  %v5058_v60 = vpop.f32.mrf.mxu1  ;;  %v5428_v14 = vld [vmem:[#allocation26_spill] sm:$0xff] }
 0x1f0   : > { %v2772_v45 = vpop.eup %2771  ;;  %v1472_v17 = vpop.f32.mrf.mxu0 }
 0x1f1   : > { %2497 = vst [vmem:[%s4828_s19 + $0x288] sm:$0xff] %v2772_v45  ;;  %2785 = vtanh.f32 %v1471_v48  ;;  %v1473_v50 = vadd.f32 %v1472_v17, %v4710_v41  ;;  %v5062_v36 = vpop.f32.mrf.mxu1 }
 0x1f2   : > { %v2774_v4 = vpop.eup %2773  ;;  %5427 = vst [vmem:[#allocation4_spill] sm:$0xff] %v5062_v36  ;;  %v1476_v52 = vpop.f32.mrf.mxu0 }
 0x1f3   : > { %2500 = vst [vmem:[%s4828_s19 + $0x2a0] sm:$0xff] %v2774_v4  ;;  %2787 = vtanh.f32 %v1473_v50  ;;  %v1477_v58 = vadd.f32 %v1476_v52, %v5428_v14  ;;  %v5066_v21 = vpop.f32.mrf.mxu1  ;;  %v5430_v4 = vld [vmem:[#allocation27_spill] sm:$0xff] }
 0x1f4   : > { %v2776_v33 = vpop.eup %2775  ;;  %v1478_v47 = vpop.f32.mrf.mxu0 }
 0x1f5   : > { %2501 = vst [vmem:[%s4828_s19 + $0x2a8] sm:$0xff] %v2776_v33  ;;  %2789 = vtanh.f32 %v1477_v58  ;;  %v1479_v48 = vadd.f32 %v1478_v47, %v4721_v1  ;;  %v5070_v17 = vpop.f32.mrf.mxu1 }
 0x1f6   : > { %v2778_v41 = vpop.eup %2777  ;;  %5429 = vst [vmem:[#allocation14_spill] sm:$0xff] %v5070_v17  ;;  %v1482_v45 = vpop.f32.mrf.mxu0 }
 0x1f7   : > { %2504 = vst [vmem:[%s4828_s19 + $0x2c0] sm:$0xff] %v2778_v41  ;;  %2791 = vtanh.f32 %v1479_v48  ;;  %v1483_v50 = vadd.f32 %v1482_v45, %v5430_v4  ;;  %v5074_v14 = vpop.f32.mrf.mxu1  ;;  %v5432_v41 = vld [vmem:[#allocation28_spill] sm:$0xff] }
 0x1f8   : > { %v2780_v52 = vpop.eup %2779  ;;  %v1484_v36 = vpop.f32.mrf.mxu0 }
 0x1f9   : > { %2505 = vst [vmem:[%s4828_s19 + $0x2c8] sm:$0xff] %v2780_v52  ;;  %2793 = vtanh.f32 %v1483_v50  ;;  %v1485_v58 = vadd.f32 %v1484_v36, %v4732_v37  ;;  %v5078_v47 = vpop.f32.mrf.mxu1 }
 0x1fa   : > { %v2782_v1 = vpop.eup %2781  ;;  %5431 = vst [vmem:[#allocation15_spill] sm:$0xff] %v5078_v47  ;;  %v1488_v33 = vpop.f32.mrf.mxu0 }
 0x1fb   : > { %2508 = vst [vmem:[%s4828_s19 + $0x2e0] sm:$0xff] %v2782_v1  ;;  %2795 = vtanh.f32 %v1485_v58  ;;  %v1489_v48 = vadd.f32 %v1488_v33, %v5432_v41  ;;  %v5082_v4 = vpop.f32.mrf.mxu1  ;;  %v5435_v1 = vld [vmem:[#allocation29_spill] sm:$0xff] }
 0x1fc   : > { %v2784_v45 = vpop.eup %2783  ;;  %5433 = vst [vmem:[#allocation6_spill] sm:$0xff] %v5082_v4  ;;  %v1490_v17 = vpop.f32.mrf.mxu0  ;;  %v5440_v4 = vld [vmem:[#allocation9_spill] sm:$0xff] }
 0x1fd   : > { %2509 = vst [vmem:[%s4828_s19 + $0x2e8] sm:$0xff] %v2784_v45  ;;  %2797 = vtanh.f32 %v1489_v48  ;;  %v1491_v50 = vadd.f32 %v1490_v17, %v4743_v11  ;;  %v5086_v36 = vpop.f32.mrf.mxu1 }
 0x1fe   : > { %v2786_v37 = vpop.eup %2785  ;;  %5434 = vst [vmem:[#allocation5_spill] sm:$0xff] %v5086_v36  ;;  %v1494_v52 = vpop.f32.mrf.mxu0 }
 0x1ff   : > { %2512 = vst [vmem:[%s4828_s19 + $0x300] sm:$0xff] %v2786_v37  ;;  %2799 = vtanh.f32 %v1491_v50  ;;  %v1495_v58 = vadd.f32 %v1494_v52, %v5435_v1  ;;  %v5090_v33 = vpop.f32.mrf.mxu1  ;;  %v5438_v37 = vld [vmem:[#allocation30_spill] sm:$0xff] }
 0x200   : > { %v2788_v47 = vpop.eup %2787  ;;  %5436 = vst [vmem:[#allocation16_spill] sm:$0xff] %v5090_v33  ;;  %v1496_v41 = vpop.f32.mrf.mxu0  ;;  %v639_v33 = vsub.s32 2, %v5440_v4 }
 0x201   : > { %2513 = vst [vmem:[%s4828_s19 + $0x308] sm:$0xff] %v2788_v47  ;;  %2801 = vtanh.f32 %v1495_v58  ;;  %v1497_v48 = vadd.f32 %v1496_v41, %v4754_v51  ;;  %v5094_v11 = vpop.f32.mrf.mxu1 }
 0x202   : > { %v2790_v45 = vpop.eup %2789  ;;  %5437 = vst [vmem:[#allocation17_spill] sm:$0xff] %v5094_v11  ;;  %v1500_v17 = vpop.f32.mrf.mxu0 }
 0x203   : > { %2516 = vst [vmem:[%s4828_s19 + $0x320] sm:$0xff] %v2790_v45  ;;  %2803 = vtanh.f32 %v1497_v48  ;;  %v1501_v50 = vadd.f32 %v1500_v17, %v5438_v37  ;;  %v5098_v52 = vpop.f32.mrf.mxu1  ;;  %v643_v45 = vsub.s32 3, %v5440_v4  ;;  %v5441_v48 = vld [vmem:[#allocation31_spill] sm:$0xff] }
 0x204   : > { %v2792_v36 = vpop.eup %2791  ;;  %5439 = vst [vmem:[#allocation7_spill] sm:$0xff] %v5098_v52  ;;  %v1502_v1 = vpop.f32.mrf.mxu0 }
 0x205   : > { %2517 = vst [vmem:[%s4828_s19 + $0x328] sm:$0xff] %v2792_v36  ;;  %2805 = vtanh.f32 %v1501_v50  ;;  %v1503_v51 = vadd.f32 %v1502_v1, %v4765_v61  ;;  %v5103_v58 = vpop.f32.mrf.mxu1  ;;  %v3009_v36 = vld [vmem:[%s5334_s2] sm:$0xf] }
 0x206   : > { %v2794_v47 = vpop.eup %2793  ;;  %v1506_v41 = vpop.f32.mrf.mxu0  ;;  %v5113_v61 = vrot.slane %v3009_v36, %v639_v33 }
 0x207   : > { %2520 = vst [vmem:[%s4828_s19 + $0x340] sm:$0xff] %v2794_v47  ;;  %2807 = vtanh.f32 %v1503_v51  ;;  %v1507_v17 = vadd.f32 %v1506_v41, %v5441_v48  ;;  %v5108_v52 = vpop.f32.mrf.mxu1  ;;  %v5119_v47 = vrot.slane %v3009_v36, %v643_v45 }
 0x208   : > { %v2796_v37 = vpop.eup %2795  ;;  %5442 = vst [vmem:[#allocation8_spill] sm:$0xff] %v5108_v52  ;;  %v1508_v11 = vpop.f32.mrf.mxu0 }
 0x209   : > { %2521 = vst [vmem:[%s4828_s19 + $0x348] sm:$0xff] %v2796_v37  ;;  %2809 = vtanh.f32 %v1507_v17  ;;  %v1509_v4 = vadd.f32 %v1508_v11, %v4776_v7  ;;  %v5117_v1 = vpop.f32.mrf.mxu1  ;;  %v1584_v17 = vadd.f32 %v4791_v55, %v5113_v61  ;;  %v1590_v55 = vadd.f32 %v4802_v40, %v5113_v61 }
 0x20a   : > { %v2798_v50 = vpop.eup %2797  ;;  %v1512_v51 = vpop.f32.mrf.mxu0  ;;  %v1596_v40 = vadd.f32 %v4813_v22, %v5113_v61  ;;  %v1602_v22 = vadd.f32 %v4830_v38, %v5113_v61  ;;  %v1608_v38 = vadd.f32 %v4842_v15, %v5113_v61 }
 0x20b   : > { %2524 = vst [vmem:[%s4828_s19 + $0x360] sm:$0xff] %v2798_v50  ;;  %2811 = vtanh.f32 %v1509_v4  ;;  %v1513_v41 = vadd.f32 %v1512_v51, %v4782_v56  ;;  %v5123_v52 = vpop.f32.mrf.mxu1  ;;  %v1586_v56 = vadd.f32 %v4797_v9, %v5119_v47 }
 0x20c   : > { %v2800_v48 = vpop.eup %2799  ;;  %5443 = vst [vmem:[#allocation18_spill] sm:$0xff] %v5123_v52  ;;  %v1514_v33 = vpop.f32.mrf.mxu0  ;;  %v1592_v52 = vadd.f32 %v4808_v29, %v5119_v47  ;;  %v1598_v29 = vadd.f32 %v4820_v32, %v5119_v47  ;;  %v1604_v32 = vadd.f32 %v4836_v8, %v5119_v47  ;;  %v1610_v8 = vadd.f32 %v4849_v25, %v5119_v47 }
 0x20d   : > { %2525 = vst [vmem:[%s4828_s19 + $0x368] sm:$0xff] %v2800_v48  ;;  %2813 = vtanh.f32 %v1513_v41  ;;  %v1515_v7 = vadd.f32 %v1514_v33, %v4787_v24  ;;  %v5129_v37 = vpop.f32.mrf.mxu1  ;;  %v1616_v25 = vadd.f32 %v4862_v49, %v5119_v47  ;;  %v1622_v49 = vadd.f32 %v4875_v5, %v5119_v47 }
 0x20e   : > { %v2802_v11 = vpop.eup %2801  ;;  %5444 = vst [vmem:[#allocation19_spill] sm:$0xff] %v5129_v37  ;;  %v1840_v45 = vpop.f32.mrf.mxu0  ;;  %v1628_v5 = vadd.f32 %v4888_v42, %v5119_v47  ;;  %v1634_v42 = vadd.f32 %v4901_v16, %v5119_v47  ;;  %v1640_v16 = vadd.f32 %v4914_v63, %v5119_v47  ;;  %v1646_v63 = vadd.f32 %v4927_v19, %v5119_v47 }
 0x20f   : > { %2528 = vst [vmem:[%s4828_s19 + $0x380] sm:$0xff] %v2802_v11  ;;  %2815 = vtanh.f32 %v1515_v7  ;;  %v1841_v36 = vadd.f32 %v1840_v45, %v1584_v17  ;;  %v2097_v50 = vpop.f32.mrf.mxu1  ;;  %v1652_v19 = vadd.f32 %v4940_v35, %v5119_v47  ;;  %v1658_v35 = vadd.f32 %v4953_v6, %v5119_v47 }
 0x210   : > { %v2804_v4 = vpop.eup %2803  ;;  %v1842_v51 = vpop.f32.mrf.mxu0  ;;  %v1664_v6 = vadd.f32 %v4966_v30, %v5119_v47  ;;  %v1670_v30 = vadd.f32 %v4979_v12, %v5119_v47  ;;  %v1676_v12 = vadd.f32 %v4990_v2, %v5119_v47  ;;  %v1682_v2 = vadd.f32 %v4998_v26, %v5119_v47 }
 0x211   : > { %2529 = vst [vmem:[%s4828_s19 + $0x388] sm:$0xff] %v2804_v4  ;;  %v2098_v24 = vadd.f32 %v2097_v50, %v1841_v36  ;;  %v1843_v41 = vadd.f32 %v1842_v51, %v1586_v56  ;;  %v2099_v33 = vpop.f32.mrf.mxu1  ;;  %v1688_v26 = vadd.f32 %v5006_v18, %v5119_v47  ;;  %v5445_v18 = vld [vmem:[#allocation12_spill] sm:$0xff] }
 0x212   : > { %v2806_v48 = vpop.eup %2805  ;;  %v1846_v37 = vpop.f32.mrf.mxu0 }
 0x213   : > { %2532 = vst [vmem:[%s4828_s19 + $0x3a0] sm:$0xff] %v2806_v48  ;;  %2817 = vtanh.f32 %v2098_v24  ;;  %v2100_v9 = vadd.f32 %v2099_v33, %v1843_v41  ;;  %v1847_v17 = vadd.f32 %v1846_v37, %v1590_v55  ;;  %v2103_v11 = vpop.f32.mrf.mxu1 }
 0x214   : > { %v2808_v7 = vpop.eup %2807  ;;  %v1848_v45 = vpop.f32.mrf.mxu0 }
 0x215   : > { %2533 = vst [vmem:[%s4828_s19 + $0x3a8] sm:$0xff] %v2808_v7  ;;  %2819 = vtanh.f32 %v2100_v9  ;;  %v2104_v56 = vadd.f32 %v2103_v11, %v1847_v17  ;;  %v1849_v36 = vadd.f32 %v1848_v45, %v1592_v52  ;;  %v2105_v50 = vpop.f32.mrf.mxu1 }
 0x216   : > { %v2810_v4 = vpop.eup %2809  ;;  %v1852_v51 = vpop.f32.mrf.mxu0 }
 0x217   : > { %2536 = vst [vmem:[%s4828_s19 + $0x3c0] sm:$0xff] %v2810_v4  ;;  %2821 = vtanh.f32 %v2104_v56  ;;  %v2106_v37 = vadd.f32 %v2105_v50, %v1849_v36  ;;  %v1853_v55 = vadd.f32 %v1852_v51, %v1596_v40  ;;  %v2109_v41 = vpop.f32.mrf.mxu1 }
 0x218   : > { %v2812_v24 = vpop.eup %2811  ;;  %v1854_v48 = vpop.f32.mrf.mxu0 }
 0x219   : > { %2537 = vst [vmem:[%s4828_s19 + $0x3c8] sm:$0xff] %v2812_v24  ;;  %2823 = vtanh.f32 %v2106_v37  ;;  %v2110_v52 = vadd.f32 %v2109_v41, %v1853_v55  ;;  %v1855_v33 = vadd.f32 %v1854_v48, %v1598_v29  ;;  %v2111_v17 = vpop.f32.mrf.mxu1 }
 0x21a   : > { %v2814_v9 = vpop.eup %2813  ;;  %v1858_v7 = vpop.f32.mrf.mxu0 }
 0x21b   : > { %2540 = vst [vmem:[%s4828_s19 + $0x3e0] sm:$0xff] %v2814_v9  ;;  %2825 = vtanh.f32 %v2110_v52  ;;  %v2112_v11 = vadd.f32 %v2111_v17, %v1855_v33  ;;  %v1859_v45 = vadd.f32 %v1858_v7, %v1602_v22  ;;  %v2115_v56 = vpop.f32.mrf.mxu1  ;;  %v1614_v22 = vadd.f32 %v4855_v28, %v5113_v61 }
 0x21c   : > { %v2816_v40 = vpop.eup %2815  ;;  %v1860_v36 = vpop.f32.mrf.mxu0  ;;  %v1620_v28 = vadd.f32 %v4868_v59, %v5113_v61  ;;  %v1626_v59 = vadd.f32 %v4881_v20, %v5113_v61  ;;  %v1632_v20 = vadd.f32 %v4894_v27, %v5113_v61  ;;  %v1638_v27 = vadd.f32 %v4907_v10, %v5113_v61 }
 0x21d   : > { %2541 = vst [vmem:[%s4828_s19 + $0x3e8] sm:$0xff] %v2816_v40  ;;  %2827 = vtanh.f32 %v2112_v11  ;;  %v2116_v4 = vadd.f32 %v2115_v56, %v1859_v45  ;;  %v1861_v50 = vadd.f32 %v1860_v36, %v1604_v32  ;;  %v2117_v51 = vpop.f32.mrf.mxu1  ;;  %v1644_v10 = vadd.f32 %v4920_v43, %v5113_v61 }
 0x21e   : > { %v1864_v29 = vpop.f32.mrf.mxu0  ;;  %v1650_v43 = vadd.f32 %v4933_v23, %v5113_v61  ;;  %v1656_v23 = vadd.f32 %v4946_v13, %v5113_v61  ;;  %v1662_v13 = vadd.f32 %v4959_v62, %v5113_v61  ;;  %v1668_v62 = vadd.f32 %v4972_v53, %v5113_v61 }
 0x21f   : > { %2829 = vtanh.f32 %v2116_v4  ;;  %v2118_v37 = vadd.f32 %v2117_v51, %v1861_v50  ;;  %v1865_v55 = vadd.f32 %v1864_v29, %v1608_v38  ;;  %v2121_v41 = vpop.f32.mrf.mxu1  ;;  %v1674_v53 = vadd.f32 %v4984_v57, %v5113_v61 }
 0x220   : > { %v2818_v24 = vpop.eup %2817  ;;  %v1866_v48 = vpop.f32.mrf.mxu0  ;;  %v1680_v57 = vadd.f32 %v4994_v3, %v5113_v61  ;;  %v1686_v3 = vadd.f32 %v5002_v0, %v5113_v61  ;;  %v1692_v0 = vadd.f32 %v5010_v46, %v5113_v61  ;;  %v1698_v46 = vadd.f32 %v5018_v39, %v5113_v61 }
 0x221   : > { %2418 = vst [vmem:[%s4828_s19 + $0x10] sm:$0xff] %v2818_v24  ;;  %2831 = vtanh.f32 %v2118_v37  ;;  %v2122_v15 = vadd.f32 %v2121_v41, %v1865_v55  ;;  %v1867_v52 = vadd.f32 %v1866_v48, %v1610_v8  ;;  %v2123_v9 = vpop.f32.mrf.mxu1  ;;  %v1704_v39 = vadd.f32 %v5026_v34, %v5113_v61 }
 0x222   : > { %v2820_v33 = vpop.eup %2819  ;;  %v1870_v17 = vpop.f32.mrf.mxu0  ;;  %v1710_v34 = vadd.f32 %v5034_v31, %v5113_v61  ;;  %v1716_v31 = vadd.f32 %v5042_v44, %v5113_v61  ;;  %v1722_v44 = vadd.f32 %v5050_v54, %v5113_v61  ;;  %v1728_v54 = vadd.f32 %v5058_v60, %v5113_v61 }
 0x223   : > { %2419 = vst [vmem:[%s4828_s19 + $0x18] sm:$0xff] %v2820_v33  ;;  %2833 = vtanh.f32 %v2122_v15  ;;  %v2124_v7 = vadd.f32 %v2123_v9, %v1867_v52  ;;  %v1871_v32 = vadd.f32 %v1870_v17, %v1614_v22  ;;  %v2127_v45 = vpop.f32.mrf.mxu1  ;;  %v1734_v60 = vadd.f32 %v5066_v21, %v5113_v61 }
 0x224   : > { %v2822_v11 = vpop.eup %2821  ;;  %v1872_v40 = vpop.f32.mrf.mxu0  ;;  %v1740_v21 = vadd.f32 %v5074_v14, %v5113_v61  ;;  %v5454_v14 = vld [vmem:[#allocation6_spill] sm:$0xff] }
 0x225   : > { %2422 = vst [vmem:[%s4828_s19 + $0x30] sm:$0xff] %v2822_v11  ;;  %2835 = vtanh.f32 %v2124_v7  ;;  %v2128_v56 = vadd.f32 %v2127_v45, %v1871_v32  ;;  %v1873_v36 = vadd.f32 %v1872_v40, %v1616_v25  ;;  %v2129_v4 = vpop.f32.mrf.mxu1 }
 0x226   : > { %v2824_v38 = vpop.eup %2823  ;;  %v1876_v50 = vpop.f32.mrf.mxu0 }
 0x227   : > { %2423 = vst [vmem:[%s4828_s19 + $0x38] sm:$0xff] %v2824_v38  ;;  %2837 = vtanh.f32 %v2128_v56  ;;  %v2130_v51 = vadd.f32 %v2129_v4, %v1873_v36  ;;  %v1877_v29 = vadd.f32 %v1876_v50, %v1620_v28  ;;  %v2133_v37 = vpop.f32.mrf.mxu1 }
 0x228   : > { %v2826_v8 = vpop.eup %2825  ;;  %v1878_v55 = vpop.f32.mrf.mxu0 }
 0x229   : > { %2426 = vst [vmem:[%s4828_s19 + $0x50] sm:$0xff] %v2826_v8  ;;  %2839 = vtanh.f32 %v2130_v51  ;;  %v2134_v24 = vadd.f32 %v2133_v37, %v1877_v29  ;;  %v1879_v41 = vadd.f32 %v1878_v55, %v1622_v49  ;;  %v2135_v22 = vpop.f32.mrf.mxu1 }
 0x22a   : > { %v2828_v48 = vpop.eup %2827  ;;  %v1882_v15 = vpop.f32.mrf.mxu0 }
 0x22b   : > { %2427 = vst [vmem:[%s4828_s19 + $0x58] sm:$0xff] %v2828_v48  ;;  %2841 = vtanh.f32 %v2134_v24  ;;  %v2136_v52 = vadd.f32 %v2135_v22, %v1879_v41  ;;  %v1883_v33 = vadd.f32 %v1882_v15, %v1626_v59  ;;  %v2139_v17 = vpop.f32.mrf.mxu1 }
 0x22c   : > { %v2830_v9 = vpop.eup %2829  ;;  %v1884_v25 = vpop.f32.mrf.mxu0 }
 0x22d   : > { %2430 = vst [vmem:[%s4828_s19 + $0x70] sm:$0xff] %v2830_v9  ;;  %2843 = vtanh.f32 %v2136_v52  ;;  %v2140_v7 = vadd.f32 %v2139_v17, %v1883_v33  ;;  %v1885_v32 = vadd.f32 %v1884_v25, %v1628_v5  ;;  %v2141_v45 = vpop.f32.mrf.mxu1 }
 0x22e   : > { %v2832_v11 = vpop.eup %2831  ;;  %v1888_v40 = vpop.f32.mrf.mxu0 }
 0x22f   : > { %2431 = vst [vmem:[%s4828_s19 + $0x78] sm:$0xff] %v2832_v11  ;;  %2845 = vtanh.f32 %v2140_v7  ;;  %v2142_v28 = vadd.f32 %v2141_v45, %v1885_v32  ;;  %v1889_v56 = vadd.f32 %v1888_v40, %v1632_v20  ;;  %v2145_v38 = vpop.f32.mrf.mxu1 }
 0x230   : > { %v2834_v36 = vpop.eup %2833  ;;  %v1890_v4 = vpop.f32.mrf.mxu0 }
 0x231   : > { %2434 = vst [vmem:[%s4828_s19 + $0x90] sm:$0xff] %v2834_v36  ;;  %2847 = vtanh.f32 %v2142_v28  ;;  %v2146_v50 = vadd.f32 %v2145_v38, %v1889_v56  ;;  %v1891_v49 = vadd.f32 %v1890_v4, %v1634_v42  ;;  %v2147_v29 = vpop.f32.mrf.mxu1 }
 0x232   : > { %v2836_v51 = vpop.eup %2835  ;;  %v1894_v8 = vpop.f32.mrf.mxu0 }
 0x233   : > { %2435 = vst [vmem:[%s4828_s19 + $0x98] sm:$0xff] %v2836_v51  ;;  %2849 = vtanh.f32 %v2146_v50  ;;  %v2148_v37 = vadd.f32 %v2147_v29, %v1891_v49  ;;  %v1895_v55 = vadd.f32 %v1894_v8, %v1638_v27  ;;  %v2151_v24 = vpop.f32.mrf.mxu1 }
 0x234   : > { %v2838_v59 = vpop.eup %2837  ;;  %v1896_v41 = vpop.f32.mrf.mxu0 }
 0x235   : > { %2438 = vst [vmem:[%s4828_s19 + $0xb0] sm:$0xff] %v2838_v59  ;;  %2851 = vtanh.f32 %v2148_v37  ;;  %v2152_v48 = vadd.f32 %v2151_v24, %v1895_v55  ;;  %v1897_v22 = vadd.f32 %v1896_v41, %v1640_v16  ;;  %v2153_v5 = vpop.f32.mrf.mxu1 }
 0x236   : > { %v2840_v15 = vpop.eup %2839  ;;  %v1900_v52 = vpop.f32.mrf.mxu0 }
 0x237   : > { %2439 = vst [vmem:[%s4828_s19 + $0xb8] sm:$0xff] %v2840_v15  ;;  %2853 = vtanh.f32 %v2152_v48  ;;  %v2154_v33 = vadd.f32 %v2153_v5, %v1897_v22  ;;  %v1901_v9 = vadd.f32 %v1900_v52, %v1644_v10  ;;  %v2157_v25 = vpop.f32.mrf.mxu1 }
 0x238   : > { %v2842_v17 = vpop.eup %2841  ;;  %v1902_v20 = vpop.f32.mrf.mxu0 }
 0x239   : > { %2442 = vst [vmem:[%s4828_s19 + $0xd0] sm:$0xff] %v2842_v17  ;;  %2855 = vtanh.f32 %v2154_v33  ;;  %v2158_v7 = vadd.f32 %v2157_v25, %v1901_v9  ;;  %v1903_v32 = vadd.f32 %v1902_v20, %v1646_v63  ;;  %v2159_v45 = vpop.f32.mrf.mxu1 }
 0x23a   : > { %v2844_v11 = vpop.eup %2843  ;;  %v1906_v40 = vpop.f32.mrf.mxu0 }
 0x23b   : > { %2443 = vst [vmem:[%s4828_s19 + $0xd8] sm:$0xff] %v2844_v11  ;;  %2857 = vtanh.f32 %v2158_v7  ;;  %v2160_v42 = vadd.f32 %v2159_v45, %v1903_v32  ;;  %v1907_v28 = vadd.f32 %v1906_v40, %v1650_v43  ;;  %v2163_v36 = vpop.f32.mrf.mxu1 }
 0x23c   : > { %v2846_v56 = vpop.eup %2845  ;;  %v1908_v38 = vpop.f32.mrf.mxu0 }
 0x23d   : > { %2446 = vst [vmem:[%s4828_s19 + $0xf0] sm:$0xff] %v2846_v56  ;;  %2859 = vtanh.f32 %v2160_v42  ;;  %v2164_v4 = vadd.f32 %v2163_v36, %v1907_v28  ;;  %v1909_v27 = vadd.f32 %v1908_v38, %v1652_v19  ;;  %v2165_v49 = vpop.f32.mrf.mxu1 }
 0x23e   : > { %v2848_v50 = vpop.eup %2847  ;;  %v1912_v51 = vpop.f32.mrf.mxu0 }
 0x23f   : > { %2447 = vst [vmem:[%s4828_s19 + $0xf8] sm:$0xff] %v2848_v50  ;;  %2861 = vtanh.f32 %v2164_v4  ;;  %v2166_v29 = vadd.f32 %v2165_v49, %v1909_v27  ;;  %v1913_v8 = vadd.f32 %v1912_v51, %v1656_v23  ;;  %v2169_v37 = vpop.f32.mrf.mxu1 }
 0x240   : > { %v2850_v16 = vpop.eup %2849  ;;  %v1914_v55 = vpop.f32.mrf.mxu0 }
 0x241   : > { %2450 = vst [vmem:[%s4828_s19 + $0x110] sm:$0xff] %v2850_v16  ;;  %2863 = vtanh.f32 %v2166_v29  ;;  %v2170_v59 = vadd.f32 %v2169_v37, %v1913_v8  ;;  %v1915_v24 = vadd.f32 %v1914_v55, %v1658_v35  ;;  %v2171_v10 = vpop.f32.mrf.mxu1 }
 0x242   : > { %v2852_v41 = vpop.eup %2851  ;;  %v1918_v48 = vpop.f32.mrf.mxu0 }
 0x243   : > { %2451 = vst [vmem:[%s4828_s19 + $0x118] sm:$0xff] %v2852_v41  ;;  %2865 = vtanh.f32 %v2170_v59  ;;  %v2172_v22 = vadd.f32 %v2171_v10, %v1915_v24  ;;  %v1919_v15 = vadd.f32 %v1918_v48, %v1662_v13  ;;  %v2175_v52 = vpop.f32.mrf.mxu1 }
 0x244   : > { %v2854_v5 = vpop.eup %2853  ;;  %v1920_v63 = vpop.f32.mrf.mxu0 }
 0x245   : > { %2454 = vst [vmem:[%s4828_s19 + $0x130] sm:$0xff] %v2854_v5  ;;  %2867 = vtanh.f32 %v2172_v22  ;;  %v2176_v33 = vadd.f32 %v2175_v52, %v1919_v15  ;;  %v1921_v9 = vadd.f32 %v1920_v63, %v1664_v6  ;;  %v2177_v25 = vpop.f32.mrf.mxu1 }
 0x246   : > { %v2856_v17 = vpop.eup %2855  ;;  %v1924_v20 = vpop.f32.mrf.mxu0 }
 0x247   : > { %2455 = vst [vmem:[%s4828_s19 + $0x138] sm:$0xff] %v2856_v17  ;;  %2869 = vtanh.f32 %v2176_v33  ;;  %v2178_v43 = vadd.f32 %v2177_v25, %v1921_v9  ;;  %v1925_v7 = vadd.f32 %v1924_v20, %v1668_v62  ;;  %v2181_v11 = vpop.f32.mrf.mxu1  ;;  %v1694_v25 = vadd.f32 %v5445_v18, %v5119_v47 }
 0x248   : > { %v2858_v32 = vpop.eup %2857  ;;  %v1926_v45 = vpop.f32.mrf.mxu0 }
 0x249   : > { %2458 = vst [vmem:[%s4828_s19 + $0x150] sm:$0xff] %v2858_v32  ;;  %2871 = vtanh.f32 %v2178_v43  ;;  %v2182_v40 = vadd.f32 %v2181_v11, %v1925_v7  ;;  %v1927_v19 = vadd.f32 %v1926_v45, %v1670_v30  ;;  %v2183_v28 = vpop.f32.mrf.mxu1 }
 0x24a   : > { %v2860_v42 = vpop.eup %2859  ;;  %v1930_v56 = vpop.f32.mrf.mxu0 }
 0x24b   : > { %2459 = vst [vmem:[%s4828_s19 + $0x158] sm:$0xff] %v2860_v42  ;;  %2873 = vtanh.f32 %v2182_v40  ;;  %v2184_v36 = vadd.f32 %v2183_v28, %v1927_v19  ;;  %v1931_v38 = vadd.f32 %v1930_v56, %v1674_v53  ;;  %v2187_v4 = vpop.f32.mrf.mxu1  ;;  %v5446_v42 = vld [vmem:[#allocation10_spill] sm:$0xff] }
 0x24c   : > { %v2862_v23 = vpop.eup %2861  ;;  %v1932_v27 = vpop.f32.mrf.mxu0  ;;  %v1700_v28 = vadd.f32 %v5446_v42, %v5119_v47 }
 0x24d   : > { %2462 = vst [vmem:[%s4828_s19 + $0x170] sm:$0xff] %v2862_v23  ;;  %2875 = vtanh.f32 %v2184_v36  ;;  %v2188_v50 = vadd.f32 %v2187_v4, %v1931_v38  ;;  %v1933_v49 = vadd.f32 %v1932_v27, %v1676_v12  ;;  %v2189_v35 = vpop.f32.mrf.mxu1 }
 0x24e   : > { %v2864_v51 = vpop.eup %2863  ;;  %v1936_v29 = vpop.f32.mrf.mxu0 }
 0x24f   : > { %2463 = vst [vmem:[%s4828_s19 + $0x178] sm:$0xff] %v2864_v51  ;;  %2877 = vtanh.f32 %v2188_v50  ;;  %v2190_v8 = vadd.f32 %v2189_v35, %v1933_v49  ;;  %v1937_v16 = vadd.f32 %v1936_v29, %v1680_v57  ;;  %v2193_v55 = vpop.f32.mrf.mxu1  ;;  %v5447_v51 = vld [vmem:[#allocation13_spill] sm:$0xff] }
 0x250   : > { %v2866_v37 = vpop.eup %2865  ;;  %v1938_v13 = vpop.f32.mrf.mxu0  ;;  %v1706_v35 = vadd.f32 %v5447_v51, %v5119_v47 }
 0x251   : > { %2466 = vst [vmem:[%s4828_s19 + $0x190] sm:$0xff] %v2866_v37  ;;  %2879 = vtanh.f32 %v2190_v8  ;;  %v2194_v59 = vadd.f32 %v2193_v55, %v1937_v16  ;;  %v1939_v24 = vadd.f32 %v1938_v13, %v1682_v2  ;;  %v2195_v10 = vpop.f32.mrf.mxu1 }
 0x252   : > { %v2868_v41 = vpop.eup %2867  ;;  %v1942_v48 = vpop.f32.mrf.mxu0 }
 0x253   : > { %2467 = vst [vmem:[%s4828_s19 + $0x198] sm:$0xff] %v2868_v41  ;;  %2881 = vtanh.f32 %v2194_v59  ;;  %v2196_v6 = vadd.f32 %v2195_v10, %v1939_v24  ;;  %v1943_v22 = vadd.f32 %v1942_v48, %v1686_v3  ;;  %v2199_v5 = vpop.f32.mrf.mxu1  ;;  %v5448_v41 = vld [vmem:[#allocation2_spill] sm:$0xff] }
 0x254   : > { %v2870_v15 = vpop.eup %2869  ;;  %v1944_v52 = vpop.f32.mrf.mxu0  ;;  %v1712_v10 = vadd.f32 %v5448_v41, %v5119_v47 }
 0x255   : > { %2470 = vst [vmem:[%s4828_s19 + $0x1b0] sm:$0xff] %v2870_v15  ;;  %2883 = vtanh.f32 %v2196_v6  ;;  %v2200_v63 = vadd.f32 %v2199_v5, %v1943_v22  ;;  %v1945_v62 = vadd.f32 %v1944_v52, %v1688_v26  ;;  %v2201_v9 = vpop.f32.mrf.mxu1 }
 0x256   : > { %v2872_v33 = vpop.eup %2871  ;;  %v1948_v17 = vpop.f32.mrf.mxu0 }
 0x257   : > { %2471 = vst [vmem:[%s4828_s19 + $0x1b8] sm:$0xff] %v2872_v33  ;;  %2885 = vtanh.f32 %v2200_v63  ;;  %v2202_v20 = vadd.f32 %v2201_v9, %v1945_v62  ;;  %v1949_v30 = vadd.f32 %v1948_v17, %v1692_v0  ;;  %v2205_v7 = vpop.f32.mrf.mxu1  ;;  %v5449_v33 = vld [vmem:[#allocation11_spill] sm:$0xff] }
 0x258   : > { %v2874_v43 = vpop.eup %2873  ;;  %v1950_v32 = vpop.f32.mrf.mxu0  ;;  %v1718_v9 = vadd.f32 %v5449_v33, %v5119_v47  ;;  %v1746_v33 = vadd.f32 %v5454_v14, %v5113_v61 }
 0x259   : > { %2474 = vst [vmem:[%s4828_s19 + $0x1d0] sm:$0xff] %v2874_v43  ;;  %2887 = vtanh.f32 %v2202_v20  ;;  %v2206_v11 = vadd.f32 %v2205_v7, %v1949_v30  ;;  %v1951_v45 = vadd.f32 %v1950_v32, %v1694_v25  ;;  %v2207_v40 = vpop.f32.mrf.mxu1 }
 0x25a   : > { %v2876_v53 = vpop.eup %2875  ;;  %v1954_v19 = vpop.f32.mrf.mxu0 }
 0x25b   : > { %2475 = vst [vmem:[%s4828_s19 + $0x1d8] sm:$0xff] %v2876_v53  ;;  %2889 = vtanh.f32 %v2206_v11  ;;  %v2208_v56 = vadd.f32 %v2207_v40, %v1951_v45  ;;  %v1955_v12 = vadd.f32 %v1954_v19, %v1698_v46  ;;  %v2211_v38 = vpop.f32.mrf.mxu1  ;;  %v5450_v45 = vld [vmem:[#allocation3_spill] sm:$0xff] }
 0x25c   : > { %v2878_v36 = vpop.eup %2877  ;;  %v1956_v23 = vpop.f32.mrf.mxu0  ;;  %v1724_v53 = vadd.f32 %v5450_v45, %v5119_v47  ;;  %v5456_v45 = vld [vmem:[#allocation16_spill] sm:$0xff] }
 0x25d   : > { %2478 = vst [vmem:[%s4828_s19 + $0x1f0] sm:$0xff] %v2878_v36  ;;  %2891 = vtanh.f32 %v2208_v56  ;;  %v2212_v4 = vadd.f32 %v2211_v38, %v1955_v12  ;;  %v1957_v27 = vadd.f32 %v1956_v23, %v1700_v28  ;;  %v2213_v50 = vpop.f32.mrf.mxu1 }
 0x25e   : > { %v2880_v57 = vpop.eup %2879  ;;  %v1960_v49 = vpop.f32.mrf.mxu0 }
 0x25f   : > { %2479 = vst [vmem:[%s4828_s19 + $0x1f8] sm:$0xff] %v2880_v57  ;;  %2893 = vtanh.f32 %v2212_v4  ;;  %v2214_v29 = vadd.f32 %v2213_v50, %v1957_v27  ;;  %v1961_v2 = vadd.f32 %v1960_v49, %v1704_v39  ;;  %v2217_v16 = vpop.f32.mrf.mxu1  ;;  %v5451_v4 = vld [vmem:[#allocation4_spill] sm:$0xff] }
 0x260   : > { %v2882_v8 = vpop.eup %2881  ;;  %v1962_v37 = vpop.f32.mrf.mxu0  ;;  %v1730_v27 = vadd.f32 %v5451_v4, %v5119_v47 }
 0x261   : > { %2482 = vst [vmem:[%s4828_s19 + $0x210] sm:$0xff] %v2882_v8  ;;  %2895 = vtanh.f32 %v2214_v29  ;;  %v2218_v55 = vadd.f32 %v2217_v16, %v1961_v2  ;;  %v1963_v13 = vadd.f32 %v1962_v37, %v1706_v35  ;;  %v2219_v59 = vpop.f32.mrf.mxu1 }
 0x262   : > { %v2884_v3 = vpop.eup %2883  ;;  %v1966_v24 = vpop.f32.mrf.mxu0 }
 0x263   : > { %2483 = vst [vmem:[%s4828_s19 + $0x218] sm:$0xff] %v2884_v3  ;;  %2897 = vtanh.f32 %v2218_v55  ;;  %v2220_v48 = vadd.f32 %v2219_v59, %v1963_v13  ;;  %v1967_v26 = vadd.f32 %v1966_v24, %v1710_v34  ;;  %v2223_v22 = vpop.f32.mrf.mxu1  ;;  %v5452_v34 = vld [vmem:[#allocation14_spill] sm:$0xff] }
 0x264   : > { %v2886_v6 = vpop.eup %2885  ;;  %v1968_v15 = vpop.f32.mrf.mxu0  ;;  %v1736_v55 = vadd.f32 %v5452_v34, %v5119_v47 }
 0x265   : > { %2486 = vst [vmem:[%s4828_s19 + $0x230] sm:$0xff] %v2886_v6  ;;  %2899 = vtanh.f32 %v2220_v48  ;;  %v2224_v5 = vadd.f32 %v2223_v22, %v1967_v26  ;;  %v1969_v52 = vadd.f32 %v1968_v15, %v1712_v10  ;;  %v2225_v63 = vpop.f32.mrf.mxu1  ;;  %v5453_v15 = vld [vmem:[#allocation15_spill] sm:$0xff] }
 0x266   : > { %v2888_v0 = vpop.eup %2887  ;;  %v1972_v62 = vpop.f32.mrf.mxu0 }
 0x267   : > { %2487 = vst [vmem:[%s4828_s19 + $0x238] sm:$0xff] %v2888_v0  ;;  %2901 = vtanh.f32 %v2224_v5  ;;  %v2226_v17 = vadd.f32 %v2225_v63, %v1969_v52  ;;  %v1973_v18 = vadd.f32 %v1972_v62, %v1716_v31  ;;  %v2229_v20 = vpop.f32.mrf.mxu1  ;;  %v1742_v31 = vadd.f32 %v5453_v15, %v5119_v47  ;;  %v5460_v15 = vld [vmem:[#allocation18_spill] sm:$0xff] }
 0x268   : > { %v2890_v25 = vpop.eup %2889  ;;  %v1974_v30 = vpop.f32.mrf.mxu0 }
 0x269   : > { %2490 = vst [vmem:[%s4828_s19 + $0x250] sm:$0xff] %v2890_v25  ;;  %2903 = vtanh.f32 %v2226_v17  ;;  %v2230_v43 = vadd.f32 %v2229_v20, %v1973_v18  ;;  %v1975_v7 = vadd.f32 %v1974_v30, %v1718_v9  ;;  %v2231_v46 = vpop.f32.mrf.mxu1  ;;  %v5455_v30 = vld [vmem:[#allocation5_spill] sm:$0xff] }
 0x26a   : > { %v2892_v32 = vpop.eup %2891  ;;  %v1978_v11 = vpop.f32.mrf.mxu0 }
 0x26b   : > { %2491 = vst [vmem:[%s4828_s19 + $0x258] sm:$0xff] %v2892_v32  ;;  %2905 = vtanh.f32 %v2230_v43  ;;  %v2232_v40 = vadd.f32 %v2231_v46, %v1975_v7  ;;  %v1979_v19 = vadd.f32 %v1978_v11, %v1722_v44  ;;  %v2235_v28 = vpop.f32.mrf.mxu1  ;;  %v1748_v44 = vadd.f32 %v5455_v30, %v5119_v47 }
 0x26c   : > { %v2894_v42 = vpop.eup %2893  ;;  %v1980_v56 = vpop.f32.mrf.mxu0 }
 0x26d   : > { %2494 = vst [vmem:[%s4828_s19 + $0x270] sm:$0xff] %v2894_v42  ;;  %2907 = vtanh.f32 %v2232_v40  ;;  %v2236_v12 = vadd.f32 %v2235_v28, %v1979_v19  ;;  %v1981_v36 = vadd.f32 %v1980_v56, %v1724_v53  ;;  %v2237_v23 = vpop.f32.mrf.mxu1  ;;  %v1752_v53 = vadd.f32 %v5456_v45, %v5113_v61 }
 0x26e   : > { %v2896_v38 = vpop.eup %2895  ;;  %v1984_v39 = vpop.f32.mrf.mxu0 }
 0x26f   : > { %2495 = vst [vmem:[%s4828_s19 + $0x278] sm:$0xff] %v2896_v38  ;;  %2909 = vtanh.f32 %v2236_v12  ;;  %v2238_v57 = vadd.f32 %v2237_v23, %v1981_v36  ;;  %v1985_v50 = vadd.f32 %v1984_v39, %v1728_v54  ;;  %v2241_v51 = vpop.f32.mrf.mxu1  ;;  %v5457_v54 = vld [vmem:[#allocation17_spill] sm:$0xff] }
 0x270   : > { %v2898_v49 = vpop.eup %2897  ;;  %v1986_v35 = vpop.f32.mrf.mxu0  ;;  %v1754_v12 = vadd.f32 %v5457_v54, %v5119_v47 }
 0x271   : > { %2498 = vst [vmem:[%s4828_s19 + $0x290] sm:$0xff] %v2898_v49  ;;  %2911 = vtanh.f32 %v2238_v57  ;;  %v2242_v29 = vadd.f32 %v2241_v51, %v1985_v50  ;;  %v1987_v2 = vadd.f32 %v1986_v35, %v1730_v27  ;;  %v2243_v16 = vpop.f32.mrf.mxu1  ;;  %v5458_v27 = vld [vmem:[#allocation7_spill] sm:$0xff] }
 0x272   : > { %v2900_v8 = vpop.eup %2899  ;;  %v1990_v37 = vpop.f32.mrf.mxu0  ;;  %v1758_v57 = vadd.f32 %v5458_v27, %v5113_v61 }
 0x273   : > { %2499 = vst [vmem:[%s4828_s19 + $0x298] sm:$0xff] %v2900_v8  ;;  %2913 = vtanh.f32 %v2242_v29  ;;  %v2244_v13 = vadd.f32 %v2243_v16, %v1987_v2  ;;  %v1991_v3 = vadd.f32 %v1990_v37, %v1734_v60  ;;  %v2247_v24 = vpop.f32.mrf.mxu1  ;;  %v1760_v29 = vadd.f32 %v5103_v58, %v5119_v47 }
 0x274   : > { %v2902_v59 = vpop.eup %2901  ;;  %v1992_v41 = vpop.f32.mrf.mxu0  ;;  %v1766_v58 = vadd.f32 %v5117_v1, %v5119_v47 }
 0x275   : > { %2502 = vst [vmem:[%s4828_s19 + $0x2b0] sm:$0xff] %v2902_v59  ;;  %2915 = vtanh.f32 %v2244_v13  ;;  %v2248_v10 = vadd.f32 %v2247_v24, %v1991_v3  ;;  %v1993_v48 = vadd.f32 %v1992_v41, %v1736_v55  ;;  %v2249_v6 = vpop.f32.mrf.mxu1  ;;  %v5459_v55 = vld [vmem:[#allocation8_spill] sm:$0xff] }
 0x276   : > { %v2904_v26 = vpop.eup %2903  ;;  %v1996_v22 = vpop.f32.mrf.mxu0  ;;  %v1764_v13 = vadd.f32 %v5459_v55, %v5113_v61 }
 0x277   : > { %2503 = vst [vmem:[%s4828_s19 + $0x2b8] sm:$0xff] %v2904_v26  ;;  %2917 = vtanh.f32 %v2248_v10  ;;  %v2250_v5 = vadd.f32 %v2249_v6, %v1993_v48  ;;  %v1997_v52 = vadd.f32 %v1996_v22, %v1740_v21  ;;  %v2253_v63 = vpop.f32.mrf.mxu1 }
 0x278   : > { %v2906_v0 = vpop.eup %2905  ;;  %v1998_v62 = vpop.f32.mrf.mxu0 }
 0x279   : > { %2506 = vst [vmem:[%s4828_s19 + $0x2d0] sm:$0xff] %v2906_v0  ;;  %2919 = vtanh.f32 %v2250_v5  ;;  %v2254_v9 = vadd.f32 %v2253_v63, %v1997_v52  ;;  %v1999_v17 = vadd.f32 %v1998_v62, %v1742_v31  ;;  %v2255_v25 = vpop.f32.mrf.mxu1  ;;  %v1770_v31 = vadd.f32 %v5460_v15, %v5113_v61  ;;  %v5461_v62 = vld [vmem:[#allocation19_spill] sm:$0xff] }
 0x27a   : > { %v2908_v18 = vpop.eup %2907  ;;  %v2002_v20 = vpop.f32.mrf.mxu0  ;;  %v1772_v14 = vadd.f32 %v5461_v62, %v5119_v47 }
 0x27b   : > { %2507 = vst [vmem:[%s4828_s19 + $0x2d8] sm:$0xff] %v2908_v18  ;;  %2921 = vtanh.f32 %v2254_v9  ;;  %v2256_v43 = vadd.f32 %v2255_v25, %v1999_v17  ;;  %v2003_v7 = vadd.f32 %v2002_v20, %v1746_v33  ;;  %v2259_v46 = vpop.f32.mrf.mxu1 }
 0x27c   : > { %v2910_v32 = vpop.eup %2909  ;;  %v2004_v11 = vpop.f32.mrf.mxu0 }
 0x27d   : > { %2510 = vst [vmem:[%s4828_s19 + $0x2f0] sm:$0xff] %v2910_v32  ;;  %2923 = vtanh.f32 %v2256_v43  ;;  %v2260_v40 = vadd.f32 %v2259_v46, %v2003_v7  ;;  %v2005_v19 = vadd.f32 %v2004_v11, %v1748_v44  ;;  %v2261_v28 = vpop.f32.mrf.mxu1 }
 0x27e   : > { %v2912_v42 = vpop.eup %2911  ;;  %v2008_v56 = vpop.f32.mrf.mxu0 }
 0x27f   : > { %2511 = vst [vmem:[%s4828_s19 + $0x2f8] sm:$0xff] %v2912_v42  ;;  %2925 = vtanh.f32 %v2260_v40  ;;  %v2262_v36 = vadd.f32 %v2261_v28, %v2005_v19  ;;  %v2009_v38 = vadd.f32 %v2008_v56, %v1752_v53  ;;  %v2265_v39 = vpop.f32.mrf.mxu1 }
 0x280   : > { %v2914_v23 = vpop.eup %2913  ;;  %v2010_v4 = vpop.f32.mrf.mxu0 }
 0x281   : > { %2514 = vst [vmem:[%s4828_s19 + $0x310] sm:$0xff] %v2914_v23  ;;  %2927 = vtanh.f32 %v2262_v36  ;;  %v2266_v50 = vadd.f32 %v2265_v39, %v2009_v38  ;;  %v2011_v49 = vadd.f32 %v2010_v4, %v1754_v12  ;;  %v2267_v35 = vpop.f32.mrf.mxu1 }
 0x282   : > { %v2916_v51 = vpop.eup %2915  ;;  %v2014_v60 = vpop.f32.mrf.mxu0 }
 0x283   : > { %2515 = vst [vmem:[%s4828_s19 + $0x318] sm:$0xff] %v2916_v51  ;;  %2929 = vtanh.f32 %v2266_v50  ;;  %v2268_v2 = vadd.f32 %v2267_v35, %v2011_v49  ;;  %v2015_v8 = vadd.f32 %v2014_v60, %v1758_v57  ;;  %v2271_v37 = vpop.f32.mrf.mxu1 }
 0x284   : > { %v2918_v16 = vpop.eup %2917  ;;  %v2016_v34 = vpop.f32.mrf.mxu0 }
 0x285   : > { %2518 = vst [vmem:[%s4828_s19 + $0x330] sm:$0xff] %v2918_v16  ;;  %2931 = vtanh.f32 %v2268_v2  ;;  %v2272_v3 = vadd.f32 %v2271_v37, %v2015_v8  ;;  %v2017_v59 = vadd.f32 %v2016_v34, %v1760_v29  ;;  %v2273_v41 = vpop.f32.mrf.mxu1 }
 0x286   : > { %v2920_v24 = vpop.eup %2919  ;;  %v2020_v21 = vpop.f32.mrf.mxu0 }
 0x287   : > { %2519 = vst [vmem:[%s4828_s19 + $0x338] sm:$0xff] %v2920_v24  ;;  %2933 = vtanh.f32 %v2272_v3  ;;  %v2274_v10 = vadd.f32 %v2273_v41, %v2017_v59  ;;  %v2021_v48 = vadd.f32 %v2020_v21, %v1764_v13  ;;  %v2277_v6 = vpop.f32.mrf.mxu1 }
 0x288   : > { %v2922_v26 = vpop.eup %2921  ;;  %v2022_v22 = vpop.f32.mrf.mxu0 }
 0x289   : > { %2522 = vst [vmem:[%s4828_s19 + $0x350] sm:$0xff] %v2922_v26  ;;  %2935 = vtanh.f32 %v2274_v10  ;;  %v2278_v5 = vadd.f32 %v2277_v6, %v2021_v48  ;;  %v2023_v52 = vadd.f32 %v2022_v22, %v1766_v58  ;;  %v2279_v63 = vpop.f32.mrf.mxu1 }
 0x28a   : > { %v2924_v0 = vpop.eup %2923  ;;  %v2026_v1 = vpop.f32.mrf.mxu0 }
 0x28b   : > { %2523 = vst [vmem:[%s4828_s19 + $0x358] sm:$0xff] %v2924_v0  ;;  %2937 = vtanh.f32 %v2278_v5  ;;  %v2280_v33 = vadd.f32 %v2279_v63, %v2023_v52  ;;  %v2027_v9 = vadd.f32 %v2026_v1, %v1770_v31  ;;  %v2283_v61 = vpop.f32.mrf.mxu1 }
 0x28c   : > { %v2926_v17 = vpop.eup %2925  ;;  %v2028_v18 = vpop.f32.mrf.mxu0 }
 0x28d   : > { %2526 = vst [vmem:[%s4828_s19 + $0x370] sm:$0xff] %v2926_v17  ;;  %2939 = vtanh.f32 %v2280_v33  ;;  %v2284_v25 = vadd.f32 %v2283_v61, %v2027_v9  ;;  %v2029_v20 = vadd.f32 %v2028_v18, %v1772_v14  ;;  %v2285_v44 = vpop.f32.mrf.mxu1 }
 0x28e   : > { %v2928_v30 = vpop.eup %2927 }
 0x28f   : > { %2527 = vst [vmem:[%s4828_s19 + $0x378] sm:$0xff] %v2928_v30  ;;  %2941 = vtanh.f32 %v2284_v25  ;;  %v2286_v47 = vadd.f32 %v2285_v44, %v2029_v20 }
 0x290   : > { %v2930_v43 = vpop.eup %2929 }
 0x291   : > { %2530 = vst [vmem:[%s4828_s19 + $0x390] sm:$0xff] %v2930_v43  ;;  %2943 = vtanh.f32 %v2286_v47 }
 0x292   : > { %v2932_v7 = vpop.eup %2931 }
 0x293   : > { %2531 = vst [vmem:[%s4828_s19 + $0x398] sm:$0xff] %v2932_v7 }
 0x294   : > { %v2934_v32 = vpop.eup %2933 }
 0x295   : > { %2534 = vst [vmem:[%s4828_s19 + $0x3b0] sm:$0xff] %v2934_v32 }
 0x296   : > { %v2936_v46 = vpop.eup %2935 }
 0x297   : > { %2535 = vst [vmem:[%s4828_s19 + $0x3b8] sm:$0xff] %v2936_v46 }
 0x298   : > { %v2938_v11 = vpop.eup %2937 }
 0x299   : > { %2538 = vst [vmem:[%s4828_s19 + $0x3d0] sm:$0xff] %v2938_v11 }
 0x29a   : > { %v2940_v45 = vpop.eup %2939 }
 0x29b   : > { %2539 = vst [vmem:[%s4828_s19 + $0x3d8] sm:$0xff] %v2940_v45 }
 0x29c   : > { %v2942_v53 = vpop.eup %2941 }
 0x29d   : > { %2542 = vst [vmem:[%s4828_s19 + $0x3f0] sm:$0xff] %v2942_v53 }
 0x29e   : > { %v2944_v40 = vpop.eup %2943 }
 0x29f   : > { %2543 = vst [vmem:[%s4828_s19 + $0x3f8] sm:$0xff] %v2944_v40 }
 0x2a0 PF: > { %s13_s12 = sadd.s32 1, %s3016_s12  }
 0x2a1   : > { %p10_p4 = scmp.ge.s32.totalorder %s13_s12, 4  }
 0x2a3   :  { %12 = sbr.rel (!%p10_p4) target bundleno = 1 (0x1), region = 62 }

</bundles_post_ra>
